<compile_context>
chip_gen: v6e
topology: v6e:2x2x1
jax: 0.10.0
libtpu: 0.0.40
codegen_flags: <defaults>
</compile_context>

<pallas_src>
import functools

import jax
import jax.numpy as jnp
from jax import lax
from jax.experimental import pallas as pl
from jax.experimental.pallas import tpu as pltpu

_LANE = 128


def _round_up(x, m):
    return ((x + m - 1) // m) * m


# ----------------------------------------------------------------------------
# Kernel
# ----------------------------------------------------------------------------
def _ibottle_kernel(x_ref, w1_ref, w2_ref, w3_ref,
                    c1_ref, a1_ref, s3_ref, b3_ref,
                    b4_ref, a2_ref, c3_ref,
                    o_ref, hp_ref, *, bt, h, w, cbp):
    m = bt * h * w

    # Residual / input: lane-dense (M, Cin_pad) f32 slab.
    x = x_ref[...]

    # conv1 (1x1) with bn1/bn2 folded into W1 and c1, then PReLU1, then bn3.
    h1 = jnp.dot(x.astype(jnp.bfloat16), w1_ref[...],
                 preferred_element_type=jnp.float32) + c1_ref[...]
    h1 = jnp.where(h1 >= 0.0, h1, a1_ref[...] * h1)
    h1 = h1 * s3_ref[...] + b3_ref[...]          # bn3 kept pre-conv (zero-pad correctness)

    # conv2: 3x3, stride 1, pad 1 -> halo scratch + im2col -> one MXU matmul.
    zrow = jnp.zeros((bt, 1, w + 2, cbp), jnp.float32)
    zcol = jnp.zeros((bt, h + 2, 1, cbp), jnp.float32)
    hp_ref[:, 0:1, :, :] = zrow
    hp_ref[:, h + 1:h + 2, :, :] = zrow
    hp_ref[:, :, 0:1, :] = zcol
    hp_ref[:, :, w + 1:w + 2, :] = zcol
    hp_ref[:, 1:h + 1, 1:w + 1, :] = h1.reshape(bt, h, w, cbp)

    cols = []
    for dy in range(3):
        for dx in range(3):
            win = hp_ref[:, dy:dy + h, dx:dx + w, :]          # (bt, h, w, cbp)
            cols.append(win.reshape(m, cbp).astype(jnp.bfloat16))
    col = jnp.concatenate(cols, axis=-1)                      # (M, 9*cbp) bf16

    # bn4 output scale is folded into w2 columns; only +b4 remains.
    h2 = jnp.dot(col, w2_ref[...], preferred_element_type=jnp.float32) + b4_ref[...]
    h2 = jnp.where(h2 >= 0.0, h2, a2_ref[...] * h2)           # PReLU2

    # conv3 (1x1) with bn5 scale folded into W3; +b5 (=c3) afterwards.
    h3 = jnp.dot(h2.astype(jnp.bfloat16), w3_ref[...],
                 preferred_element_type=jnp.float32) + c3_ref[...]

    o_ref[...] = h3 + x


# ----------------------------------------------------------------------------
# Wrapper
# ----------------------------------------------------------------------------
def _choose_batch_tile(n, h, w, cin_p, cb_p, budget_bytes=24 * 1024 * 1024):
    per_img = h * w * cin_p * 4 * 4              # in + out blocks, double buffered (f32)
    per_img += (h + 2) * (w + 2) * cb_p * 4      # halo scratch (f32)
    per_img += h * w * cb_p * (9 * 2 + 4 * 4)    # bf16 im2col patch + f32 temporaries
    bt = max(1, min(n, budget_bytes // per_img))
    if n >= 2:
        # Keep at least 2 grid steps so the "parallel" axis can shard across the
        # two TensorCores on v7x.
        bt = min(bt, n // 2)
    while n % bt:
        bt -= 1
    return max(bt, 1)


def ibottle_block_pallas(x_nhwc, kp):
    """x_nhwc: (N, H, W, Cin) float32, channels-last.  Returns (N, H, W, Cout)."""
    N, H, W, Cin = x_nhwc.shape
    cin_p, cb_p = kp["w1"].shape
    cout_p = kp["w3"].shape[1]
    cout = kp["cout"]
    assert cin_p == cout_p, "residual add requires inplanes == outplanes"
    assert (H * W) % 8 == 0

    # Lane-dense channel padding (extra lanes stay 0 through the whole block).
    x_pad = jnp.pad(x_nhwc, ((0, 0), (0, 0), (0, 0), (0, cin_p - Cin)))
    x2d = x_pad.reshape(N * H * W, cin_p)        # lane-dense 2-D input slab

    bt = _choose_batch_tile(N, H, W, cin_p, cb_p)
    M = bt * H * W
    grid = (N // bt,)

    kernel = functools.partial(_ibottle_kernel, bt=bt, h=H, w=W, cbp=cb_p)

    order = ["w1", "w2", "w3", "c1", "a1", "s3", "b3", "b4", "a2", "c3"]
    params = [kp[k] for k in order]

    in_specs = [pl.BlockSpec((M, cin_p), lambda n: (n, 0))]
    in_specs += [pl.BlockSpec(p.shape, lambda n, nd=p.ndim: (0,) * nd) for p in params]

    out2d = pl.pallas_call(
        kernel,
        grid=grid,
        in_specs=in_specs,
        out_specs=pl.BlockSpec((M, cout_p), lambda n: (n, 0)),
        out_shape=jax.ShapeDtypeStruct((N * H * W, cout_p), jnp.float32),
        scratch_shapes=[pltpu.VMEM((bt, H + 2, W + 2, cb_p), jnp.float32)],
        compiler_params=pltpu.CompilerParams(
            dimension_semantics=("parallel",),
            vmem_limit_bytes=48 * 1024 * 1024),
    )(x2d, *params)

    return out2d.reshape(N, H, W, cout_p)[..., :cout]


# ----------------------------------------------------------------------------
# Parameter preparation (BN folding + lane padding + bf16 weights)
# ----------------------------------------------------------------------------
def _fold_bn(gamma, beta, mean, var, eps=1e-5):
    scale = gamma / jnp.sqrt(var + eps)
    shift = beta - mean * scale
    return scale, shift


def prepare_kernel_params(raw, inplanes, outplanes):
    assert inplanes == outplanes, (
        "downsample=None requires inplanes == outplanes for the residual add")
    Cb = outplanes // 4
    cin_p = _round_up(inplanes, _LANE)
    cb_p = _round_up(Cb, _LANE)
    cout_p = _round_up(outplanes, _LANE)

    s1, b1 = _fold_bn(*raw["bn1"])
    s2, b2 = _fold_bn(*raw["bn2"])
    s3, b3 = _fold_bn(*raw["bn3"])
    s4, b4 = _fold_bn(*raw["bn4"])
    s5, b5 = _fold_bn(*raw["bn5"])

    w1 = jnp.transpose(raw["conv1_w"][:, :, 0, 0], (1, 0))   # (Cin, Cb)
    w2 = jnp.transpose(raw["conv2_w"], (2, 3, 1, 0))         # (3, 3, Cb_in, Cb_out)
    w3 = jnp.transpose(raw["conv3_w"][:, :, 0, 0], (1, 0))   # (Cb, Cout)

    # Fold BN scales into the conv weights; keep additive shifts for the kernel.
    W1 = (s1[:, None] * w1) * s2[None, :]
    c1 = (b1 @ w1) * s2 + b2
    W2 = w2 * s4[None, None, None, :]          # bn4 scale -> output columns
    W3 = w3 * s5[None, :]                      # bn5 scale -> output columns
    c3 = b5

    def pad2(a, r, c):
        return jnp.pad(a, ((0, r - a.shape[0]), (0, c - a.shape[1])))

    def padv(v, c):
        return jnp.pad(v, (0, c - v.shape[0])).reshape(1, c)

    W2p = jnp.pad(W2, ((0, 0), (0, 0), (0, cb_p - Cb), (0, cb_p - Cb)))

    return {
        "w1": pad2(W1, cin_p, cb_p).astype(jnp.bfloat16),
        "w2": W2p.reshape(9 * cb_p, cb_p).astype(jnp.bfloat16),   # im2col weight
        "w3": pad2(W3, cb_p, cout_p).astype(jnp.bfloat16),
        "c1": padv(c1, cb_p),
        "a1": padv(raw["prelu1_a"], cb_p),
        "s3": padv(s3, cb_p),
        "b3": padv(b3, cb_p),
        "b4": padv(b4, cb_p),
        "a2": padv(raw["prelu2_a"], cb_p),
        "c3": padv(c3, cout_p),
        "cout": outplanes,
    }


def make_raw_params(key, inplanes, outplanes):
    """Deterministic synthetic parameters (shapes match the PyTorch module)."""
    Cb = outplanes // 4
    keys = jax.random.split(key, 32)
    it = iter(keys)

    def nrm(shape, scale=0.1):
        return scale * jax.random.normal(next(it), shape, dtype=jnp.float32)

    def bn_params(C):
        gamma = 1.0 + nrm((C,))
        beta = nrm((C,))
        mean = nrm((C,))
        var = 0.5 + jax.random.uniform(next(it), (C,), dtype=jnp.float32)
        return gamma, beta, mean, var

    return {
        "bn1": bn_params(inplanes),
        "conv1_w": nrm((Cb, inplanes, 1, 1), 0.2),   # OIHW
        "bn2": bn_params(Cb),
        "prelu1_a": 0.25 + nrm((Cb,), 0.05),
        "bn3": bn_params(Cb),
        "conv2_w": nrm((Cb, Cb, 3, 3), 0.2),         # OIHW
        "bn4": bn_params(Cb),
        "prelu2_a": 0.25 + nrm((Cb,), 0.05),
        "conv3_w": nrm((outplanes, Cb, 1, 1), 0.2),  # OIHW
        "bn5": bn_params(outplanes),
    }


# ----------------------------------------------------------------------------
# Pure-JAX reference (mirrors the PyTorch forward, inference BN, NCHW)
# ----------------------------------------------------------------------------
def reference_forward(x_nchw, raw):
    def bn(x, p):
        g, b, m, v = p
        s = g / jnp.sqrt(v + 1e-5)
        return x * s[None, :, None, None] + (b - m * s)[None, :, None, None]

    def conv(x, wgt, stride=1, pad=0):
        return lax.conv_general_dilated(
            x, wgt, (stride, stride), [(pad, pad), (pad, pad)],
            dimension_numbers=("NCHW", "OIHW", "NCHW"))

    def prelu(x, a):
        return jnp.where(x >= 0, x, a[None, :, None, None] * x)

    identity = x_nchw
    out = bn(x_nchw, raw["bn1"])
    out = conv(out, raw["conv1_w"])
    out = bn(out, raw["bn2"])
    out = prelu(out, raw["prelu1_a"])
    out = bn(out, raw["bn3"])
    out = conv(out, raw["conv2_w"], pad=1)
    out = bn(out, raw["bn4"])
    out = prelu(out, raw["prelu2_a"])
    out = conv(out, raw["conv3_w"])
    out = bn(out, raw["bn5"])
    return out + identity


if __name__ == "__main__":
    N, inplanes, outplanes, H, W = 2, 8, 8, 16, 16   # stride=1, downsample=None
    key = jax.random.PRNGKey(0)
    kx, kw = jax.random.split(key)
    x_nchw = jax.random.normal(kx, (N, inplanes, H, W), dtype=jnp.float32)

    raw = make_raw_params(kw, inplanes, outplanes)
    kp = prepare_kernel_params(raw, inplanes, outplanes)

    # The optimized pallas entry point is channels-last; layout conversion here
    # is test-harness only (production callers should keep NHWC end to end).
    x_nhwc = jnp.transpose(x_nchw, (0, 2, 3, 1))
    out_nhwc = jax.block_until_ready(ibottle_block_pallas(x_nhwc, kp))

    ref_nhwc = jnp.transpose(jax.block_until_ready(reference_forward(x_nchw, raw)),
                             (0, 2, 3, 1))
    assert out_nhwc.shape == ref_nhwc.shape == (N, H, W, outplanes)
    # bf16 MXU inputs -> loosened tolerance vs. the f32 reference.
    max_err = float(jnp.max(jnp.abs(out_nhwc - ref_nhwc)))
    assert jnp.allclose(out_nhwc, ref_nhwc, atol=5e-2, rtol=5e-2), max_err
    print("KERNEL_OK")
</pallas_src>

<mosaic_0001>
module attributes {stable_mosaic.version = 11 : i64} {
  func.func @_ibottle_kernel(%arg0: i32, %arg1: memref<256x128xf32, #tpu.memory_space<vmem>>, %arg2: memref<128x128xbf16, #tpu.memory_space<vmem>>, %arg3: memref<1152x128xbf16, #tpu.memory_space<vmem>>, %arg4: memref<128x128xbf16, #tpu.memory_space<vmem>>, %arg5: memref<1x128xf32, #tpu.memory_space<vmem>>, %arg6: memref<1x128xf32, #tpu.memory_space<vmem>>, %arg7: memref<1x128xf32, #tpu.memory_space<vmem>>, %arg8: memref<1x128xf32, #tpu.memory_space<vmem>>, %arg9: memref<1x128xf32, #tpu.memory_space<vmem>>, %arg10: memref<1x128xf32, #tpu.memory_space<vmem>>, %arg11: memref<1x128xf32, #tpu.memory_space<vmem>>, %arg12: memref<256x128xf32, #tpu.memory_space<vmem>>, %arg13: memref<1x18x18x128xf32, #tpu.memory_space<vmem>>) attributes {dimension_semantics = [#tpu.dimension_semantics<parallel>], iteration_bounds = array<i64: 2>, scalar_prefetch = 0 : i64, scratch_operands = 1 : i64, tpu.core_type = #tpu.core_type<tc>, window_params = [{transform_indices = @transform_0, window_bounds = array<i64: 256, 128>}, {pipeline_mode = #tpu.pipeline_mode<synchronous>, transform_indices = @transform_1, window_bounds = array<i64: 128, 128>}, {pipeline_mode = #tpu.pipeline_mode<synchronous>, transform_indices = @transform_2, window_bounds = array<i64: 1152, 128>}, {pipeline_mode = #tpu.pipeline_mode<synchronous>, transform_indices = @transform_3, window_bounds = array<i64: 128, 128>}, {pipeline_mode = #tpu.pipeline_mode<synchronous>, transform_indices = @transform_4, window_bounds = array<i64: 1, 128>}, {pipeline_mode = #tpu.pipeline_mode<synchronous>, transform_indices = @transform_5, window_bounds = array<i64: 1, 128>}, {pipeline_mode = #tpu.pipeline_mode<synchronous>, transform_indices = @transform_6, window_bounds = array<i64: 1, 128>}, {pipeline_mode = #tpu.pipeline_mode<synchronous>, transform_indices = @transform_7, window_bounds = array<i64: 1, 128>}, {pipeline_mode = #tpu.pipeline_mode<synchronous>, transform_indices = @transform_8, window_bounds = array<i64: 1, 128>}, {pipeline_mode = #tpu.pipeline_mode<synchronous>, transform_indices = @transform_9, window_bounds = array<i64: 1, 128>}, {pipeline_mode = #tpu.pipeline_mode<synchronous>, transform_indices = @transform_10, window_bounds = array<i64: 1, 128>}, {transform_indices = @transform_11, window_bounds = array<i64: 256, 128>}]} {
    %c0 = arith.constant 0 : index
    %c0_0 = arith.constant 0 : index
    %0 = vector.load %arg1[%c0, %c0_0] : memref<256x128xf32, #tpu.memory_space<vmem>>, vector<256x128xf32>
    %1 = arith.truncf %0 : vector<256x128xf32> to vector<256x128xbf16>
    %c0_1 = arith.constant 0 : index
    %c0_2 = arith.constant 0 : index
    %2 = vector.load %arg2[%c0_1, %c0_2] : memref<128x128xbf16, #tpu.memory_space<vmem>>, vector<128x128xbf16>
    %cst = arith.constant dense<0.000000e+00> : vector<256x128xf32>
    %3 = tpu.matmul %1, %2, %cst {dimension_numbers = #tpu.dot_dimension_numbers<[1], [0], [0], [1], [0, 0, 1, 1], [], []>} : vector<256x128xbf16>, vector<128x128xbf16>, vector<256x128xf32> -> vector<256x128xf32>
    %c0_3 = arith.constant 0 : index
    %c0_4 = arith.constant 0 : index
    %4 = vector.load %arg5[%c0_3, %c0_4] : memref<1x128xf32, #tpu.memory_space<vmem>>, vector<1x128xf32>
    %5 = vector.broadcast %4 : vector<1x128xf32> to vector<256x128xf32>
    %6 = arith.addf %3, %5 : vector<256x128xf32>
    %cst_5 = arith.constant 0.000000e+00 : f32
    %7 = vector.broadcast %cst_5 : f32 to vector<256x128xf32>
    %8 = arith.cmpf oge, %6, %7 : vector<256x128xf32>
    %c0_6 = arith.constant 0 : index
    %c0_7 = arith.constant 0 : index
    %9 = vector.load %arg6[%c0_6, %c0_7] : memref<1x128xf32, #tpu.memory_space<vmem>>, vector<1x128xf32>
    %10 = vector.broadcast %9 : vector<1x128xf32> to vector<256x128xf32>
    %11 = arith.mulf %10, %6 : vector<256x128xf32>
    %12 = arith.select %8, %6, %11 : vector<256x128xi1>, vector<256x128xf32>
    %c0_8 = arith.constant 0 : index
    %c0_9 = arith.constant 0 : index
    %13 = vector.load %arg7[%c0_8, %c0_9] : memref<1x128xf32, #tpu.memory_space<vmem>>, vector<1x128xf32>
    %14 = vector.broadcast %13 : vector<1x128xf32> to vector<256x128xf32>
    %15 = arith.mulf %12, %14 : vector<256x128xf32>
    %c0_10 = arith.constant 0 : index
    %c0_11 = arith.constant 0 : index
    %16 = vector.load %arg8[%c0_10, %c0_11] : memref<1x128xf32, #tpu.memory_space<vmem>>, vector<1x128xf32>
    %17 = vector.broadcast %16 : vector<1x128xf32> to vector<256x128xf32>
    %18 = arith.addf %15, %17 : vector<256x128xf32>
    %cst_12 = arith.constant 0.000000e+00 : f32
    %19 = vector.broadcast %cst_12 : f32 to vector<1x1x18x128xf32>
    %cst_13 = arith.constant 0.000000e+00 : f32
    %20 = vector.broadcast %cst_13 : f32 to vector<1x18x1x128xf32>
    %c0_14 = arith.constant 0 : index
    %c0_15 = arith.constant 0 : index
    %c0_16 = arith.constant 0 : index
    %c0_17 = arith.constant 0 : index
    %21 = vector.load %arg13[%c0_14, %c0_15, %c0_16, %c0_17] : memref<1x18x18x128xf32, #tpu.memory_space<vmem>>, vector<1x1x18x128xf32>
    tpu.vector_store %arg13[%c0_14, %c0_15, %c0_16, %c0_17], %19 {strides = array<i32>} : memref<1x18x18x128xf32, #tpu.memory_space<vmem>>, vector<1x1x18x128xf32>,
    %c0_18 = arith.constant 0 : index
    %c17 = arith.constant 17 : index
    %c0_19 = arith.constant 0 : index
    %c0_20 = arith.constant 0 : index
    %22 = vector.load %arg13[%c0_18, %c17, %c0_19, %c0_20] : memref<1x18x18x128xf32, #tpu.memory_space<vmem>>, vector<1x1x18x128xf32>
    tpu.vector_store %arg13[%c0_18, %c17, %c0_19, %c0_20], %19 {strides = array<i32>} : memref<1x18x18x128xf32, #tpu.memory_space<vmem>>, vector<1x1x18x128xf32>,
    %c0_21 = arith.constant 0 : index
    %c0_22 = arith.constant 0 : index
    %c0_23 = arith.constant 0 : index
    %c0_24 = arith.constant 0 : index
    %23 = vector.load %arg13[%c0_21, %c0_22, %c0_23, %c0_24] : memref<1x18x18x128xf32, #tpu.memory_space<vmem>>, vector<1x18x1x128xf32>
    tpu.vector_store %arg13[%c0_21, %c0_22, %c0_23, %c0_24], %20 {strides = array<i32>} : memref<1x18x18x128xf32, #tpu.memory_space<vmem>>, vector<1x18x1x128xf32>,
    %c0_25 = arith.constant 0 : index
    %c0_26 = arith.constant 0 : index
    %c17_27 = arith.constant 17 : index
    %c0_28 = arith.constant 0 : index
    %24 = vector.load %arg13[%c0_25, %c0_26, %c17_27, %c0_28] : memref<1x18x18x128xf32, #tpu.memory_space<vmem>>, vector<1x18x1x128xf32>
    tpu.vector_store %arg13[%c0_25, %c0_26, %c17_27, %c0_28], %20 {strides = array<i32>} : memref<1x18x18x128xf32, #tpu.memory_space<vmem>>, vector<1x18x1x128xf32>,
    %25 = vector.shape_cast %18 : vector<256x128xf32> to vector<1x16x16x128xf32>
    %c0_29 = arith.constant 0 : index
    %c1 = arith.constant 1 : index
    %c1_30 = arith.constant 1 : index
    %c0_31 = arith.constant 0 : index
    %26 = vector.load %arg13[%c0_29, %c1, %c1_30, %c0_31] : memref<1x18x18x128xf32, #tpu.memory_space<vmem>>, vector<1x16x16x128xf32>
    tpu.vector_store %arg13[%c0_29, %c1, %c1_30, %c0_31], %25 {strides = array<i32>} : memref<1x18x18x128xf32, #tpu.memory_space<vmem>>, vector<1x16x16x128xf32>,
    %c0_32 = arith.constant 0 : index
    %c0_33 = arith.constant 0 : index
    %c0_34 = arith.constant 0 : index
    %c0_35 = arith.constant 0 : index
    %27 = vector.load %arg13[%c0_32, %c0_33, %c0_34, %c0_35] : memref<1x18x18x128xf32, #tpu.memory_space<vmem>>, vector<1x16x16x128xf32>
    %28 = vector.shape_cast %27 : vector<1x16x16x128xf32> to vector<256x128xf32>
    %29 = arith.truncf %28 : vector<256x128xf32> to vector<256x128xbf16>
    %c0_36 = arith.constant 0 : index
    %c0_37 = arith.constant 0 : index
    %c1_38 = arith.constant 1 : index
    %c0_39 = arith.constant 0 : index
    %30 = vector.load %arg13[%c0_36, %c0_37, %c1_38, %c0_39] : memref<1x18x18x128xf32, #tpu.memory_space<vmem>>, vector<1x16x16x128xf32>
    %31 = vector.shape_cast %30 : vector<1x16x16x128xf32> to vector<256x128xf32>
    %32 = arith.truncf %31 : vector<256x128xf32> to vector<256x128xbf16>
    %c0_40 = arith.constant 0 : index
    %c0_41 = arith.constant 0 : index
    %c2 = arith.constant 2 : index
    %c0_42 = arith.constant 0 : index
    %33 = vector.load %arg13[%c0_40, %c0_41, %c2, %c0_42] : memref<1x18x18x128xf32, #tpu.memory_space<vmem>>, vector<1x16x16x128xf32>
    %34 = vector.shape_cast %33 : vector<1x16x16x128xf32> to vector<256x128xf32>
    %35 = arith.truncf %34 : vector<256x128xf32> to vector<256x128xbf16>
    %c0_43 = arith.constant 0 : index
    %c1_44 = arith.constant 1 : index
    %c0_45 = arith.constant 0 : index
    %c0_46 = arith.constant 0 : index
    %36 = vector.load %arg13[%c0_43, %c1_44, %c0_45, %c0_46] : memref<1x18x18x128xf32, #tpu.memory_space<vmem>>, vector<1x16x16x128xf32>
    %37 = vector.shape_cast %36 : vector<1x16x16x128xf32> to vector<256x128xf32>
    %38 = arith.truncf %37 : vector<256x128xf32> to vector<256x128xbf16>
    %c0_47 = arith.constant 0 : index
    %c1_48 = arith.constant 1 : index
    %c1_49 = arith.constant 1 : index
    %c0_50 = arith.constant 0 : index
    %39 = vector.load %arg13[%c0_47, %c1_48, %c1_49, %c0_50] : memref<1x18x18x128xf32, #tpu.memory_space<vmem>>, vector<1x16x16x128xf32>
    %40 = vector.shape_cast %39 : vector<1x16x16x128xf32> to vector<256x128xf32>
    %41 = arith.truncf %40 : vector<256x128xf32> to vector<256x128xbf16>
    %c0_51 = arith.constant 0 : index
    %c1_52 = arith.constant 1 : index
    %c2_53 = arith.constant 2 : index
    %c0_54 = arith.constant 0 : index
    %42 = vector.load %arg13[%c0_51, %c1_52, %c2_53, %c0_54] : memref<1x18x18x128xf32, #tpu.memory_space<vmem>>, vector<1x16x16x128xf32>
    %43 = vector.shape_cast %42 : vector<1x16x16x128xf32> to vector<256x128xf32>
    %44 = arith.truncf %43 : vector<256x128xf32> to vector<256x128xbf16>
    %c0_55 = arith.constant 0 : index
    %c2_56 = arith.constant 2 : index
    %c0_57 = arith.constant 0 : index
    %c0_58 = arith.constant 0 : index
    %45 = vector.load %arg13[%c0_55, %c2_56, %c0_57, %c0_58] : memref<1x18x18x128xf32, #tpu.memory_space<vmem>>, vector<1x16x16x128xf32>
    %46 = vector.shape_cast %45 : vector<1x16x16x128xf32> to vector<256x128xf32>
    %47 = arith.truncf %46 : vector<256x128xf32> to vector<256x128xbf16>
    %c0_59 = arith.constant 0 : index
    %c2_60 = arith.constant 2 : index
    %c1_61 = arith.constant 1 : index
    %c0_62 = arith.constant 0 : index
    %48 = vector.load %arg13[%c0_59, %c2_60, %c1_61, %c0_62] : memref<1x18x18x128xf32, #tpu.memory_space<vmem>>, vector<1x16x16x128xf32>
    %49 = vector.shape_cast %48 : vector<1x16x16x128xf32> to vector<256x128xf32>
    %50 = arith.truncf %49 : vector<256x128xf32> to vector<256x128xbf16>
    %c0_63 = arith.constant 0 : index
    %c2_64 = arith.constant 2 : index
    %c2_65 = arith.constant 2 : index
    %c0_66 = arith.constant 0 : index
    %51 = vector.load %arg13[%c0_63, %c2_64, %c2_65, %c0_66] : memref<1x18x18x128xf32, #tpu.memory_space<vmem>>, vector<1x16x16x128xf32>
    %52 = vector.shape_cast %51 : vector<1x16x16x128xf32> to vector<256x128xf32>
    %53 = arith.truncf %52 : vector<256x128xf32> to vector<256x128xbf16>
    %54 = tpu.concatenate %29, %32, %35, %38, %41, %44, %47, %50, %53 in 1 : vector<256x128xbf16>, vector<256x128xbf16>, vector<256x128xbf16>, vector<256x128xbf16>, vector<256x128xbf16>, vector<256x128xbf16>, vector<256x128xbf16>, vector<256x128xbf16>, vector<256x128xbf16> -> vector<256x1152xbf16>
    %c0_67 = arith.constant 0 : index
    %c0_68 = arith.constant 0 : index
    %55 = vector.load %arg3[%c0_67, %c0_68] : memref<1152x128xbf16, #tpu.memory_space<vmem>>, vector<1152x128xbf16>
    %cst_69 = arith.constant dense<0.000000e+00> : vector<256x128xf32>
    %56 = tpu.matmul %54, %55, %cst_69 {dimension_numbers = #tpu.dot_dimension_numbers<[1], [0], [0], [1], [0, 0, 1, 1], [], []>} : vector<256x1152xbf16>, vector<1152x128xbf16>, vector<256x128xf32> -> vector<256x128xf32>
    %c0_70 = arith.constant 0 : index
    %c0_71 = arith.constant 0 : index
    %57 = vector.load %arg9[%c0_70, %c0_71] : memref<1x128xf32, #tpu.memory_space<vmem>>, vector<1x128xf32>
    %58 = vector.broadcast %57 : vector<1x128xf32> to vector<256x128xf32>
    %59 = arith.addf %56, %58 : vector<256x128xf32>
    %cst_72 = arith.constant 0.000000e+00 : f32
    %60 = vector.broadcast %cst_72 : f32 to vector<256x128xf32>
    %61 = arith.cmpf oge, %59, %60 : vector<256x128xf32>
    %c0_73 = arith.constant 0 : index
    %c0_74 = arith.constant 0 : index
    %62 = vector.load %arg10[%c0_73, %c0_74] : memref<1x128xf32, #tpu.memory_space<vmem>>, vector<1x128xf32>
    %63 = vector.broadcast %62 : vector<1x128xf32> to vector<256x128xf32>
    %64 = arith.mulf %63, %59 : vector<256x128xf32>
    %65 = arith.select %61, %59, %64 : vector<256x128xi1>, vector<256x128xf32>
    %66 = arith.truncf %65 : vector<256x128xf32> to vector<256x128xbf16>
    %c0_75 = arith.constant 0 : index
    %c0_76 = arith.constant 0 : index
    %67 = vector.load %arg4[%c0_75, %c0_76] : memref<128x128xbf16, #tpu.memory_space<vmem>>, vector<128x128xbf16>
    %cst_77 = arith.constant dense<0.000000e+00> : vector<256x128xf32>
    %68 = tpu.matmul %66, %67, %cst_77 {dimension_numbers = #tpu.dot_dimension_numbers<[1], [0], [0], [1], [0, 0, 1, 1], [], []>} : vector<256x128xbf16>, vector<128x128xbf16>, vector<256x128xf32> -> vector<256x128xf32>
    %c0_78 = arith.constant 0 : index
    %c0_79 = arith.constant 0 : index
    %69 = vector.load %arg11[%c0_78, %c0_79] : memref<1x128xf32, #tpu.memory_space<vmem>>, vector<1x128xf32>
    %70 = vector.broadcast %69 : vector<1x128xf32> to vector<256x128xf32>
    %71 = arith.addf %68, %70 : vector<256x128xf32>
    %72 = arith.addf %71, %0 : vector<256x128xf32>
    %c0_80 = arith.constant 0 : index
    %c0_81 = arith.constant 0 : index
    %73 = vector.load %arg12[%c0_80, %c0_81] : memref<256x128xf32, #tpu.memory_space<vmem>>, vector<256x128xf32>
    tpu.vector_store %arg12[%c0_80, %c0_81], %72 {strides = array<i32>} : memref<256x128xf32, #tpu.memory_space<vmem>>, vector<256x128xf32>,
    return
  }
  func.func @transform_0(%arg0: i32) -> (i32, i32) {
    %c0_i32 = arith.constant 0 : i32
    %c0_i32_0 = arith.constant 0 : i32
    return %arg0, %c0_i32 : i32, i32
  }
  func.func @transform_1(%arg0: i32) -> (i32, i32) {
    %c0_i32 = arith.constant 0 : i32
    %c0_i32_0 = arith.constant 0 : i32
    %c0_i32_1 = arith.constant 0 : i32
    return %c0_i32, %c0_i32_0 : i32, i32
  }
  func.func @transform_2(%arg0: i32) -> (i32, i32) {
    %c0_i32 = arith.constant 0 : i32
    %c0_i32_0 = arith.constant 0 : i32
    %c0_i32_1 = arith.constant 0 : i32
    return %c0_i32, %c0_i32_0 : i32, i32
  }
  func.func @transform_3(%arg0: i32) -> (i32, i32) {
    %c0_i32 = arith.constant 0 : i32
    %c0_i32_0 = arith.constant 0 : i32
    %c0_i32_1 = arith.constant 0 : i32
    return %c0_i32, %c0_i32_0 : i32, i32
  }
  func.func @transform_4(%arg0: i32) -> (i32, i32) {
    %c0_i32 = arith.constant 0 : i32
    %c0_i32_0 = arith.constant 0 : i32
    %c0_i32_1 = arith.constant 0 : i32
    return %c0_i32, %c0_i32_0 : i32, i32
  }
  func.func @transform_5(%arg0: i32) -> (i32, i32) {
    %c0_i32 = arith.constant 0 : i32
    %c0_i32_0 = arith.constant 0 : i32
    %c0_i32_1 = arith.constant 0 : i32
    return %c0_i32, %c0_i32_0 : i32, i32
  }
  func.func @transform_6(%arg0: i32) -> (i32, i32) {
    %c0_i32 = arith.constant 0 : i32
    %c0_i32_0 = arith.constant 0 : i32
    %c0_i32_1 = arith.constant 0 : i32
    return %c0_i32, %c0_i32_0 : i32, i32
  }
  func.func @transform_7(%arg0: i32) -> (i32, i32) {
    %c0_i32 = arith.constant 0 : i32
    %c0_i32_0 = arith.constant 0 : i32
    %c0_i32_1 = arith.constant 0 : i32
    return %c0_i32, %c0_i32_0 : i32, i32
  }
  func.func @transform_8(%arg0: i32) -> (i32, i32) {
    %c0_i32 = arith.constant 0 : i32
    %c0_i32_0 = arith.constant 0 : i32
    %c0_i32_1 = arith.constant 0 : i32
    return %c0_i32, %c0_i32_0 : i32, i32
  }
  func.func @transform_9(%arg0: i32) -> (i32, i32) {
    %c0_i32 = arith.constant 0 : i32
    %c0_i32_0 = arith.constant 0 : i32
    %c0_i32_1 = arith.constant 0 : i32
    return %c0_i32, %c0_i32_0 : i32, i32
  }
  func.func @transform_10(%arg0: i32) -> (i32, i32) {
    %c0_i32 = arith.constant 0 : i32
    %c0_i32_0 = arith.constant 0 : i32
    %c0_i32_1 = arith.constant 0 : i32
    return %c0_i32, %c0_i32_0 : i32, i32
  }
  func.func @transform_11(%arg0: i32) -> (i32, i32) {
    %c0_i32 = arith.constant 0 : i32
    %c0_i32_0 = arith.constant 0 : i32
    return %arg0, %c0_i32 : i32, i32
  }
}

</mosaic_0001>

<bundles_post_ra>
// kernel: tpu_custom_call.1
= control target key start
LH: loop header
LB: loop body
LE: loop exit
PB: predicated region body
PF: predicated region fallthrough
CT: control target
= control target key end

     0   :  { %s5846_s0 = inlined_call_operand.hbm [shape: f32[512,128], index: 0, kind: input, shape index: {}]   ;;  %s5847_s1 = inlined_call_operand.hbm [shape: bf16[128,128], index: 1, kind: input, shape index: {}]   ;;  %s5848_s2 = inlined_call_operand.hbm [shape: bf16[1152,128], index: 2, kind: input, shape index: {}]   ;;  %s5849_s3 = inlined_call_operand.hbm [shape: bf16[128,128], index: 3, kind: input, shape index: {}]   ;;  %s5850_s4 = inlined_call_operand.vmem [shape: f32[1,128], index: 4, kind: input, shape index: {}]   ;;  %s5851_s5 = inlined_call_operand.vmem [shape: f32[1,128], index: 5, kind: input, shape index: {}]   ;;  %s5852_s6 = inlined_call_operand.vmem [shape: f32[1,128], index: 6, kind: input, shape index: {}]   ;;  %s5853_s7 = inlined_call_operand.vmem [shape: f32[1,128], index: 7, kind: input, shape index: {}]   ;;  %s5854_s8 = inlined_call_operand.vmem [shape: f32[1,128], index: 8, kind: input, shape index: {}]   ;;  %s5855_s9 = inlined_call_operand.vmem [shape: f32[1,128], index: 9, kind: input, shape index: {}]   ;;  %s5856_s10 = inlined_call_operand.vmem [shape: f32[1,128], index: 10, kind: input, shape index: {}]   ;;  %s5857_s11 = inlined_call_operand.hbm [shape: f32[512,128], index: 11, kind: output, shape index: {}]  }
   0x1   :  { %5863 = sst [smem:[#allocation46_spill]] %s5847_s1 }
   0x2   :  { %5864 = sst [smem:[#allocation47_spill]] %s5848_s2 }
   0x3   :  { %5865 = sst [smem:[#allocation48_spill]] %s5849_s3 }
   0x4   :  { %16 = vsyncpa [#allocation4], 0 }
   0x5   :  { %18 = vsyncpa [#allocation4 + $0x1], 0 }
   0x6   :  { %19 = vsyncpa [#allocation7], 0 }
   0x7   :  { %20 = vsyncpa [#allocation10], 0 }
   0x8   :  { %21 = vsyncpa [#allocation5], 0 }
   0x9   :  { %23 = vsyncpa [#allocation5 + $0x1], 0  ;;  %s4595_s17 = smov 0   ;;  %s4597_s18 = smov 0  }
   0xa   :  { %s4599_s19 = smov 0   ;;  %s4601_s20 = smov 0  }
   0xb LB: > { %5866 = sst [smem:[#allocation16_spill]] %s4517_s19  ;;  %s4616_s21 = sadd.s32 4294967295, %s4521_s20   ;;  %s4521_s20 = sphi %s4601_s20, %s5947_s20   ;;  %s4517_s19 = sphi %s4599_s19, %s5944_s19   ;;  %s4513_s18 = sphi %s4597_s18, %s5946_s18   ;;  %s4509_s17 = sphi %s4595_s17, %s5945_s17  }
   0xc   : > { %s3341_s22 = sadd.s32 4294967294, %s4521_s20   ;;  %p49_p0 = scmp.ne.s32.totalorder %s4513_s18, %s4509_s17 }
   0xd   : > { %p5858_p1 = scmp.eq.s32.totalorder %s4616_s21, 0  ;;  %p289_p3 = scmp.eq.s32.totalorder %s3341_s22, 1 }
   0xe   : > { %p3342_p5 = scmp.ge.s32.totalorder %s4521_s20, 1  ;;  %p296_p7 = scmp.lt.s32.totalorder %s4521_s20, 3 }
   0xf   : > { %p4625_p4 = por %p5858_p1, %p49_p0  ;;  %p4630_p6 = por %p289_p3, %p49_p0 }
  0x10   : > { %p4635_p8 = pnand %p3342_p5, %p296_p7  ;;  %s4523_s26 = smov [#allocation6]  }
  0x11   : > { %s5867_s23 = scalar_select %p4625_p4, 1, 0 }
  0x12   : > { %s5868_s24 = scalar_select %p4630_p6, 1, 0 }
  0x13   : > { %s5869_s25 = scalar_select %p4635_p8, 1, 0 }
  0x14   : > { %s308_s27 = sshll.u32 %s4523_s26, 4  ;;  %p4154_p9 = pneg %p4635_p8  ;;  %s309_s27 = int_to_ptr.vmem [resolvable:$true] %s308_s27 }
  0x15   : > { %s4524_s29 = smov [#allocation8]   ;;  %s4525_s12 = smov [#allocation9]  }
  0x16   : > { %p4644_p11 = pnand %p4154_p9, %p5858_p1  ;;  %s321_s30 = sshll.u32 %s4524_s29, 4  ;;  %s322_s30 = int_to_ptr.vmem [resolvable:$true] %s321_s30 }
  0x17   : > { %s334_s13 = sshll.u32 %s4525_s12, 4  ;;  %s4354_s14 = scalar_lea.vmem %s309_s27, 1024  ;;  %s335_s13 = int_to_ptr.vmem [resolvable:$true] %s334_s13 }
  0x18   : > { %p4345_p12 = pneg %p4644_p11  ;;  %p4355_p13 = scmp.ne.s32.totalorder %s309_s27, %s4354_s14 }
  0x19   : > { %p4362_p5 = scmp.lt.s32.totalorder %s309_s27, %s309_s27  ;;  %p4363_p7 = scmp.lt.s32.totalorder %s4354_s14, %s4354_s14 }
  0x1a   : > { %p4357_p0 = pnand %p4355_p13, %p4345_p12 }
  0x1b   : > { %p4364_p9 = por %p4363_p7, %p4362_p5 }
  0x1c   : > { %p4358_p3 = pneg %p4357_p0 }
  0x1e   : > { %p4365_p10 = pnand %p4364_p9, %p4358_p3 }
  0x20   : > { %4368 = shalt.err (!%p4365_p10)
}
  0x21   : > { %s4526_s15 = smov 64   ;;  %s4527_s16 = smov 4  }
  0x22   : > { %s5871_s1 = sld [smem:[#allocation46_spill]]  ;;  %s4380_s29 = scalar_lea.vmem %s322_s30, 9216 }
  0x23   : > { %p4381_p1 = scmp.ne.s32.totalorder %s322_s30, %s4380_s29  ;;  %p4388_p2 = scmp.lt.s32.totalorder %s322_s30, %s322_s30 }
  0x24   : > { %p4389_p6 = scmp.lt.s32.totalorder %s4380_s29, %s4380_s29 }
  0x25   : > { %p4383_p13 = pnand %p4381_p1, %p4345_p12 }
  0x26   : > { %p4390_p5 = por %p4389_p6, %p4388_p2 }
  0x27   : > { %p4384_p0 = pneg %p4383_p13 }
  0x28   : > { %4157 = dma.hbm_to_vmem [thread:$0]  (!%p4644_p11), %s5871_s1, 1024, %s309_s27, [#allocation7], %s4526_s15, %s4526_s15, %s4527_s16  }
  0x29   : > { %p4391_p3 = pnand %p4390_p5, %p4384_p0 }
  0x2b   : > { %4394 = shalt.err (!%p4391_p3)
}
  0x2c   : > { %s5872_s2 = sld [smem:[#allocation47_spill]]  ;;  %s4406_s27 = scalar_lea.vmem %s335_s13, 1024 }
  0x2d   : > { %p4407_p10 = scmp.ne.s32.totalorder %s335_s13, %s4406_s27  ;;  %p4414_p9 = scmp.lt.s32.totalorder %s335_s13, %s335_s13 }
  0x2e   : > { %p4415_p13 = scmp.lt.s32.totalorder %s4406_s27, %s4406_s27 }
  0x2f   : > { %p4409_p7 = pnand %p4407_p10, %p4345_p12 }
  0x30   : > { %p4416_p4 = por %p4415_p13, %p4414_p9 }
  0x31   : > { %p4410_p1 = pneg %p4409_p7 }
  0x32   : > { %4160 = dma.hbm_to_vmem [thread:$0]  (!%p4644_p11), %s5872_s2, 9216, %s322_s30, [#allocation7], %s4526_s15, %s4526_s15, %s4527_s16  }
  0x33   : > { %p4417_p2 = pnand %p4416_p4, %p4410_p1 }
  0x35   : > { %4420 = shalt.err (!%p4417_p2)
}
  0x36   : > { %s5873_s3 = sld [smem:[#allocation48_spill]]  ;;  %s4675_s30 = sadd.s32 1, %s4521_s20  }
  0x37   : > { %s33_s29 = ssub.s32 %s4521_s20, %s4675_s30  ;;  %s36_s28 = sadd.s32 1, %s4517_s19 }
  0x38   : > { %p34_p4 = scmp.eq.s32.totalorder %s33_s29, 0  ;;  %p43_p6 = scmp.ne.s32.totalorder %s4517_s19, %s4513_s18 }
  0x39   : > { %p44_p12 = scmp.eq.s32.totalorder %s4521_s20, 0  ;;  %p4175_p0 = scmp.lt.s32.totalorder %s4521_s20, 2 }
  0x3a   : > { %s4685_s12 = scalar_select %p34_p4, %s4517_s19, %s36_s28  }
  0x3b   : > { %p45_p5 = por %p44_p12, %p43_p6  ;;  %p5875_p3 = scmp.eq.s32.totalorder %s4616_s21, 1 }
  0x3c   : > { %4163 = dma.hbm_to_vmem [thread:$0]  (!%p4644_p11), %s5873_s3, 1024, %s335_s13, [#allocation10], %s4526_s15, %s4526_s15, %s4527_s16  }
  0x3d   : > { %5874 = sst [smem:[#allocation17_spill]] %s4685_s12  ;;  %p4689_p10 = por %p5875_p3, %p43_p6 }
  0x3e   : > { %s369_s27 = sand.u32 1, %s4517_s19   ;;  %s3456_s22 = sshll.u32 %s4521_s20, 12 }
  0x3f   : > { %s5876_s14 = scalar_select %p4689_p10, 1, 0 }
  0x40   : > { %s3347_s13 = sshll.u32 %s369_s27, 8  ;;  %s4698_s26 = scalar_lea.hbm %s5846_s0, %s3456_s22 }
  0x41   : > { %s373_s29 = scalar_lea.vmem [#allocation3], %s3347_s13  ;;  %p4700_p11 = pnand %p4175_p0, %p45_p5 }
  0x42   : > { %s380_s28 = sshll.u32 %s373_s29, 4  ;;  %s4706_s2 = scalar_lea.sflag [#allocation4], %s369_s27  ;;  %s4704_s28 = int_to_ptr.vmem [resolvable:$true] %s380_s28 }
  0x43   : > { %s4421_s3 = scalar_lea.hbm %s4698_s26, 4096  ;;  %p4423_p1 = pneg %p4700_p11 }
  0x44   : > { %p4422_p7 = scmp.ne.s32.totalorder %s4698_s26, %s4421_s3  ;;  %s4426_s13 = scalar_lea.hbm %s5846_s0, 8192 }
  0x45   : > { %p4427_p2 = scmp.lt.s32.totalorder %s4698_s26, %s5846_s0  ;;  %p4428_p4 = scmp.lt.s32.totalorder %s4426_s13, %s4421_s3 }
  0x46   : > { %p4424_p9 = pnand %p4423_p1, %p4422_p7 }
  0x47   : > { %p4429_p6 = por %p4428_p4, %p4427_p2 }
  0x48   : > { %p4425_p13 = pneg %p4424_p9 }
  0x4a   : > { %p4430_p12 = pnand %p4429_p6, %p4425_p13 }
  0x4c   : > { %4433 = shalt.err (!%p4430_p12)
}
  0x4d   : > { %s4434_s27 = scalar_lea.vmem %s4704_s28, 4096  ;;  %s4528_s12 = smov [#allocation3]  }
  0x4e   : > { %p4435_p0 = scmp.ne.s32.totalorder %s4704_s28, %s4434_s27  ;;  %s4439_s19 = sshll.u32 %s4528_s12, 4  ;;  %s4440_s19 = int_to_ptr.vmem [resolvable:$false] %s4439_s19 }
  0x4f   : > { %s4441_s22 = scalar_lea.vmem %s4440_s19, 8192  ;;  %p4442_p7 = scmp.lt.s32.totalorder %s4704_s28, %s4440_s19 }
  0x50   : > { %p4437_p5 = pnand %p4435_p0, %p4423_p1  ;;  %p4443_p9 = scmp.lt.s32.totalorder %s4441_s22, %s4434_s27 }
  0x52   : > { %p4438_p3 = pneg %p4437_p5  ;;  %p4444_p10 = por %p4443_p9, %p4442_p7 }
  0x54   : > { %p4445_p8 = pnand %p4444_p10, %p4438_p3 }
  0x56   : > { %4448 = shalt.err (!%p4445_p8)
}
  0x57   : > { %s4529_s3 = smov 128   ;;  %s4530_s15 = smov 8  }
  0x58   : > { %4167 = dma.hbm_to_vmem [thread:$0]  (!%p4700_p11), %s4698_s26, 4096, %s4704_s28, %s4706_s2, %s4529_s3, %s4529_s3, %s4530_s15  }
  0x59   : > { %p5878_p1 = scmp.ne.s32.totalorder %s5869_s25, 0 }
  0x5b   : > { %392 = sbr.rel (%p5878_p1) target bundleno = 1085 (0x43d), region = 64 }
  0x60   : > { %s4730_s12 = sand.u32 1, %s4513_s18   ;;  %p5879_p8 = scmp.ne.s32.totalorder %s5867_s23, 0 }
  0x61   : > { %s3351_s19 = sshll.u32 %s4730_s12, 8  ;;  %s395_s13 = scalar_lea.sflag [#allocation4], %s4730_s12 }
  0x62   : > { %s4736_s16 = scalar_lea.vmem [#allocation3], %s3351_s19 }
  0x63   : > { %4492 = dma.done.wait (%p5879_p8), %s395_s13, 4096  }
  0x64   : > { %4494 = vsyncadd (%p5879_p8), %s395_s13, 4294963200  ;;  %p5880_p10 = scmp.eq.s32.totalorder %s4616_s21, 0 }
  0x66   : > { %4496 = dma.done.wait (%p5880_p10), [#allocation7], 10240   ;;  %p5881_p11 = pmov %p5880_p10 }
  0x67   : > { %p5882_p13 = pmov %p5880_p10 }
  0x68   : > { %4498 = vsyncadd (%p5881_p11), [#allocation7], 4294957056 }
  0x69   : > { %4500 = dma.done.wait (%p5882_p13), [#allocation10], 1024   ;;  %p5883_p2 = pmov %p5880_p10 }
  0x6a   : > { %v4222_v0 = vld [vmem:[#allocation6 + $0x38] sm:$0xff]   ;;  %v4223_v1 = vld [vmem:[#allocation6 + $0x30] sm:$0xff]   ;;  %v4224_v2 = vld [vmem:[#allocation6 + $0x28] sm:$0xff]   ;;  %s5701_s23 = scalar_lea.vmem [#allocation11], %s3351_s19  ;;  %s3457_s19 = sshll.u32 %s4616_s21, 12 }
  0x6b   : > { %4502 = vsyncadd (%p5883_p2), [#allocation10], 4294966272  ;;  %3978 = vmatprep.subr.bf16.mxu0 %v4222_v0  ;;  %4122 = vmatprep.subr.bf16.mxu1 %v4222_v0  ;;  %v4225_v3 = vld [vmem:[#allocation6 + $0x20] sm:$0xff]   ;;  %v453_v5 = vld [vmem:[%s4736_s16 + $0x8] sm:$0xff]  ;;  %s3239_s25 = sshll.u32 %s5701_s23, 4  ;;  %s5798_s29 = scalar_lea.hbm %s5857_s11, %s3457_s19  ;;  %s5800_s25 = int_to_ptr.vmem [resolvable:$true] %s3239_s25 }
  0x6c   : > { %3979 = vmatpush3.bf16.msra.mxu0 %v4222_v0  ;;  %4130 = vmatpush3.bf16.msra.mxu1 %v4222_v0  ;;  %v452_v4 = vld [vmem:[%s4736_s16] sm:$0xff]  ;;  %v4226_v7 = vld [vmem:[#allocation6 + $0x18] sm:$0xff]   ;;  %v469_v9 = vld [vmem:[%s4736_s16 + $0x88] sm:$0xff]  ;;  %s3226_s21 = scalar_lea.sflag [#allocation5], %s4730_s12  ;;  %s4449_s27 = scalar_lea.vmem %s5800_s25, 4096 }
  0x6d   : > { %3980 = vmatprep.subr.bf16.mxu0 %v4223_v1  ;;  %4123 = vmatprep.subr.bf16.mxu1 %v4223_v1  ;;  %v484_v6 = vpack.c.bf16 %v453_v5, %v452_v4  ;;  %v468_v8 = vld [vmem:[%s4736_s16 + $0x80] sm:$0xff]  ;;  %v4227_v11 = vld [vmem:[#allocation6 + $0x10] sm:$0xff]   ;;  %v4228_v12 = vld [vmem:[#allocation6 + $0x8] sm:$0xff]   ;;  %p4450_p4 = scmp.ne.s32.totalorder %s5800_s25, %s4449_s27  ;;  %p5940_p6 = scmp.ne.s32.totalorder %s5876_s14, 0 }
  0x6e   : > { %v492_v10 = vpack.c.bf16 %v469_v9, %v468_v8  ;;  %v4229_v13 = vld [vmem:[#allocation6] sm:$0xff]   ;;  %v454_v14 = vld [vmem:[%s4736_s16 + $0x10] sm:$0xff]  ;;  %v455_v15 = vld [vmem:[%s4736_s16 + $0x18] sm:$0xff]  ;;  %v4531_v9 = vmov 0.0   ;;  %s4532_s22 = smov [#allocation11]  }
  0x6f   : > { %3994 = vmatprep.mubr.bf16.mxu0 %v484_v6  ;;  %v456_v16 = vld [vmem:[%s4736_s16 + $0x20] sm:$0xff]  ;;  %v457_v17 = vld [vmem:[%s4736_s16 + $0x28] sm:$0xff]  ;;  %v470_v18 = vld [vmem:[%s4736_s16 + $0x90] sm:$0xff]  ;;  %v485_v24 = vpack.c.bf16 %v455_v15, %v454_v14  ;;  %913 = vst [vmem:[#allocation2] sm:$0xff] %v4531_v9  ;;  %p4451_p12 = pnand %p4450_p4, %p5940_p6  ;;  %s4453_s3 = sshll.u32 %s4532_s22, 4  ;;  %s4454_s3 = int_to_ptr.vmem [resolvable:$false] %s4453_s3 }
  0x70   : > { %3981 = vmatpush3.bf16.msra.mxu0 %v4223_v1  ;;  %4131 = vmatpush3.bf16.msra.mxu1 %v4223_v1  ;;  %v471_v19 = vld [vmem:[%s4736_s16 + $0x98] sm:$0xff]  ;;  %v472_v20 = vld [vmem:[%s4736_s16 + $0xa0] sm:$0xff]  ;;  %v473_v21 = vld [vmem:[%s4736_s16 + $0xa8] sm:$0xff]  ;;  %v486_v26 = vpack.c.bf16 %v457_v17, %v456_v16  ;;  %914 = vst [vmem:[#allocation2 + $0x8] sm:$0xff] %v4531_v9  ;;  %s4455_s15 = scalar_lea.vmem %s4454_s3, 8192  ;;  %p4456_p5 = scmp.lt.s32.totalorder %s5800_s25, %s4454_s3 }
  0x71   : > { %3982 = vmatprep.subr.bf16.mxu0 %v4224_v2  ;;  %4124 = vmatprep.subr.bf16.mxu1 %v4224_v2  ;;  %v4238_v22 = vld [vmem:[#allocation8 + $0xf8] sm:$0xff]   ;;  %v493_v27 = vpack.c.bf16 %v471_v19, %v470_v18  ;;  %v4232_v28 = vld [vmem:[#allocation8 + $0x70] sm:$0xff]   ;;  %v494_v30 = vpack.c.bf16 %v473_v21, %v472_v20  ;;  %v460_v34 = vld [vmem:[%s4736_s16 + $0x40] sm:$0xff]  ;;  %915 = vst [vmem:[#allocation2 + $0x10] sm:$0x3] %v4531_v9  ;;  %p4452_p0 = pneg %p4451_p12  ;;  %p4457_p3 = scmp.lt.s32.totalorder %s4455_s15, %s4449_s27 }
  0x72   : > { %4010 = vmatprep.mubr.bf16.mxu1 %v492_v10  ;;  %v4230_v23 = vld [vmem:[#allocation8 + $0x78] sm:$0xff]   ;;  %v4242_v31 = vld [vmem:[#allocation8 + $0xf0] sm:$0xff]   ;;  %v461_v35 = vld [vmem:[%s4736_s16 + $0x48] sm:$0xff]  ;;  %917 = vst [vmem:[#allocation2 + $0x198] sm:$0xff] %v4531_v9 }
  0x73   : > { %v4231_v25 = vld [vmem:[#allocation8 + $0x38] sm:$0xff]   ;;  %v458_v32 = vld [vmem:[%s4736_s16 + $0x30] sm:$0xff]  ;;  %v476_v39 = vld [vmem:[%s4736_s16 + $0xc0] sm:$0xff]  ;;  %v488_v44 = vpack.c.bf16 %v461_v35, %v460_v34  ;;  %918 = vst [vmem:[#allocation2 + $0x1a0] sm:$0xff] %v4531_v9  ;;  %p4458_p7 = por %p4457_p3, %p4456_p5 }
  0x74   : > { %3983 = vmatpush3.bf16.msra.mxu0 %v4224_v2  ;;  %4132 = vmatpush3.bf16.msra.mxu1 %v4224_v2  ;;  %v4239_v29 = vld [vmem:[#allocation8 + $0xb8] sm:$0xff]   ;;  %v474_v36 = vld [vmem:[%s4736_s16 + $0xb0] sm:$0xff]  ;;  %v477_v40 = vld [vmem:[%s4736_s16 + $0xc8] sm:$0xff]  ;;  %919 = vst [vmem:[#allocation2 + $0x1a8] sm:$0x3] %v4531_v9 }
  0x75   : > { %3984 = vmatprep.subr.bf16.mxu0 %v4225_v3  ;;  %4125 = vmatprep.subr.bf16.mxu1 %v4225_v3  ;;  %v459_v33 = vld [vmem:[%s4736_s16 + $0x38] sm:$0xff]  ;;  %v4233_v38 = vld [vmem:[#allocation8 + $0x30] sm:$0xff]   ;;  %v4234_v41 = vld [vmem:[#allocation8 + $0x68] sm:$0xff]   ;;  %v496_v47 = vpack.c.bf16 %v477_v40, %v476_v39  ;;  %921 = vst [vmem:[#allocation2 + $0x18] sm:$0x1] %v4531_v9  ;;  %p4459_p9 = pnand %p4458_p7, %p4452_p0 }
  0x76   : > { %v475_v37 = vld [vmem:[%s4736_s16 + $0xb8] sm:$0xff]  ;;  %v487_v42 = vpack.c.bf16 %v459_v33, %v458_v32  ;;  %v4235_v43 = vld [vmem:[#allocation8 + $0x28] sm:$0xff]   ;;  %v4236_v46 = vld [vmem:[#allocation8 + $0x60] sm:$0xff]   ;;  %922 = vst [vmem:[#allocation2 + $0x30] sm:$0x1] %v4531_v9 }
  0x77   : > { %v495_v45 = vpack.c.bf16 %v475_v37, %v474_v36  ;;  %v462_v48 = vld [vmem:[%s4736_s16 + $0x50] sm:$0xff]  ;;  %v463_v49 = vld [vmem:[%s4736_s16 + $0x58] sm:$0xff]  ;;  %v464_v50 = vld [vmem:[%s4736_s16 + $0x60] sm:$0xff]  ;;  %923 = vst [vmem:[#allocation2 + $0x48] sm:$0x1] %v4531_v9 }
  0x78   : > { %3985 = vmatpush3.bf16.msra.mxu0 %v4225_v3  ;;  %4133 = vmatpush3.bf16.msra.mxu1 %v4225_v3  ;;  %v465_v51 = vld [vmem:[%s4736_s16 + $0x68] sm:$0xff]  ;;  %v478_v52 = vld [vmem:[%s4736_s16 + $0xd0] sm:$0xff]  ;;  %v479_v53 = vld [vmem:[%s4736_s16 + $0xd8] sm:$0xff]  ;;  %v489_v58 = vpack.c.bf16 %v463_v49, %v462_v48  ;;  %924 = vst [vmem:[#allocation2 + $0x60] sm:$0x1] %v4531_v9 }
  0x79   : > { %3986 = vmatprep.subr.bf16.mxu0 %v4226_v7  ;;  %4126 = vmatprep.subr.bf16.mxu1 %v4226_v7  ;;  %v4237_v54 = vld [vmem:[#allocation8 + $0x20] sm:$0xff]   ;;  %v481_v56 = vld [vmem:[%s4736_s16 + $0xe8] sm:$0xff]  ;;  %v4240_v57 = vld [vmem:[#allocation8 + $0x58] sm:$0xff]   ;;  %v490_v60 = vpack.c.bf16 %v465_v51, %v464_v50  ;;  %v497_v61 = vpack.c.bf16 %v479_v53, %v478_v52  ;;  %925 = vst [vmem:[#allocation2 + $0x78] sm:$0x1] %v4531_v9 }
  0x7a   : > { %v480_v55 = vld [vmem:[%s4736_s16 + $0xe0] sm:$0xff]  ;;  %v4241_v59 = vld [vmem:[#allocation8 + $0x18] sm:$0xff]   ;;  %v466_v63 = vld [vmem:[%s4736_s16 + $0x70] sm:$0xff]  ;;  %926 = vst [vmem:[#allocation2 + $0x90] sm:$0x1] %v4531_v9 }
  0x7b   : > { %v498_v62 = vpack.c.bf16 %v481_v56, %v480_v55  ;;  %v467_v0 = vld [vmem:[%s4736_s16 + $0x78] sm:$0xff]  ;;  %v482_v1 = vld [vmem:[%s4736_s16 + $0xf0] sm:$0xff]  ;;  %v4246_v8 = vld [vmem:[#allocation8 + $0xe8] sm:$0xff]   ;;  %927 = vst [vmem:[#allocation2 + $0xa8] sm:$0x1] %v4531_v9 }
  0x7c   : > { %3987 = vmatpush3.bf16.msra.mxu0 %v4226_v7  ;;  %4134 = vmatpush3.bf16.msra.mxu1 %v4226_v7  ;;  %v483_v2 = vld [vmem:[%s4736_s16 + $0xf8] sm:$0xff]  ;;  %v491_v3 = vpack.c.bf16 %v467_v0, %v466_v63  ;;  %v4243_v5 = vld [vmem:[#allocation8 + $0xb0] sm:$0xff]   ;;  %928 = vst [vmem:[#allocation2 + $0xc0] sm:$0x1] %v4531_v9  ;;  %929 = vst [vmem:[#allocation2 + $0xd8] sm:$0x1] %v4531_v9 }
  0x7d   : > { %3988 = vmatprep.subr.bf16.mxu0 %v4227_v11  ;;  %4127 = vmatprep.subr.bf16.mxu1 %v4227_v11  ;;  %v499_v4 = vpack.c.bf16 %v483_v2, %v482_v1  ;;  %v4244_v6 = vld [vmem:[#allocation8 + $0x50] sm:$0xff]   ;;  %930 = vst [vmem:[#allocation2 + $0xf0] sm:$0x1] %v4531_v9  ;;  %931 = vst [vmem:[#allocation2 + $0x108] sm:$0x1] %v4531_v9  ;;  %v4247_v10 = vld [vmem:[#allocation8 + $0xa8] sm:$0xff]  }
  0x7e   : > { %v4245_v7 = vld [vmem:[#allocation8 + $0x10] sm:$0xff]   ;;  %932 = vst [vmem:[#allocation2 + $0x120] sm:$0x1] %v4531_v9  ;;  %933 = vst [vmem:[#allocation2 + $0x138] sm:$0x1] %v4531_v9  ;;  %v4251_v14 = vld [vmem:[#allocation8 + $0xa0] sm:$0xff]  }
  0x7f   : > { %934 = vst [vmem:[#allocation2 + $0x150] sm:$0x1] %v4531_v9  ;;  %935 = vst [vmem:[#allocation2 + $0x168] sm:$0x1] %v4531_v9  ;;  %v4252_v15 = vld [vmem:[#allocation8 + $0x40] sm:$0xff]   ;;  %v1037_v17 = vld [vmem:[#allocation2 + $0x1] sm:$0xff] }
  0x80   : > { %3989 = vmatpush3.bf16.msra.mxu0 %v4227_v11  ;;  %4135 = vmatpush3.bf16.msra.mxu1 %v4227_v11  ;;  %936 = vst [vmem:[#allocation2 + $0x180] sm:$0x1] %v4531_v9  ;;  %939 = vst [vmem:[#allocation2 + $0x29] sm:$0x1] %v4531_v9  ;;  %v4248_v11 = vld [vmem:[#allocation8 + $0x48] sm:$0xff]   ;;  %v4253_v16 = vld [vmem:[#allocation8] sm:$0xff]  }
  0x81   : > { %3990 = vmatprep.subr.bf16.mxu0 %v4228_v12  ;;  %4128 = vmatprep.subr.bf16.mxu1 %v4228_v12  ;;  %940 = vst [vmem:[#allocation2 + $0x41] sm:$0x1] %v4531_v9  ;;  %941 = vst [vmem:[#allocation2 + $0x59] sm:$0x1] %v4531_v9  ;;  %v1038_v18 = vld [vmem:[#allocation2 + $0x9] sm:$0xff]  ;;  %v4264_v32 = vld [vmem:[#allocation8 + $0x170] sm:$0xff]  }
  0x82   : > { %942 = vst [vmem:[#allocation2 + $0x71] sm:$0x1] %v4531_v9  ;;  %943 = vst [vmem:[#allocation2 + $0x89] sm:$0x1] %v4531_v9  ;;  %v4254_v19 = vld [vmem:[#allocation8 + $0xd8] sm:$0xff]   ;;  %v1069_v20 = vpack.c.bf16 %v1038_v18, %v1037_v17  ;;  %v4265_v33 = vld [vmem:[#allocation8 + $0x130] sm:$0xff]  }
  0x83   : > { %944 = vst [vmem:[#allocation2 + $0xa1] sm:$0x1] %v4531_v9  ;;  %945 = vst [vmem:[#allocation2 + $0xb9] sm:$0x1] %v4531_v9  ;;  %v4266_v34 = vld [vmem:[#allocation8 + $0x168] sm:$0xff]   ;;  %v4268_v36 = vld [vmem:[#allocation8 + $0x160] sm:$0xff]  }
  0x84   : > { %3991 = vmatpush3.bf16.msra.mxu0 %v4228_v12  ;;  %4136 = vmatpush3.bf16.msra.mxu1 %v4228_v12  ;;  %946 = vst [vmem:[#allocation2 + $0xd1] sm:$0x1] %v4531_v9  ;;  %947 = vst [vmem:[#allocation2 + $0xe9] sm:$0x1] %v4531_v9  ;;  %v4249_v12 = vld [vmem:[#allocation8 + $0x8] sm:$0xff]   ;;  %v4269_v37 = vld [vmem:[#allocation8 + $0x120] sm:$0xff]  }
  0x85   : > { %3992 = vmatprep.subr.bf16.mxu0 %v4229_v13  ;;  %4129 = vmatprep.subr.bf16.mxu1 %v4229_v13  ;;  %948 = vst [vmem:[#allocation2 + $0x101] sm:$0x1] %v4531_v9  ;;  %949 = vst [vmem:[#allocation2 + $0x119] sm:$0x1] %v4531_v9  ;;  %v4267_v35 = vld [vmem:[#allocation8 + $0x128] sm:$0xff]   ;;  %v4272_v39 = vld [vmem:[#allocation8 + $0x158] sm:$0xff]  }
  0x86   : > { %950 = vst [vmem:[#allocation2 + $0x131] sm:$0x1] %v4531_v9  ;;  %951 = vst [vmem:[#allocation2 + $0x149] sm:$0x1] %v4531_v9  ;;  %v4273_v40 = vld [vmem:[#allocation8 + $0x118] sm:$0xff]  }
  0x87   : > { %952 = vst [vmem:[#allocation2 + $0x161] sm:$0x1] %v4531_v9  ;;  %953 = vst [vmem:[#allocation2 + $0x179] sm:$0x1] %v4531_v9  ;;  %v4833_v48 = vld [vmem:[%s5851_s5] ss:$0 sm:$0xff] }
  0x88   : > { %3993 = vmatpush3.bf16.msra.mxu0 %v4229_v13  ;;  %4137 = vmatpush3.bf16.msra.mxu1 %v4229_v13  ;;  %954 = vst [vmem:[#allocation2 + $0x191] sm:$0x1] %v4531_v9  ;;  %920 = vst [vmem:[#allocation2] sm:$0x1] %v4531_v9  ;;  %v4250_v13 = vld [vmem:[#allocation8 + $0xe0] sm:$0xff]  }
  0x89   : > { %3594 = vmatprep.subr.bf16.mxu0 %v4238_v22  ;;  %3482 = vmatprep.subr.bf16.mxu1 %v4230_v23  ;;  %938 = vst [vmem:[#allocation2 + $0x11] sm:$0x1] %v4531_v9  ;;  %937 = vst [vmem:[#allocation2 + $0x198] sm:$0x1] %v4531_v9  ;;  %v4255_v22 = vld [vmem:[#allocation8 + $0x98] sm:$0xff]  }
  0x8a   : > { %955 = vst [vmem:[#allocation2 + $0x1a9] sm:$0x1] %v4531_v9 }
  0x8b   : > { %3995 = vmatmul.mubr.bf16.vlgmr.msra.gmra.mxu0 %v485_v24  ;;  %4011 = vmatmul.mubr.bf16.vlgmr.msra.gmra.mxu1 %v493_v27  ;;  %v4256_v24 = vld [vmem:[#allocation8 + $0xd0] sm:$0xff]   ;;  %v4261_v27 = vld [vmem:[#allocation8 + $0x88] sm:$0xff]  }
  0x8c   : > { %3998 = vmatprep.mubr.bf16.mxu0 %v486_v26  ;;  %4014 = vmatprep.mubr.bf16.mxu1 %v494_v30  ;;  %v4259_v26 = vld [vmem:[#allocation8 + $0xc8] sm:$0xff]   ;;  %v4258_v30 = vld [vmem:[#allocation8 + $0x178] sm:$0xff]  }
  0x8d   : > { %3483 = vmatpush3.bf16.msra.mxu1 %v4231_v25  ;;  %3595 = vmatpush3.bf16.msra.mxu0 %v4239_v29  ;;  %v4257_v25 = vld [vmem:[#allocation8 + $0x90] sm:$0xff]   ;;  %v4263_v29 = vld [vmem:[#allocation8 + $0x80] sm:$0xff]  }
  0x8e   : > { %3484 = vmatprep.subr.bf16.mxu1 %v4232_v28  ;;  %3596 = vmatprep.subr.bf16.mxu0 %v4242_v31  ;;  %v4262_v28 = vld [vmem:[#allocation8 + $0xc0] sm:$0xff]   ;;  %v4260_v31 = vld [vmem:[#allocation8 + $0x138] sm:$0xff]  }
  0x8f   : > { %v989_v21 = vld [vmem:[#allocation2] sm:$0xff] }
  0x90   : > { %v1021_v23 = vpack.c.bf16 %v4531_v9, %v989_v21 }
  0x91   : > { %3485 = vmatpush3.bf16.msra.mxu1 %v4233_v38  ;;  %3597 = vmatpush3.bf16.msra.mxu0 %v4243_v5  ;;  %v4270_v38 = vld [vmem:[#allocation8 + $0x1f8] sm:$0xff]  }
  0x92   : > { %3486 = vmatprep.subr.bf16.mxu1 %v4234_v41  ;;  %3598 = vmatprep.subr.bf16.mxu0 %v4246_v8  ;;  %v4276_v41 = vld [vmem:[#allocation8 + $0x150] sm:$0xff]  }
  0x93   : > { %3999 = vmatmul.mubr.bf16.gmra.mxu0 %v487_v42  ;;  %4015 = vmatmul.mubr.bf16.gmra.mxu1 %v495_v45  ;;  %v4277_v42 = vld [vmem:[#allocation8 + $0x110] sm:$0xff]   ;;  %v4284_v45 = vld [vmem:[#allocation8 + $0x140] sm:$0xff]  }
  0x94   : > { %4002 = vmatprep.mubr.bf16.mxu0 %v488_v44  ;;  %4018 = vmatprep.mubr.bf16.mxu1 %v496_v47  ;;  %v4281_v44 = vld [vmem:[#allocation8 + $0x108] sm:$0xff]  }
  0x95   : > { %3487 = vmatpush3.bf16.msra.mxu1 %v4235_v43  ;;  %3599 = vmatpush3.bf16.msra.mxu0 %v4247_v10  ;;  %v4280_v43 = vld [vmem:[#allocation8 + $0x148] sm:$0xff]  }
  0x96   : > { %3488 = vmatprep.subr.bf16.mxu1 %v4236_v46  ;;  %3600 = vmatprep.subr.bf16.mxu0 %v4250_v13  ;;  %v4828_v46 = vld [vmem:[%s5850_s4] ss:$0 sm:$0xff] }
  0x99   : > { %3489 = vmatpush3.bf16.msra.mxu1 %v4237_v54  ;;  %3601 = vmatpush3.bf16.msra.mxu0 %v4251_v14  ;;  %v4841_v54 = vld [vmem:[%s5852_s6] ss:$0 sm:$0xff] }
  0x9a   : > { %3490 = vmatprep.subr.bf16.mxu1 %v4240_v57  ;;  %3602 = vmatprep.subr.bf16.mxu0 %v4254_v19  ;;  %v4285_v57 = vld [vmem:[#allocation8 + $0x100] sm:$0xff]  }
  0x9b   : > { %4003 = vmatmul.mubr.bf16.gmra.mxu0 %v489_v58  ;;  %4019 = vmatmul.mubr.bf16.gmra.mxu1 %v497_v61 }
  0x9c   : > { %4006 = vmatprep.mubr.bf16.mxu0 %v490_v60  ;;  %4022 = vmatprep.mubr.bf16.mxu1 %v498_v62  ;;  %v4849_v62 = vld [vmem:[%s5853_s7] ss:$0 sm:$0xff] }
  0x9d   : > { %3491 = vmatpush3.bf16.msra.mxu1 %v4241_v59  ;;  %3603 = vmatpush3.bf16.msra.mxu0 %v4255_v22 }
  0x9e   : > { %3492 = vmatprep.subr.bf16.mxu1 %v4244_v6  ;;  %3604 = vmatprep.subr.bf16.mxu0 %v4256_v24 }
  0xa1   : > { %3493 = vmatpush3.bf16.msra.mxu1 %v4245_v7  ;;  %3605 = vmatpush3.bf16.msra.mxu0 %v4257_v25 }
  0xa2   : > { %3494 = vmatprep.subr.bf16.mxu1 %v4248_v11  ;;  %3606 = vmatprep.subr.bf16.mxu0 %v4259_v26 }
  0xa3   : > { %4007 = vmatmul.mubr.bf16.gmra.mxu0 %v491_v3  ;;  %4023 = vmatmul.mubr.bf16.gmra.mxu1 %v499_v4 }
  0xa4   : > { %2037 = vmatprep.mubr.bf16.mxu1 %v1069_v20 }
  0xa5   : > { %3495 = vmatpush3.bf16.msra.mxu1 %v4249_v12  ;;  %3607 = vmatpush3.bf16.msra.mxu0 %v4261_v27 }
  0xa6   : > { %3496 = vmatprep.subr.bf16.mxu1 %v4252_v15  ;;  %3608 = vmatprep.subr.bf16.mxu0 %v4262_v28 }
  0xa9   : > { %3497 = vmatpush3.bf16.msra.mxu1 %v4253_v16  ;;  %3609 = vmatpush3.bf16.msra.mxu0 %v4263_v29 }
  0xaa   : > { %3706 = vmatprep.subr.bf16.mxu1 %v4258_v30  ;;  %3818 = vmatprep.subr.bf16.mxu0 %v4270_v38 }
  0xac   : > { %2038 = vmatmul.mubr.bf16.vlgmr.msra.gmra.mxu1 %v1021_v23 }
  0xad   : > { %3707 = vmatpush3.bf16.msra.mxu1 %v4260_v31 }
  0xae   : > { %3708 = vmatprep.subr.bf16.mxu1 %v4264_v32 }
  0xb1   : > { %3709 = vmatpush3.bf16.msra.mxu1 %v4265_v33  ;;  %v4884_v33 = vld [vmem:[#allocation8 + $0x238] sm:$0xff]  }
  0xb2   : > { %3710 = vmatprep.subr.bf16.mxu1 %v4266_v34 }
  0xb5   : > { %3711 = vmatpush3.bf16.msra.mxu1 %v4267_v35 }
  0xb6   : > { %3712 = vmatprep.subr.bf16.mxu1 %v4268_v36 }
  0xb9   : > { %3713 = vmatpush3.bf16.msra.mxu1 %v4269_v37 }
  0xba   : > { %3714 = vmatprep.subr.bf16.mxu1 %v4272_v39 }
  0xbd   : > { %3715 = vmatpush3.bf16.msra.mxu1 %v4273_v40 }
  0xbe   : > { %3716 = vmatprep.subr.bf16.mxu1 %v4276_v41 }
  0xc1   : > { %3717 = vmatpush3.bf16.msra.mxu1 %v4277_v42 }
  0xc2   : > { %3718 = vmatprep.subr.bf16.mxu1 %v4280_v43 }
  0xc5   : > { %3719 = vmatpush3.bf16.msra.mxu1 %v4281_v44 }
  0xc6   : > { %3720 = vmatprep.subr.bf16.mxu1 %v4284_v45 }
  0xc9   : > { %3721 = vmatpush3.bf16.msra.mxu1 %v4285_v57 }
  0xca   : > { %4026 = vmatprep.subr.bf16.mxu1 %v4884_v33 }
 0x14b   : > { %v3996_v47 = vpop.f32.mrf.mxu0  ;;  %v4012_v50 = vpop.f32.mrf.mxu1 }
 0x14c   : > { %v614_v49 = vadd.f32 %v3996_v47, %v4828_v46  ;;  %v678_v52 = vadd.f32 %v4012_v50, %v4828_v46 }
 0x14d   : > { %v605_v51 = vpop.f32.mrf.mxu0  ;;  %v669_v56 = vpop.f32.mrf.mxu1 }
 0x14e   : > { %vm734_vm0 = vcmp.ge.f32.partialorder %v614_v49, 0.0  ;;  %v773_v53 = vmul.f32 %v4833_v48, %v614_v49  ;;  %v606_v55 = vadd.f32 %v4828_v46, %v605_v51  ;;  %vm750_vm1 = vcmp.ge.f32.partialorder %v678_v52, 0.0 }
 0x14f   : > { %v3997_v58 = vpop.f32.mrf.mxu0  ;;  %v789_v59 = vmul.f32 %v4833_v48, %v678_v52  ;;  %v670_v60 = vadd.f32 %v4828_v46, %v669_v56  ;;  %v4013_v24 = vpop.f32.mrf.mxu1 }
 0x150   : > { %v805_v61 = vsel %vm734_vm0, %v614_v49, %v773_v53  ;;  %vm732_vm2 = vcmp.ge.f32.partialorder %v606_v55, 0.0  ;;  %v771_v63 = vmul.f32 %v4833_v48, %v606_v55  ;;  %v617_v0 = vadd.f32 %v3997_v58, %v4828_v46  ;;  %v1085_v58 = vld [vmem:[#allocation2 + $0x2] sm:$0xff] }
 0x151   : > { %v844_v1 = vmul.f32 %v4841_v54, %v805_v61  ;;  %v608_v2 = vpop.f32.mrf.mxu0  ;;  %v821_v3 = vsel %vm750_vm1, %v678_v52, %v789_v59  ;;  %vm748_vm3 = vcmp.ge.f32.partialorder %v670_v60, 0.0  ;;  %v787_v4 = vmul.f32 %v4833_v48, %v670_v60  ;;  %v672_v50 = vpop.f32.mrf.mxu1  ;;  %v1086_v59 = vld [vmem:[#allocation2 + $0xa] sm:$0xff] }
 0x152   : > { %v803_v5 = vsel %vm732_vm2, %v606_v55, %v771_v63  ;;  %vm735_vm4 = vcmp.ge.f32.partialorder %v617_v0, 0.0  ;;  %v774_v6 = vmul.f32 %v4833_v48, %v617_v0  ;;  %v609_v7 = vadd.f32 %v4828_v46, %v608_v2 }
 0x153   : > { %v4858_v8 = vadd.f32 %v4849_v62, %v844_v1  ;;  %v842_v9 = vmul.f32 %v4841_v54, %v803_v5  ;;  %v4000_v10 = vpop.f32.mrf.mxu0  ;;  %v860_v11 = vmul.f32 %v4841_v54, %v821_v3  ;;  %v819_v12 = vsel %vm748_vm3, %v670_v60, %v787_v4  ;;  %v4907_v60 = vpop.f32.mrf.mxu1 }
 0x154   : > { %v806_v13 = vsel %vm735_vm4, %v617_v0, %v774_v6  ;;  %vm733_vm5 = vcmp.ge.f32.partialorder %v609_v7, 0.0  ;;  %v772_v14 = vmul.f32 %v4833_v48, %v609_v7  ;;  %v630_v15 = vadd.f32 %v4000_v10, %v4828_v46 }
 0x155   : > { %959 = vst [vmem:[#allocation2 + $0x31] sm:$0xff] %v4858_v8  ;;  %v881_v16 = vadd.f32 %v4849_v62, %v842_v9  ;;  %v845_v17 = vmul.f32 %v4841_v54, %v806_v13  ;;  %v621_v18 = vpop.f32.mrf.mxu0  ;;  %v4868_v19 = vadd.f32 %v4849_v62, %v860_v11  ;;  %v858_v20 = vmul.f32 %v4841_v54, %v819_v12 }
 0x156   : > { %v804_v21 = vsel %vm733_vm5, %v609_v7, %v772_v14  ;;  %vm738_vm6 = vcmp.ge.f32.partialorder %v630_v15, 0.0  ;;  %v777_v22 = vmul.f32 %v4833_v48, %v630_v15  ;;  %v622_v23 = vadd.f32 %v4828_v46, %v621_v18 }
 0x157   : > { %957 = vst [vmem:[#allocation2 + $0x19] sm:$0xff] %v881_v16  ;;  %v4874_v25 = vadd.f32 %v4849_v62, %v845_v17  ;;  %v843_v26 = vmul.f32 %v4841_v54, %v804_v21  ;;  %v4001_v27 = vpop.f32.mrf.mxu0  ;;  %975 = vst [vmem:[#allocation2 + $0xf1] sm:$0xff] %v4868_v19  ;;  %v4879_v28 = vadd.f32 %v4849_v62, %v858_v20  ;;  %v4926_v17 = vpop.f32.mrf.mxu1 }
 0x158   : > { %v681_v29 = vadd.f32 %v4013_v24, %v4828_v46  ;;  %v809_v30 = vsel %vm738_vm6, %v630_v15, %v777_v22  ;;  %vm736_vm7 = vcmp.ge.f32.partialorder %v622_v23, 0.0  ;;  %v775_v31 = vmul.f32 %v4833_v48, %v622_v23  ;;  %v4271_v24 = vld [vmem:[#allocation8 + $0x1b8] sm:$0xff]  }
 0x159   : > { %v633_v32 = vadd.f32 %v4001_v27, %v4828_v46  ;;  %960 = vst [vmem:[#allocation2 + $0x39] sm:$0xff] %v4874_v25  ;;  %v882_v34 = vadd.f32 %v4849_v62, %v843_v26  ;;  %v848_v35 = vmul.f32 %v4841_v54, %v809_v30  ;;  %v624_v36 = vpop.f32.mrf.mxu0  ;;  %973 = vst [vmem:[#allocation2 + $0xd9] sm:$0xff] %v4879_v28  ;;  %v4274_v30 = vld [vmem:[#allocation8 + $0x1f0] sm:$0xff]  }
 0x15a   : > { %vm751_vm8 = vcmp.ge.f32.partialorder %v681_v29, 0.0  ;;  %v807_v37 = vsel %vm736_vm7, %v622_v23, %v775_v31  ;;  %v625_v39 = vadd.f32 %v4828_v46, %v624_v36  ;;  %v790_v44 = vmul.f32 %v4833_v48, %v681_v29 }
 0x15b   : > { %vm739_vm9 = vcmp.ge.f32.partialorder %v633_v32, 0.0  ;;  %v778_v38 = vmul.f32 %v4833_v48, %v633_v32  ;;  %958 = vst [vmem:[#allocation2 + $0x21] sm:$0xff] %v882_v34  ;;  %v4894_v40 = vadd.f32 %v4849_v62, %v848_v35  ;;  %v846_v41 = vmul.f32 %v4841_v54, %v807_v37  ;;  %v4004_v42 = vpop.f32.mrf.mxu0 }
 0x15c   : > { %v1070_v43 = vpack.c.bf16 %v882_v34, %v881_v16  ;;  %vm737_vm10 = vcmp.ge.f32.partialorder %v625_v39, 0.0  ;;  %v776_v47 = vmul.f32 %v4833_v48, %v625_v39  ;;  %v646_v49 = vadd.f32 %v4004_v42, %v4828_v46  ;;  %v1135_v21 = vld [vmem:[#allocation2 + $0x30] sm:$0xff] }
 0x15d   : > { %v810_v45 = vsel %vm739_vm9, %v633_v32, %v778_v38  ;;  %963 = vst [vmem:[#allocation2 + $0x61] sm:$0xff] %v4894_v40  ;;  %v4902_v51 = vadd.f32 %v4849_v62, %v846_v41  ;;  %v637_v53 = vpop.f32.mrf.mxu0  ;;  %v822_v1 = vsel %vm751_vm8, %v681_v29, %v790_v44  ;;  %v1117_v7 = vpack.c.bf16 %v1086_v59, %v1085_v58  ;;  %v4935_v29 = vpop.f32.mrf.mxu1  ;;  %v4275_v44 = vld [vmem:[#allocation8 + $0x1b0] sm:$0xff]  }
 0x15e   : > { %v849_v52 = vmul.f32 %v4841_v54, %v810_v45  ;;  %2045 = vmatprep.mubr.bf16.mxu1 %v1070_v43  ;;  %v808_v55 = vsel %vm737_vm10, %v625_v39, %v776_v47  ;;  %vm742_vm11 = vcmp.ge.f32.partialorder %v646_v49, 0.0  ;;  %v781_v56 = vmul.f32 %v4833_v48, %v646_v49  ;;  %v1133_v13 = vld [vmem:[#allocation2 + $0x18] sm:$0xff] }
 0x15f   : > { %v638_v57 = vadd.f32 %v4828_v46, %v637_v53  ;;  %961 = vst [vmem:[#allocation2 + $0x49] sm:$0xff] %v4902_v51  ;;  %v847_v63 = vmul.f32 %v4841_v54, %v808_v55  ;;  %v4005_v0 = vpop.f32.mrf.mxu0  ;;  %v1071_v9 = vpack.c.bf16 %v4874_v25, %v4858_v8  ;;  %v861_v23 = vmul.f32 %v4841_v54, %v822_v1  ;;  %v688_v53 = vpop.f32.mrf.mxu1  ;;  %v4278_v55 = vld [vmem:[#allocation8 + $0x1e8] sm:$0xff]  }
 0x160   : > { %v4911_v61 = vadd.f32 %v4849_v62, %v849_v52  ;;  %v813_v2 = vsel %vm742_vm11, %v646_v49, %v781_v56  ;;  %v649_v4 = vadd.f32 %v4005_v0, %v4828_v46  ;;  %v1136_v10 = vld [vmem:[#allocation2 + $0x38] sm:$0xff]  ;;  %v4945_v38 = vadd.f32 %v4828_v46, %v672_v50 }
 0x161   : > { %vm740_vm12 = vcmp.ge.f32.partialorder %v638_v57, 0.0  ;;  %v779_v3 = vmul.f32 %v4833_v48, %v638_v57  ;;  %v4919_v5 = vadd.f32 %v4849_v62, %v847_v63  ;;  %v852_v6 = vmul.f32 %v4841_v54, %v813_v2  ;;  %v640_v11 = vpop.f32.mrf.mxu0 }
 0x162   : > { %964 = vst [vmem:[#allocation2 + $0x69] sm:$0xff] %v4911_v61  ;;  %v1134_v14 = vld [vmem:[#allocation2 + $0x20] sm:$0xff]  ;;  %vm743_vm13 = vcmp.ge.f32.partialorder %v649_v4, 0.0  ;;  %v782_v15 = vmul.f32 %v4833_v48, %v649_v4  ;;  %v641_v16 = vadd.f32 %v4828_v46, %v640_v11  ;;  %v1166_v26 = vpack.c.bf16 %v1136_v10, %v1135_v21 }
 0x163   : > { %v811_v12 = vsel %vm740_vm12, %v638_v57, %v779_v3  ;;  %962 = vst [vmem:[#allocation2 + $0x51] sm:$0xff] %v4919_v5  ;;  %v4930_v18 = vadd.f32 %v4849_v62, %v852_v6  ;;  %v1165_v8 = vpack.c.bf16 %v1134_v14, %v1133_v13  ;;  %v4008_v22 = vpop.f32.mrf.mxu0  ;;  %v1087_v45 = vld [vmem:[#allocation2 + $0x1a] sm:$0xff]  ;;  %v1088_v47 = vld [vmem:[#allocation2 + $0x22] sm:$0xff]  ;;  %v4956_v52 = vadd.f32 %v4849_v62, %v861_v23  ;;  %v4966_v3 = vpop.f32.mrf.mxu1 }
 0x164   : > { %v850_v20 = vmul.f32 %v4841_v54, %v811_v12  ;;  %v814_v25 = vsel %vm743_vm13, %v649_v4, %v782_v15  ;;  %vm741_vm14 = vcmp.ge.f32.partialorder %v641_v16, 0.0  ;;  %v780_v27 = vmul.f32 %v4833_v48, %v641_v16  ;;  %v4279_v13 = vld [vmem:[#allocation8 + $0x1a8] sm:$0xff]  }
 0x165   : > { %967 = vst [vmem:[#allocation2 + $0x91] sm:$0xff] %v4930_v18  ;;  %2198 = vmatprep.mubr.bf16.mxu0 %v1165_v8  ;;  %2046 = vmatmul.mubr.bf16.gmra.mxu1 %v1165_v8  ;;  %v853_v32 = vmul.f32 %v4841_v54, %v814_v25  ;;  %v662_v34 = vadd.f32 %v4008_v22, %v4828_v46  ;;  %v653_v35 = vpop.f32.mrf.mxu0  ;;  %976 = vst [vmem:[#allocation2 + $0xf9] sm:$0xff] %v4956_v52  ;;  %vm749_vm2 = vcmp.ge.f32.partialorder %v4945_v38, 0.0  ;;  %v701_v21 = vpop.f32.mrf.mxu1  ;;  %v1089_v25 = vld [vmem:[#allocation2 + $0x32] sm:$0xff] }
 0x166   : > { %v4939_v31 = vadd.f32 %v4849_v62, %v850_v20  ;;  %2199 = vmatmul.mubr.bf16.vlgmr.msra.gmra.mxu0 %v1117_v7  ;;  %2053 = vmatprep.mubr.bf16.mxu1 %v1071_v9  ;;  %v812_v36 = vsel %vm741_vm14, %v641_v16, %v780_v27  ;;  %v654_v37 = vadd.f32 %v4828_v46, %v653_v35  ;;  %v1137_v57 = vld [vmem:[#allocation2 + $0x48] sm:$0xff]  ;;  %v4282_v20 = vld [vmem:[#allocation8 + $0x1e0] sm:$0xff]  }
 0x167   : > { %v4949_v39 = vadd.f32 %v4849_v62, %v853_v32  ;;  %2206 = vmatprep.mubr.bf16.mxu0 %v1166_v26  ;;  %v851_v41 = vmul.f32 %v4841_v54, %v812_v36  ;;  %vm746_vm15 = vcmp.ge.f32.partialorder %v662_v34, 0.0  ;;  %v785_v42 = vmul.f32 %v4833_v48, %v662_v34  ;;  %v4009_v43 = vpop.f32.mrf.mxu0  ;;  %3819 = vmatpush3.bf16.msra.mxu0 %v4271_v24  ;;  %v4283_v32 = vld [vmem:[#allocation8 + $0x1a0] sm:$0xff]  }
 0x168   : > { %965 = vst [vmem:[#allocation2 + $0x79] sm:$0xff] %v4939_v31  ;;  %vm744_vm0 = vcmp.ge.f32.partialorder %v654_v37, 0.0  ;;  %v783_v49 = vmul.f32 %v4833_v48, %v654_v37  ;;  %v665_v50 = vadd.f32 %v4009_v43, %v4828_v46  ;;  %3820 = vmatprep.subr.bf16.mxu0 %v4274_v30  ;;  %v4969_v4 = vpack.c.bf16 %v1088_v47, %v1087_v45  ;;  %v4021_v30 = vpop.f32.mrf.mxu1 }
 0x169   : > { %968 = vst [vmem:[#allocation2 + $0x99] sm:$0xff] %v4949_v39  ;;  %v4960_v56 = vadd.f32 %v4849_v62, %v851_v41  ;;  %v817_v58 = vsel %vm746_vm15, %v662_v34, %v785_v42  ;;  %v656_v59 = vpop.f32.mrf.mxu0  ;;  %v1072_v9 = vpack.c.bf16 %v4919_v5, %v4902_v51  ;;  %v788_v51 = vmul.f32 %v4833_v48, %v4945_v38  ;;  %v1139_v34 = vld [vmem:[#allocation2 + $0x60] sm:$0xff]  ;;  %v1140_v35 = vld [vmem:[#allocation2 + $0x68] sm:$0xff] }
 0x16a   : > { %v1138_v63 = vld [vmem:[#allocation2 + $0x50] sm:$0xff]  ;;  %v856_v0 = vmul.f32 %v4841_v54, %v817_v58  ;;  %v815_v1 = vsel %vm744_vm0, %v654_v37, %v783_v49  ;;  %vm747_vm1 = vcmp.ge.f32.partialorder %v665_v50, 0.0  ;;  %v786_v2 = vmul.f32 %v4833_v48, %v665_v50  ;;  %v4286_v41 = vld [vmem:[#allocation8 + $0x1d8] sm:$0xff]  }
 0x16b   : > { %966 = vst [vmem:[#allocation2 + $0x81] sm:$0xff] %v4960_v56  ;;  %v854_v6 = vmul.f32 %v4841_v54, %v815_v1  ;;  %v657_v7 = vadd.f32 %v4828_v46, %v656_v59  ;;  %3821 = vmatpush3.bf16.msra.mxu0 %v4275_v44  ;;  %v1167_v10 = vpack.c.bf16 %v1138_v63, %v1137_v57  ;;  %v4287_v57 = vld [vmem:[#allocation8 + $0x198] sm:$0xff]  }
 0x16c   : > { %v4977_v11 = vadd.f32 %v4849_v62, %v856_v0  ;;  %v818_v12 = vsel %vm747_vm1, %v665_v50, %v786_v2  ;;  %3822 = vmatprep.subr.bf16.mxu0 %v4278_v55  ;;  %v694_v5 = vadd.f32 %v4907_v60, %v4828_v46  ;;  %v686_v8 = vadd.f32 %v4828_v46, %v4926_v17  ;;  %v704_v55 = vpop.f32.mrf.mxu1 }
 0x16d   : > { %2054 = vmatmul.mubr.bf16.gmra.mxu1 %v1166_v26  ;;  %v4980_v14 = vadd.f32 %v4849_v62, %v854_v6  ;;  %v857_v15 = vmul.f32 %v4841_v54, %v818_v12  ;;  %vm745_vm3 = vcmp.ge.f32.partialorder %v657_v7, 0.0  ;;  %v784_v16 = vmul.f32 %v4833_v48, %v657_v7  ;;  %v1090_v26 = vld [vmem:[#allocation2 + $0x3a] sm:$0xff] }
 0x16e   : > { %2207 = vmatmul.mubr.bf16.gmra.mxu0 %v4969_v4  ;;  %2061 = vmatprep.mubr.bf16.mxu1 %v1072_v9  ;;  %971 = vst [vmem:[#allocation2 + $0xc1] sm:$0xff] %v4977_v11  ;;  %v697_v24 = vadd.f32 %v4935_v29, %v4828_v46  ;;  %v820_v60 = vsel %vm749_vm2, %v4945_v38, %v788_v51  ;;  %vm754_vm4 = vcmp.ge.f32.partialorder %v694_v5, 0.0  ;;  %vm752_vm5 = vcmp.ge.f32.partialorder %v686_v8, 0.0  ;;  %v4024_v1 = vpop.f32.mrf.mxu1 }
 0x16f   : > { %2214 = vmatprep.mubr.bf16.mxu0 %v1167_v10  ;;  %969 = vst [vmem:[#allocation2 + $0xa9] sm:$0xff] %v4980_v14  ;;  %v4994_v22 = vadd.f32 %v4849_v62, %v857_v15  ;;  %v816_v23 = vsel %vm745_vm3, %v657_v7, %v784_v16  ;;  %v793_v17 = vmul.f32 %v4833_v48, %v694_v5  ;;  %v1091_v15 = vld [vmem:[#allocation2 + $0x4a] sm:$0xff]  ;;  %v1092_v16 = vld [vmem:[#allocation2 + $0x52] sm:$0xff] }
 0x170   : > { %v855_v27 = vmul.f32 %v4841_v54, %v816_v23  ;;  %3823 = vmatpush3.bf16.msra.mxu0 %v4279_v13  ;;  %v859_v29 = vmul.f32 %v4841_v54, %v820_v60  ;;  %v791_v36 = vmul.f32 %v4833_v48, %v686_v8  ;;  %v689_v37 = vadd.f32 %v4828_v46, %v688_v53  ;;  %v4289_v13 = vld [vmem:[#allocation8 + $0x190] sm:$0xff]   ;;  %v4291_v60 = vld [vmem:[#allocation8 + $0x1c8] sm:$0xff]  }
 0x171   : > { %972 = vst [vmem:[#allocation2 + $0xc9] sm:$0xff] %v4994_v22  ;;  %3824 = vmatprep.subr.bf16.mxu0 %v4282_v20  ;;  %v825_v42 = vsel %vm754_vm4, %v694_v5, %v793_v17  ;;  %v5010_v43 = vpack.c.bf16 %v1090_v26, %v1089_v25  ;;  %vm755_vm6 = vcmp.ge.f32.partialorder %v697_v24, 0.0  ;;  %v1073_v47 = vpack.c.bf16 %v4911_v61, %v4894_v40  ;;  %v4288_v61 = vld [vmem:[#allocation8 + $0x1d0] sm:$0xff]   ;;  %v1141_v5 = vld [vmem:[#allocation2 + $0x78] sm:$0xff] }
 0x172   : > { %v5008_v38 = vadd.f32 %v4849_v62, %v855_v27  ;;  %v5013_v44 = vadd.f32 %v4849_v62, %v859_v29  ;;  %v864_v45 = vmul.f32 %v4841_v54, %v825_v42  ;;  %v5018_v49 = vpack.c.bf16 %v1140_v35, %v1139_v34  ;;  %v4292_v35 = vld [vmem:[#allocation8 + $0x188] sm:$0xff]   ;;  %v4293_v42 = vld [vmem:[#allocation8 + $0x1c0] sm:$0xff]  }
 0x173   : > { %v823_v50 = vsel %vm752_vm5, %v686_v8, %v791_v36  ;;  %v794_v53 = vmul.f32 %v4833_v48, %v697_v24  ;;  %vm753_vm7 = vcmp.ge.f32.partialorder %v689_v37, 0.0  ;;  %v792_v40 = vmul.f32 %v4833_v48, %v689_v37  ;;  %v1142_v8 = vld [vmem:[#allocation2 + $0x80] sm:$0xff] }
 0x174   : > { %970 = vst [vmem:[#allocation2 + $0xb1] sm:$0xff] %v5008_v38  ;;  %3825 = vmatpush3.bf16.msra.mxu0 %v4283_v32  ;;  %974 = vst [vmem:[#allocation2 + $0xe1] sm:$0xff] %v5013_v44  ;;  %v5024_v58 = vadd.f32 %v4849_v62, %v864_v45  ;;  %v862_v59 = vmul.f32 %v4841_v54, %v823_v50  ;;  %v710_v0 = vadd.f32 %v4966_v3, %v4828_v46 }
 0x175   : > { %2062 = vmatmul.mubr.bf16.gmra.mxu1 %v1167_v10  ;;  %3826 = vmatprep.subr.bf16.mxu0 %v4286_v41  ;;  %v826_v63 = vsel %vm755_vm6, %v697_v24, %v794_v53  ;;  %v824_v7 = vsel %vm753_vm7, %v689_v37, %v792_v40  ;;  %v702_v9 = vadd.f32 %v4828_v46, %v701_v21  ;;  %v717_v24 = vpop.f32.mrf.mxu1 }
 0x176   : > { %2215 = vmatmul.mubr.bf16.gmra.mxu0 %v5010_v43  ;;  %2069 = vmatprep.mubr.bf16.mxu1 %v1073_v47  ;;  %979 = vst [vmem:[#allocation2 + $0x121] sm:$0xff] %v5024_v58  ;;  %v5035_v2 = vadd.f32 %v4849_v62, %v862_v59  ;;  %v865_v6 = vmul.f32 %v4841_v54, %v826_v63  ;;  %vm758_vm8 = vcmp.ge.f32.partialorder %v710_v0, 0.0 }
 0x177   : > { %2222 = vmatprep.mubr.bf16.mxu0 %v5018_v49  ;;  %v863_v10 = vmul.f32 %v4841_v54, %v824_v7  ;;  %v797_v12 = vmul.f32 %v4833_v48, %v710_v0  ;;  %v713_v3 = vadd.f32 %v4021_v30, %v4828_v46  ;;  %vm756_vm9 = vcmp.ge.f32.partialorder %v702_v9, 0.0  ;;  %v4025_v34 = vpop.f32.mrf.mxu1 }
 0x178   : > { %3827 = vmatpush3.bf16.msra.mxu0 %v4287_v57  ;;  %977 = vst [vmem:[#allocation2 + $0x109] sm:$0xff] %v5035_v2  ;;  %v5044_v20 = vadd.f32 %v4849_v62, %v865_v6  ;;  %v795_v51 = vmul.f32 %v4833_v48, %v702_v9  ;;  %v5053_v17 = vpack.c.bf16 %v1092_v16, %v1091_v15  ;;  %v1144_v6 = vld [vmem:[#allocation2 + $0x98] sm:$0xff] }
 0x179   : > { %3828 = vmatprep.subr.bf16.mxu0 %v4288_v61  ;;  %v5048_v21 = vadd.f32 %v4849_v62, %v863_v10  ;;  %v829_v23 = vsel %vm758_vm8, %v710_v0, %v797_v12  ;;  %vm759_vm10 = vcmp.ge.f32.partialorder %v713_v3, 0.0  ;;  %v798_v27 = vmul.f32 %v4833_v48, %v713_v3  ;;  %v720_v40 = vpop.f32.mrf.mxu1  ;;  %v4294_v61 = vld [vmem:[#allocation8 + $0x180] sm:$0xff]  }
 0x17a   : > { %980 = vst [vmem:[#allocation2 + $0x129] sm:$0xff] %v5044_v20  ;;  %v868_v25 = vmul.f32 %v4841_v54, %v829_v23  ;;  %v827_v26 = vsel %vm756_vm9, %v702_v9, %v795_v51  ;;  %v1074_v30 = vpack.c.bf16 %v4960_v56, %v4939_v31  ;;  %v5060_v29 = vpack.c.bf16 %v1142_v8, %v1141_v5  ;;  %v1093_v31 = vld [vmem:[#allocation2 + $0x62] sm:$0xff]  ;;  %v1094_v56 = vld [vmem:[#allocation2 + $0x6a] sm:$0xff] }
 0x17b   : > { %978 = vst [vmem:[#allocation2 + $0x111] sm:$0xff] %v5048_v21  ;;  %v866_v32 = vmul.f32 %v4841_v54, %v827_v26  ;;  %v830_v37 = vsel %vm759_vm10, %v713_v3, %v798_v27  ;;  %v705_v41 = vadd.f32 %v4828_v46, %v704_v55  ;;  %v726_v53 = vadd.f32 %v4024_v1, %v4828_v46  ;;  %v1143_v0 = vld [vmem:[#allocation2 + $0x90] sm:$0xff] }
 0x17c   : > { %3829 = vmatpush3.bf16.msra.mxu0 %v4289_v13  ;;  %v5063_v36 = vadd.f32 %v4849_v62, %v868_v25  ;;  %v869_v47 = vmul.f32 %v4841_v54, %v830_v37  ;;  %v718_v57 = vadd.f32 %v4828_v46, %v717_v24  ;;  %v729_v59 = vadd.f32 %v4025_v34, %v4828_v46  ;;  %v1145_v34 = vld [vmem:[#allocation2 + $0xa8] sm:$0xff] }
 0x17d   : > { %2070 = vmatmul.mubr.bf16.gmra.mxu1 %v5018_v49  ;;  %v5069_v45 = vadd.f32 %v4849_v62, %v866_v32  ;;  %vm757_vm11 = vcmp.ge.f32.partialorder %v705_v41, 0.0  ;;  %v796_v50 = vmul.f32 %v4833_v48, %v705_v41  ;;  %3830 = vmatprep.subr.bf16.mxu0 %v4291_v60  ;;  %v5082_v63 = vpack.c.bf16 %v1094_v56, %v1093_v31  ;;  %v1096_v32 = vld [vmem:[#allocation2 + $0x82] sm:$0xff]  ;;  %v1098_v56 = vld [vmem:[#allocation2 + $0x9a] sm:$0xff] }
 0x17e   : > { %2223 = vmatmul.mubr.bf16.gmra.mxu0 %v5053_v17  ;;  %2077 = vmatprep.mubr.bf16.mxu1 %v1074_v30  ;;  %983 = vst [vmem:[#allocation2 + $0x151] sm:$0xff] %v5063_v36  ;;  %v5078_v55 = vadd.f32 %v4849_v62, %v869_v47  ;;  %vm762_vm12 = vcmp.ge.f32.partialorder %v726_v53, 0.0  ;;  %v801_v1 = vmul.f32 %v4833_v48, %v726_v53  ;;  %vm760_vm13 = vcmp.ge.f32.partialorder %v718_v57, 0.0  ;;  %v1095_v30 = vld [vmem:[#allocation2 + $0x7a] sm:$0xff] }
 0x17f   : > { %2230 = vmatprep.mubr.bf16.mxu0 %v5060_v29  ;;  %981 = vst [vmem:[#allocation2 + $0x139] sm:$0xff] %v5069_v45  ;;  %v828_v7 = vsel %vm757_vm11, %v705_v41, %v796_v50  ;;  %v799_v10 = vmul.f32 %v4833_v48, %v718_v57  ;;  %vm763_vm14 = vcmp.ge.f32.partialorder %v729_v59, 0.0  ;;  %v1075_v12 = vpack.c.bf16 %v4949_v39, %v4930_v18  ;;  %v1147_v47 = vld [vmem:[#allocation2 + $0xc0] sm:$0xff]  ;;  %v1148_v50 = vld [vmem:[#allocation2 + $0xc8] sm:$0xff] }
 0x180   : > { %3831 = vmatpush3.bf16.msra.mxu0 %v4292_v35  ;;  %984 = vst [vmem:[#allocation2 + $0x159] sm:$0xff] %v5078_v55  ;;  %v867_v9 = vmul.f32 %v4841_v54, %v828_v7  ;;  %v833_v3 = vsel %vm762_vm12, %v726_v53, %v801_v1  ;;  %v802_v13 = vmul.f32 %v4833_v48, %v729_v59  ;;  %v1146_v35 = vld [vmem:[#allocation2 + $0xb0] sm:$0xff] }
 0x181   : > { %3832 = vmatprep.subr.bf16.mxu0 %v4293_v42  ;;  %v721_v15 = vadd.f32 %v4828_v46, %v720_v40  ;;  %v5092_v16 = vpack.c.bf16 %v1144_v6, %v1143_v0  ;;  %v872_v5 = vmul.f32 %v4841_v54, %v833_v3  ;;  %v831_v8 = vsel %vm760_vm13, %v718_v57, %v799_v10  ;;  %v3498_v57 = vpop.f32.mrf.mxu1  ;;  %v1100_v40 = vld [vmem:[#allocation2 + $0xb2] sm:$0xff]  ;;  %v1150_v6 = vld [vmem:[#allocation2 + $0xe0] sm:$0xff]  ;;  %v1102_v10 = vld [vmem:[#allocation2 + $0xca] sm:$0xff] }
 0x182   : > { %v5095_v51 = vadd.f32 %v4849_v62, %v867_v9  ;;  %v870_v23 = vmul.f32 %v4841_v54, %v831_v8  ;;  %v834_v24 = vsel %vm763_vm14, %v729_v59, %v802_v13  ;;  %v5114_v41 = vpack.c.bf16 %v1096_v32, %v1095_v30  ;;  %v1099_v59 = vld [vmem:[#allocation2 + $0xaa] sm:$0xff]  ;;  %v1149_v0 = vld [vmem:[#allocation2 + $0xd8] sm:$0xff]  ;;  %v1101_v9 = vld [vmem:[#allocation2 + $0xc2] sm:$0xff] }
 0x183   : > { %vm761_vm15 = vcmp.ge.f32.partialorder %v721_v15, 0.0  ;;  %v800_v18 = vmul.f32 %v4833_v48, %v721_v15  ;;  %v911_v46 = vadd.f32 %v4849_v62, %v872_v5  ;;  %v873_v39 = vmul.f32 %v4841_v54, %v834_v24  ;;  %v1152_v3 = vld [vmem:[#allocation2 + $0xf8] sm:$0xff]  ;;  %v1104_v8 = vld [vmem:[#allocation2 + $0xe2] sm:$0xff]  ;;  %v1154_v24 = vld [vmem:[#allocation2 + $0x110] sm:$0xff] }
 0x184   : > { %3833 = vmatpush3.bf16.msra.mxu0 %v4294_v61  ;;  %982 = vst [vmem:[#allocation2 + $0x141] sm:$0xff] %v5095_v51  ;;  %v909_v25 = vadd.f32 %v4849_v62, %v870_v23  ;;  %v1083_v48 = vpack.c.bf16 %v5078_v55, %v5063_v36  ;;  %v1076_v42 = vpack.c.bf16 %v5008_v38, %v4980_v14  ;;  %v3499_v61 = vpop.f32.mrf.mxu1  ;;  %v1103_v5 = vld [vmem:[#allocation2 + $0xda] sm:$0xff]  ;;  %v1153_v23 = vld [vmem:[#allocation2 + $0x108] sm:$0xff]  ;;  %v1108_v32 = vld [vmem:[#allocation2 + $0x112] sm:$0xff] }
 0x185   : > { %2078 = vmatmul.mubr.bf16.gmra.mxu1 %v5060_v29  ;;  %v832_v26 = vsel %vm761_vm15, %v721_v15, %v800_v18  ;;  %987 = vst [vmem:[#allocation2 + $0x181] sm:$0xff] %v911_v46  ;;  %v912_v27 = vadd.f32 %v4849_v62, %v873_v39  ;;  %v5123_v31 = vpack.c.bf16 %v1146_v35, %v1145_v34  ;;  %v1106_v39 = vld [vmem:[#allocation2 + $0xfa] sm:$0xff]  ;;  %v1107_v30 = vld [vmem:[#allocation2 + $0x10a] sm:$0xff] }
 0x186   : > { %2231 = vmatmul.mubr.bf16.gmra.mxu0 %v5082_v63  ;;  %2085 = vmatprep.mubr.bf16.mxu1 %v1075_v12  ;;  %v871_v60 = vmul.f32 %v4841_v54, %v832_v26  ;;  %985 = vst [vmem:[#allocation2 + $0x169] sm:$0xff] %v909_v25  ;;  %v1077_v14 = vpack.c.bf16 %v4994_v22, %v4977_v11  ;;  %v1151_v12 = vld [vmem:[#allocation2 + $0xf0] sm:$0xff]  ;;  %v1156_v26 = vld [vmem:[#allocation2 + $0x128] sm:$0xff]  ;;  %v1157_v34 = vld [vmem:[#allocation2 + $0x138] sm:$0xff] }
 0x187   : > { %2238 = vmatprep.mubr.bf16.mxu0 %v5092_v16  ;;  %988 = vst [vmem:[#allocation2 + $0x189] sm:$0xff] %v912_v27  ;;  %v5132_v38 = vpack.c.bf16 %v1148_v50, %v1147_v47  ;;  %v5136_v7 = vadd.f32 %v3499_v61, %v3498_v57  ;;  %v5138_v1 = vpack.c.bf16 %v1100_v40, %v1099_v59  ;;  %v1159_v47 = vld [vmem:[#allocation2 + $0x150] sm:$0xff]  ;;  %v1160_v50 = vld [vmem:[#allocation2 + $0x158] sm:$0xff] }
 0x188   : > { %v5112_v37 = vadd.f32 %v4849_v62, %v871_v60  ;;  %v1097_v62 = vld [vmem:[#allocation2 + $0x92] sm:$0xff]  ;;  %v1078_v11 = vpack.c.bf16 %v5013_v44, %v4879_v28  ;;  %v5143_v22 = vpack.c.bf16 %v1150_v6, %v1149_v0  ;;  %v5147_v13 = vpack.c.bf16 %v1102_v10, %v1101_v9  ;;  %v1114_v55 = vld [vmem:[#allocation2 + $0x15a] sm:$0xff] }
 0x189   : > { %v5127_v53 = vpack.c.bf16 %v1098_v56, %v1097_v62  ;;  %v1079_v15 = vpack.c.bf16 %v4956_v52, %v4868_v19  ;;  %v5152_v28 = vpack.c.bf16 %v1152_v3, %v1151_v12  ;;  %v5156_v18 = vpack.c.bf16 %v1104_v8, %v1103_v5  ;;  %v1105_v52 = vld [vmem:[#allocation2 + $0xf2] sm:$0xff]  ;;  %v1110_v56 = vld [vmem:[#allocation2 + $0x12a] sm:$0xff]  ;;  %v1182_v12 = vld [vmem:[#allocation2 + $0x21] sm:$0xff] }
 0x18a   : > { %986 = vst [vmem:[#allocation2 + $0x171] sm:$0xff] %v5112_v37  ;;  %v5120_v54 = vpack.c.bf16 %v5112_v37, %v909_v25  ;;  %v1080_v46 = vpack.c.bf16 %v5048_v21, %v5035_v2  ;;  %v5161_v19 = vpack.c.bf16 %v1154_v24, %v1153_v23  ;;  %v1155_v25 = vld [vmem:[#allocation2 + $0x120] sm:$0xff]  ;;  %v5165_v27 = vpack.c.bf16 %v1106_v39, %v1105_v52  ;;  %v1113_v36 = vld [vmem:[#allocation2 + $0x152] sm:$0xff] }
 0x18b   : > { %v1081_v60 = vpack.c.bf16 %v5044_v20, %v5024_v58  ;;  %v5170_v2 = vpack.c.bf16 %v1156_v26, %v1155_v25  ;;  %v1158_v35 = vld [vmem:[#allocation2 + $0x140] sm:$0xff]  ;;  %v5178_v62 = vpack.c.bf16 %v5095_v51, %v5069_v45  ;;  %v5189_v45 = vpack.c.bf16 %v1160_v50, %v1159_v47  ;;  %v1279_v25 = vld [vmem:[#allocation2 + $0x38] sm:$0xff]  ;;  %v1328_v26 = vld [vmem:[#allocation2 + $0x49] sm:$0xff] }
 0x18c   : > { %v5181_v58 = vpack.c.bf16 %v1158_v35, %v1157_v34  ;;  %v1109_v20 = vld [vmem:[#allocation2 + $0x122] sm:$0xff]  ;;  %v1111_v57 = vld [vmem:[#allocation2 + $0x13a] sm:$0xff]  ;;  %v5204_v9 = vpack.c.bf16 %v1114_v55, %v1113_v36  ;;  %v4297_v34 = vld [vmem:[#allocation8 + $0x220] sm:$0xff]  }
 0x18d   : > { %2086 = vmatmul.mubr.bf16.gmra.mxu1 %v5092_v16  ;;  %v1112_v59 = vld [vmem:[#allocation2 + $0x142] sm:$0xff]  ;;  %v1181_v5 = vld [vmem:[#allocation2 + $0x19] sm:$0xff]  ;;  %v4301_v36 = vld [vmem:[#allocation8 + $0x200] sm:$0xff]  }
 0x18e   : > { %2239 = vmatmul.mubr.bf16.gmra.mxu0 %v5114_v41  ;;  %2093 = vmatprep.mubr.bf16.mxu1 %v1076_v42  ;;  %v5174_v42 = vpack.c.bf16 %v1108_v32, %v1107_v30  ;;  %v1161_v40 = vld [vmem:[#allocation2 + $0x168] sm:$0xff]  ;;  %v5196_v0 = vpack.c.bf16 %v1112_v59, %v1111_v57  ;;  %v1327_v8 = vld [vmem:[#allocation2 + $0x39] sm:$0xff]  ;;  %v1213_v23 = vpack.c.bf16 %v1182_v12, %v1181_v5  ;;  %v1278_v30 = vld [vmem:[#allocation2 + $0x30] sm:$0xff] }
 0x18f   : > { %2246 = vmatprep.mubr.bf16.mxu0 %v5123_v31  ;;  %v4295_v52 = vld [vmem:[#allocation8 + $0x230] sm:$0xff]   ;;  %v1310_v32 = vpack.c.bf16 %v1279_v25, %v1278_v30  ;;  %v1331_v47 = vld [vmem:[#allocation2 + $0x69] sm:$0xff] }
 0x190   : > { %v4299_v57 = vld [vmem:[#allocation8 + $0x210] sm:$0xff]   ;;  %v1336_v12 = vld [vmem:[#allocation2 + $0xa9] sm:$0xff] }
 0x191   : > { %v1162_v61 = vld [vmem:[#allocation2 + $0x170] sm:$0xff] }
 0x192   : > { %v5199_v6 = vpack.c.bf16 %v1162_v61, %v1161_v40  ;;  %v1115_v3 = vld [vmem:[#allocation2 + $0x16a] sm:$0xff]  ;;  %v1332_v40 = vld [vmem:[#allocation2 + $0x79] sm:$0xff]  ;;  %v1333_v61 = vld [vmem:[#allocation2 + $0x81] sm:$0xff] }
 0x193   : > { %v1361_v55 = vpack.c.bf16 %v1333_v61, %v1332_v40 }
 0x195   : > { %2094 = vmatmul.mubr.bf16.gmra.mxu1 %v5123_v31 }
 0x196   : > { %2247 = vmatmul.mubr.bf16.gmra.mxu0 %v5127_v53  ;;  %2101 = vmatprep.mubr.bf16.mxu1 %v1077_v14  ;;  %v5186_v14 = vpack.c.bf16 %v1110_v56, %v1109_v20  ;;  %v1281_v20 = vld [vmem:[#allocation2 + $0x50] sm:$0xff]  ;;  %v1330_v56 = vld [vmem:[#allocation2 + $0x61] sm:$0xff] }
 0x197   : > { %2254 = vmatprep.mubr.bf16.mxu0 %v5132_v38  ;;  %v1360_v59 = vpack.c.bf16 %v1331_v47, %v1330_v56 }
 0x19d   : > { %2102 = vmatmul.mubr.bf16.gmra.mxu1 %v5132_v38 }
 0x19e   : > { %2255 = vmatmul.mubr.bf16.gmra.mxu0 %v5138_v1  ;;  %2109 = vmatprep.mubr.bf16.mxu1 %v1078_v11  ;;  %v1164_v11 = vld [vmem:[#allocation2 + $0x188] sm:$0xff] }
 0x19f   : > { %2262 = vmatprep.mubr.bf16.mxu0 %v5143_v22 }
 0x1a5   : > { %2110 = vmatmul.mubr.bf16.gmra.mxu1 %v5143_v22 }
 0x1a6   : > { %2263 = vmatmul.mubr.bf16.gmra.mxu0 %v5147_v13  ;;  %2117 = vmatprep.mubr.bf16.mxu1 %v1079_v15  ;;  %v1116_v15 = vld [vmem:[#allocation2 + $0x172] sm:$0xff] }
 0x1a7   : > { %2270 = vmatprep.mubr.bf16.mxu0 %v5152_v28  ;;  %v5212_v24 = vpack.c.bf16 %v1116_v15, %v1115_v3  ;;  %v1337_v3 = vld [vmem:[#allocation2 + $0xb1] sm:$0xff] }
 0x1a8   : > { %v1363_v15 = vpack.c.bf16 %v1337_v3, %v1336_v12 }
 0x1ad   : > { %2118 = vmatmul.mubr.bf16.gmra.mxu1 %v5152_v28 }
 0x1ae   : > { %2271 = vmatmul.mubr.bf16.gmra.mxu0 %v5156_v18  ;;  %2125 = vmatprep.mubr.bf16.mxu1 %v1080_v46  ;;  %v1326_v46 = vld [vmem:[#allocation2 + $0x31] sm:$0xff] }
 0x1af   : > { %2278 = vmatprep.mubr.bf16.mxu0 %v5161_v19  ;;  %v1358_v39 = vpack.c.bf16 %v1327_v8, %v1326_v46  ;;  %v1343_v8 = vld [vmem:[#allocation2 + $0xf9] sm:$0xff] }
 0x1b5   : > { %2126 = vmatmul.mubr.bf16.gmra.mxu1 %v5161_v19 }
 0x1b6   : > { %2279 = vmatmul.mubr.bf16.gmra.mxu0 %v5165_v27  ;;  %2133 = vmatprep.mubr.bf16.mxu1 %v1081_v60  ;;  %v1329_v60 = vld [vmem:[#allocation2 + $0x51] sm:$0xff] }
 0x1b7   : > { %2286 = vmatprep.mubr.bf16.mxu0 %v5170_v2  ;;  %v1359_v35 = vpack.c.bf16 %v1329_v60, %v1328_v26 }
 0x1bd   : > { %2134 = vmatmul.mubr.bf16.gmra.mxu1 %v5170_v2 }
 0x1be   : > { %2287 = vmatmul.mubr.bf16.gmra.mxu0 %v5174_v42  ;;  %2141 = vmatprep.mubr.bf16.mxu1 %v5178_v62 }
 0x1bf   : > { %2294 = vmatprep.mubr.bf16.mxu0 %v5181_v58 }
 0x1c5   : > { %2142 = vmatmul.mubr.bf16.gmra.mxu1 %v5181_v58 }
 0x1c6   : > { %2295 = vmatmul.mubr.bf16.gmra.mxu0 %v5186_v14  ;;  %2149 = vmatprep.mubr.bf16.mxu1 %v1083_v48  ;;  %v1163_v48 = vld [vmem:[#allocation2 + $0x180] sm:$0xff] }
 0x1c7   : > { %2302 = vmatprep.mubr.bf16.mxu0 %v5189_v45  ;;  %v5207_v10 = vpack.c.bf16 %v1164_v11, %v1163_v48  ;;  %v1334_v48 = vld [vmem:[#allocation2 + $0x91] sm:$0xff] }
 0x1cd   : > { %2150 = vmatmul.mubr.bf16.gmra.mxu1 %v5189_v45 }
 0x1ce   : > { %2303 = vmatmul.mubr.bf16.gmra.mxu0 %v5196_v0  ;;  %2157 = vmatprep.mubr.bf16.mxu1 %v5120_v54 }
 0x1cf   : > { %2310 = vmatprep.mubr.bf16.mxu0 %v5199_v6 }
 0x1d5   : > { %2158 = vmatmul.mubr.bf16.gmra.mxu1 %v5199_v6 }
 0x1d6   : > { %2311 = vmatmul.mubr.bf16.gmra.mxu0 %v5204_v9  ;;  %2359 = vmatprep.mubr.bf16.mxu1 %v4969_v4  ;;  %v4296_v4 = vld [vmem:[#allocation8 + $0x228] sm:$0xff]  }
 0x1d7   : > { %2318 = vmatprep.mubr.bf16.mxu0 %v5207_v10 }
 0x1dd   : > { %2360 = vmatmul.mubr.bf16.vlgmr.msra.gmra.mxu1 %v1213_v23 }
 0x1de   : > { %2319 = vmatmul.mubr.bf16.gmra.mxu0 %v5212_v24  ;;  %4027 = vmatpush3.bf16.msra.mxu1 %v4884_v33  ;;  %v4298_v33 = vld [vmem:[#allocation8 + $0x218] sm:$0xff]  }
 0x1df   : > { %2367 = vmatprep.mubr.bf16.mxu1 %v5010_v43  ;;  %2520 = vmatprep.mubr.bf16.mxu0 %v1358_v39  ;;  %v1280_v43 = vld [vmem:[#allocation2 + $0x48] sm:$0xff] }
 0x1e0   : > { %4028 = vmatprep.subr.bf16.mxu1 %v4295_v52  ;;  %v1311_v50 = vpack.c.bf16 %v1281_v20, %v1280_v43 }
 0x1e2   : > { %4029 = vmatpush3.bf16.msra.mxu1 %v4295_v52 }
 0x1e3   : > { %4030 = vmatprep.subr.bf16.mxu1 %v4296_v4 }
 0x1e5   : > { %2368 = vmatmul.mubr.bf16.gmra.mxu1 %v1358_v39 }
 0x1e6   : > { %2521 = vmatmul.mubr.bf16.vlgmr.msra.gmra.mxu0 %v1310_v32  ;;  %2375 = vmatprep.mubr.bf16.mxu1 %v5053_v17  ;;  %v4300_v17 = vld [vmem:[#allocation8 + $0x208] sm:$0xff]   ;;  %v1346_v32 = vld [vmem:[#allocation2 + $0x121] sm:$0xff] }
 0x1e7   : > { %2528 = vmatprep.mubr.bf16.mxu0 %v1359_v35  ;;  %4031 = vmatpush3.bf16.msra.mxu1 %v4296_v4 }
 0x1e8   : > { %4032 = vmatprep.subr.bf16.mxu1 %v4297_v34 }
 0x1eb   : > { %4033 = vmatpush3.bf16.msra.mxu1 %v4297_v34  ;;  %v1347_v34 = vld [vmem:[#allocation2 + $0x129] sm:$0xff] }
 0x1ec   : > { %4034 = vmatprep.subr.bf16.mxu1 %v4298_v33  ;;  %v1368_v47 = vpack.c.bf16 %v1347_v34, %v1346_v32 }
 0x1ed   : > { %2376 = vmatmul.mubr.bf16.gmra.mxu1 %v1359_v35 }
 0x1ee   : > { %2529 = vmatmul.mubr.bf16.gmra.mxu0 %v1311_v50  ;;  %2383 = vmatprep.mubr.bf16.mxu1 %v5082_v63  ;;  %v1335_v63 = vld [vmem:[#allocation2 + $0x99] sm:$0xff] }
 0x1ef   : > { %2536 = vmatprep.mubr.bf16.mxu0 %v1360_v59  ;;  %4035 = vmatpush3.bf16.msra.mxu1 %v4298_v33  ;;  %v1362_v11 = vpack.c.bf16 %v1335_v63, %v1334_v48 }
 0x1f0   : > { %4036 = vmatprep.subr.bf16.mxu1 %v4299_v57 }
 0x1f3   : > { %4037 = vmatpush3.bf16.msra.mxu1 %v4299_v57 }
 0x1f4   : > { %4038 = vmatprep.subr.bf16.mxu1 %v4300_v17 }
 0x1f5   : > { %2384 = vmatmul.mubr.bf16.gmra.mxu1 %v1360_v59 }
 0x1f6   : > { %2537 = vmatmul.mubr.bf16.gmra.mxu0 %v5018_v49  ;;  %2391 = vmatprep.mubr.bf16.mxu1 %v5114_v41  ;;  %v1338_v49 = vld [vmem:[#allocation2 + $0xc1] sm:$0xff]  ;;  %v1339_v41 = vld [vmem:[#allocation2 + $0xc9] sm:$0xff] }
 0x1f7   : > { %2544 = vmatprep.mubr.bf16.mxu0 %v1361_v55  ;;  %4039 = vmatpush3.bf16.msra.mxu1 %v4300_v17  ;;  %v1364_v5 = vpack.c.bf16 %v1339_v41, %v1338_v49 }
 0x1f8   : > { %4040 = vmatprep.subr.bf16.mxu1 %v4301_v36 }
 0x1fb   : > { %4041 = vmatpush3.bf16.msra.mxu1 %v4301_v36 }
 0x1fd   : > { %2392 = vmatmul.mubr.bf16.gmra.mxu1 %v1361_v55 }
 0x1fe   : > { %2545 = vmatmul.mubr.bf16.gmra.mxu0 %v5060_v29  ;;  %2399 = vmatprep.mubr.bf16.mxu1 %v5127_v53  ;;  %v1340_v29 = vld [vmem:[#allocation2 + $0xd9] sm:$0xff] }
 0x1ff   : > { %2552 = vmatprep.mubr.bf16.mxu0 %v1362_v11  ;;  %v1365_v53 = vpack.c.bf16 %v5013_v44, %v1340_v29 }
 0x205   : > { %2400 = vmatmul.mubr.bf16.gmra.mxu1 %v1362_v11 }
 0x206   : > { %2553 = vmatmul.mubr.bf16.gmra.mxu0 %v5092_v16  ;;  %2407 = vmatprep.mubr.bf16.mxu1 %v5138_v1  ;;  %v1198_v16 = vld [vmem:[#allocation2 + $0xe1] sm:$0xff]  ;;  %v1342_v1 = vld [vmem:[#allocation2 + $0xf1] sm:$0xff] }
 0x207   : > { %2560 = vmatprep.mubr.bf16.mxu0 %v1363_v15  ;;  %v1221_v23 = vpack.c.bf16 %v1198_v16, %v1340_v29  ;;  %v1366_v46 = vpack.c.bf16 %v1343_v8, %v1342_v1  ;;  %v1205_v16 = vld [vmem:[#allocation2 + $0x139] sm:$0xff] }
 0x20d   : > { %2408 = vmatmul.mubr.bf16.gmra.mxu1 %v1363_v15 }
 0x20e   : > { %2561 = vmatmul.mubr.bf16.gmra.mxu0 %v5123_v31  ;;  %2415 = vmatprep.mubr.bf16.mxu1 %v5147_v13  ;;  %v3501_v31 = vpop.f32.mrf.mxu1  ;;  %v1344_v13 = vld [vmem:[#allocation2 + $0x109] sm:$0xff] }
 0x20f   : > { %2568 = vmatprep.mubr.bf16.mxu0 %v1364_v5 }
 0x210   : > { %v3502_v52 = vpop.f32.mrf.mxu1 }
 0x211   : > { %v3503_v26 = vadd.f32 %v3502_v52, %v3501_v31  ;;  %v1350_v31 = vld [vmem:[#allocation2 + $0x151] sm:$0xff] }
 0x215   : > { %2416 = vmatmul.mubr.bf16.gmra.mxu1 %v1364_v5 }
 0x216   : > { %2569 = vmatmul.mubr.bf16.gmra.mxu0 %v5132_v38  ;;  %2423 = vmatprep.mubr.bf16.mxu1 %v5156_v18  ;;  %v1367_v38 = vpack.c.bf16 %v5048_v21, %v1344_v13  ;;  %v5236_v18 = vld [vmem:[%s5854_s8] ss:$0 sm:$0xff] }
 0x217   : > { %2576 = vmatprep.mubr.bf16.mxu0 %v1365_v53  ;;  %v2040_v25 = vadd.f32 %v5136_v7, %v5236_v18  ;;  %v4302_v7 = vld [vmem:[#allocation9 + $0x38] sm:$0xff]   ;;  %v1351_v13 = vld [vmem:[#allocation2 + $0x159] sm:$0xff] }
 0x218   : > { %4074 = vmatprep.subr.bf16.mxu0 %v4302_v7 }
 0x219   : > { %4075 = vmatpush3.bf16.msra.mxu0 %v4302_v7 }
 0x21d   : > { %2424 = vmatmul.mubr.bf16.gmra.mxu1 %v1221_v23 }
 0x21e   : > { %2577 = vmatmul.mubr.bf16.gmra.mxu0 %v5143_v22  ;;  %2431 = vmatprep.mubr.bf16.mxu1 %v5165_v27 }
 0x21f   : > { %2584 = vmatprep.mubr.bf16.mxu0 %v1366_v46 }
 0x225   : > { %v3504_v44 = vpop.f32.mrf.mxu1  ;;  %2432 = vmatmul.mubr.bf16.gmra.mxu1 %v1366_v46 }
 0x226   : > { %v3610_v39 = vpop.f32.mrf.mxu0  ;;  %2585 = vmatmul.mubr.bf16.gmra.mxu0 %v5152_v28  ;;  %2439 = vmatprep.mubr.bf16.mxu1 %v5174_v42  ;;  %v2043_v42 = vadd.f32 %v3503_v26, %v5236_v18 }
 0x227   : > { %2592 = vmatprep.mubr.bf16.mxu0 %v1367_v38  ;;  %v3505_v22 = vpop.f32.mrf.mxu1 }
 0x228   : > { %v3506_v27 = vadd.f32 %v3505_v22, %v3504_v44  ;;  %v3611_v4 = vpop.f32.mrf.mxu0 }
 0x229   : > { %v3612_v60 = vadd.f32 %v3611_v4, %v3610_v39  ;;  %v3507_v21 = vpop.f32.mrf.mxu1 }
 0x22a   : > { %v3613_v30 = vpop.f32.mrf.mxu0  ;;  %v2048_v61 = vadd.f32 %v3506_v27, %v5236_v18  ;;  %v1370_v27 = vpack.c.bf16 %v1351_v13, %v1350_v31  ;;  %v1356_v13 = vld [vmem:[#allocation2 + $0x199] sm:$0xff] }
 0x22b   : > { %v5242_v35 = vadd.f32 %v3612_v60, %v2040_v25  ;;  %v3508_v33 = vpop.f32.mrf.mxu1  ;;  %v4303_v25 = vld [vmem:[#allocation9 + $0x30] sm:$0xff]  }
 0x22c   : > { %v3509_v43 = vadd.f32 %v3508_v33, %v3507_v21  ;;  %v3614_v28 = vpop.f32.mrf.mxu0  ;;  %4076 = vmatprep.subr.bf16.mxu0 %v4303_v25 }
 0x22d   : > { %v3615_v20 = vadd.f32 %v3614_v28, %v3613_v30  ;;  %v3510_v56 = vpop.f32.mrf.mxu1  ;;  %2440 = vmatmul.mubr.bf16.gmra.mxu1 %v1367_v38  ;;  %4077 = vmatpush3.bf16.msra.mxu0 %v4303_v25 }
 0x22e   : > { %v3616_v50 = vpop.f32.mrf.mxu0  ;;  %2593 = vmatmul.mubr.bf16.gmra.mxu0 %v5161_v19  ;;  %2447 = vmatprep.mubr.bf16.mxu1 %v5186_v14  ;;  %v2051_v14 = vadd.f32 %v3509_v43, %v5236_v18 }
 0x22f   : > { %v5247_v57 = vadd.f32 %v3615_v20, %v2043_v42  ;;  %2600 = vmatprep.mubr.bf16.mxu0 %v1368_v47  ;;  %v3511_v59 = vpop.f32.mrf.mxu1 }
 0x230   : > { %v3512_v17 = vadd.f32 %v3511_v59, %v3510_v56  ;;  %v3617_v40 = vpop.f32.mrf.mxu0 }
 0x231   : > { %v3618_v36 = vadd.f32 %v3617_v40, %v3616_v50  ;;  %v3513_v55 = vpop.f32.mrf.mxu1  ;;  %v1209_v40 = vld [vmem:[#allocation2 + $0x169] sm:$0xff] }
 0x232   : > { %v3619_v48 = vpop.f32.mrf.mxu0  ;;  %v2056_v1 = vadd.f32 %v3512_v17, %v5236_v18 }
 0x233   : > { %v5250_v63 = vadd.f32 %v3618_v36, %v2048_v61  ;;  %v3514_v11 = vpop.f32.mrf.mxu1 }
 0x234   : > { %v3515_v19 = vadd.f32 %v3514_v11, %v3513_v55  ;;  %v3620_v12 = vpop.f32.mrf.mxu0  ;;  %v1260_v11 = vld [vmem:[#allocation2 + $0x18a] sm:$0xff] }
 0x235   : > { %v3621_v3 = vadd.f32 %v3620_v12, %v3619_v48  ;;  %v3516_v15 = vpop.f32.mrf.mxu1  ;;  %2448 = vmatmul.mubr.bf16.gmra.mxu1 %v1368_v47  ;;  %v1259_v48 = vld [vmem:[#allocation2 + $0x182] sm:$0xff] }
 0x236   : > { %v3622_v49 = vpop.f32.mrf.mxu0  ;;  %2601 = vmatmul.mubr.bf16.gmra.mxu0 %v5170_v2  ;;  %2455 = vmatprep.mubr.bf16.mxu1 %v5196_v0  ;;  %v1225_v0 = vpack.c.bf16 %v5095_v51, %v1205_v16  ;;  %v1354_v12 = vld [vmem:[#allocation2 + $0x181] sm:$0xff] }
 0x237   : > { %v5255_v41 = vadd.f32 %v3621_v3, %v2051_v14  ;;  %2608 = vmatprep.mubr.bf16.mxu0 %v5178_v62  ;;  %v3517_v5 = vpop.f32.mrf.mxu1  ;;  %v2059_v62 = vadd.f32 %v3515_v19, %v5236_v18  ;;  %v1355_v14 = vld [vmem:[#allocation2 + $0x189] sm:$0xff]  ;;  %v1227_v3 = vpack.c.bf16 %v5112_v37, %v1209_v40 }
 0x238   : > { %v3518_v29 = vadd.f32 %v3517_v5, %v3516_v15  ;;  %v3623_v53 = vpop.f32.mrf.mxu0  ;;  %v1372_v16 = vpack.c.bf16 %v1355_v14, %v1354_v12  ;;  %v1379_v40 = vld [vmem:[#allocation2 + $0x6a] sm:$0xff] }
 0x239   : > { %v3624_v8 = vadd.f32 %v3623_v53, %v3622_v49  ;;  %v3519_v23 = vpop.f32.mrf.mxu1  ;;  %v5280_v49 = vpack.c.bf16 %v1260_v11, %v1259_v48 }
 0x23a   : > { %v3625_v46 = vpop.f32.mrf.mxu0  ;;  %v2064_v30 = vadd.f32 %v3518_v29, %v5236_v18 }
 0x23b   : > { %v5259_v52 = vadd.f32 %v3624_v8, %v2056_v1  ;;  %v3520_v2 = vpop.f32.mrf.mxu1  ;;  %v4304_v8 = vld [vmem:[#allocation9 + $0x28] sm:$0xff]  }
 0x23c   : > { %v3521_v44 = vadd.f32 %v3520_v2, %v3519_v23  ;;  %v3626_v38 = vpop.f32.mrf.mxu0  ;;  %v1357_v2 = vld [vmem:[#allocation2 + $0x1a1] sm:$0xff]  ;;  %4078 = vmatprep.subr.bf16.mxu0 %v4304_v8 }
 0x23d   : > { %v3627_v39 = vadd.f32 %v3626_v38, %v3625_v46  ;;  %v3522_v22 = vpop.f32.mrf.mxu1  ;;  %2456 = vmatmul.mubr.bf16.gmra.mxu1 %v1225_v0  ;;  %4079 = vmatpush3.bf16.msra.mxu0 %v4304_v8  ;;  %v1380_v8 = vld [vmem:[#allocation2 + $0x7a] sm:$0xff] }
 0x23e   : > { %v3628_v4 = vpop.f32.mrf.mxu0  ;;  %2609 = vmatmul.mubr.bf16.gmra.mxu0 %v5181_v58  ;;  %2463 = vmatprep.mubr.bf16.mxu1 %v5204_v9  ;;  %v2067_v9 = vadd.f32 %v3521_v44, %v5236_v18 }
 0x23f   : > { %v5265_v26 = vadd.f32 %v3627_v39, %v2059_v62  ;;  %2616 = vmatprep.mubr.bf16.mxu0 %v1370_v27  ;;  %v3523_v60 = vpop.f32.mrf.mxu1  ;;  %v1374_v62 = vld [vmem:[#allocation2 + $0x32] sm:$0xff]  ;;  %v1375_v39 = vld [vmem:[#allocation2 + $0x3a] sm:$0xff] }
 0x240   : > { %v3524_v21 = vadd.f32 %v3523_v60, %v3522_v22  ;;  %v3629_v51 = vpop.f32.mrf.mxu0 }
 0x241   : > { %v3630_v32 = vadd.f32 %v3629_v51, %v3628_v4  ;;  %v3525_v34 = vpop.f32.mrf.mxu1  ;;  %v1373_v4 = vpack.c.bf16 %v1357_v2, %v1356_v13  ;;  %v1382_v2 = vld [vmem:[#allocation2 + $0x92] sm:$0xff] }
 0x242   : > { %v3631_v33 = vpop.f32.mrf.mxu0  ;;  %v2072_v61 = vadd.f32 %v3524_v21, %v5236_v18  ;;  %v1406_v21 = vpack.c.bf16 %v1375_v39, %v1374_v62 }
 0x243   : > { %v5268_v43 = vadd.f32 %v3630_v32, %v2064_v30  ;;  %v3526_v28 = vpop.f32.mrf.mxu1 }
 0x244   : > { %v3527_v58 = vadd.f32 %v3526_v28, %v3525_v34  ;;  %v3632_v42 = vpop.f32.mrf.mxu0 }
 0x245   : > { %v3633_v20 = vadd.f32 %v3632_v42, %v3631_v33  ;;  %v3528_v56 = vpop.f32.mrf.mxu1  ;;  %2464 = vmatmul.mubr.bf16.gmra.mxu1 %v1370_v27 }
 0x246   : > { %v3634_v47 = vpop.f32.mrf.mxu0  ;;  %2617 = vmatmul.mubr.bf16.gmra.mxu0 %v5189_v45  ;;  %2471 = vmatprep.mubr.bf16.mxu1 %v5212_v24  ;;  %v2075_v5 = vadd.f32 %v3527_v58, %v5236_v18  ;;  %v1308_v58 = vld [vmem:[#allocation2 + $0x198] sm:$0xff] }
 0x247   : > { %v5273_v50 = vadd.f32 %v3633_v20, %v2067_v9  ;;  %2624 = vmatprep.mubr.bf16.mxu0 %v5120_v54  ;;  %v3529_v7 = vpop.f32.mrf.mxu1  ;;  %v1376_v20 = vld [vmem:[#allocation2 + $0x4a] sm:$0xff] }
 0x248   : > { %v3530_v59 = vadd.f32 %v3529_v7, %v3528_v56  ;;  %v3635_v17 = vpop.f32.mrf.mxu0  ;;  %v1377_v56 = vld [vmem:[#allocation2 + $0x52] sm:$0xff] }
 0x249   : > { %v3636_v36 = vadd.f32 %v3635_v17, %v3634_v47  ;;  %v3531_v55 = vpop.f32.mrf.mxu1  ;;  %v1378_v17 = vld [vmem:[#allocation2 + $0x62] sm:$0xff]  ;;  %v1407_v11 = vpack.c.bf16 %v1377_v56, %v1376_v20 }
 0x24a   : > { %v3637_v19 = vpop.f32.mrf.mxu0  ;;  %v2080_v0 = vadd.f32 %v3530_v59, %v5236_v18  ;;  %v1408_v14 = vpack.c.bf16 %v1379_v40, %v1378_v17 }
 0x24b   : > { %v5277_v45 = vadd.f32 %v3636_v36, %v2072_v61  ;;  %v3532_v24 = vpop.f32.mrf.mxu1  ;;  %v4310_v36 = vld [vmem:[#allocation2 + $0x8] sm:$0xff] }
 0x24c   : > { %v3533_v15 = vadd.f32 %v3532_v24, %v3531_v55  ;;  %v3638_v54 = vpop.f32.mrf.mxu0  ;;  %v1325_v55 = vpack.c.bf16 %v4310_v36, %v1308_v58  ;;  %v1384_v58 = vld [vmem:[#allocation2 + $0xaa] sm:$0xff] }
 0x24d   : > { %v3639_v29 = vadd.f32 %v3638_v54, %v3637_v19  ;;  %v3534_v53 = vpop.f32.mrf.mxu1  ;;  %2472 = vmatmul.mubr.bf16.gmra.mxu1 %v1227_v3 }
 0x24e   : > { %v3640_v1 = vpop.f32.mrf.mxu0  ;;  %2625 = vmatmul.mubr.bf16.gmra.mxu0 %v5199_v6  ;;  %2479 = vmatprep.mubr.bf16.mxu1 %v5280_v49  ;;  %v2083_v51 = vadd.f32 %v3533_v15, %v5236_v18 }
 0x24f   : > { %v5285_v23 = vadd.f32 %v3639_v29, %v2075_v5  ;;  %2632 = vmatprep.mubr.bf16.mxu0 %v1372_v16  ;;  %v3535_v37 = vpop.f32.mrf.mxu1  ;;  %v4305_v5 = vld [vmem:[#allocation9 + $0x20] sm:$0xff]  }
 0x250   : > { %v3536_v46 = vadd.f32 %v3535_v37, %v3534_v53  ;;  %v3641_v31 = vpop.f32.mrf.mxu0  ;;  %v1381_v37 = vld [vmem:[#allocation2 + $0x82] sm:$0xff]  ;;  %4080 = vmatprep.subr.bf16.mxu0 %v4305_v5 }
 0x251   : > { %v3642_v44 = vadd.f32 %v3641_v31, %v3640_v1  ;;  %v3537_v38 = vpop.f32.mrf.mxu1  ;;  %4081 = vmatpush3.bf16.msra.mxu0 %v4305_v5  ;;  %v1409_v39 = vpack.c.bf16 %v1381_v37, %v1380_v8 }
 0x252   : > { %v3643_v6 = vpop.f32.mrf.mxu0  ;;  %v2088_v47 = vadd.f32 %v3536_v46, %v5236_v18 }
 0x253   : > { %v5288_v22 = vadd.f32 %v3642_v44, %v2080_v0  ;;  %v3538_v27 = vpop.f32.mrf.mxu1  ;;  %v1383_v0 = vld [vmem:[#allocation2 + $0x9a] sm:$0xff] }
 0x254   : > { %v3539_v25 = vadd.f32 %v3538_v27, %v3537_v38  ;;  %v3644_v60 = vpop.f32.mrf.mxu0 }
 0x255   : > { %v3645_v30 = vadd.f32 %v3644_v60, %v3643_v6  ;;  %v3540_v32 = vpop.f32.mrf.mxu1  ;;  %2480 = vmatmul.mubr.bf16.gmra.mxu1 %v1372_v16 }
 0x256   : > { %v3646_v34 = vpop.f32.mrf.mxu0  ;;  %2633 = vmatmul.mubr.bf16.gmra.mxu0 %v5207_v10  ;;  %4042 = vmatprep.mubr.bf16.mxu1 %v1406_v21  ;;  %v2091_v24 = vadd.f32 %v3539_v25, %v5236_v18 }
 0x257   : > { %v5292_v33 = vadd.f32 %v3645_v30, %v2083_v51  ;;  %v3541_v28 = vpop.f32.mrf.mxu1  ;;  %2640 = vmatprep.mubr.bf16.mxu0 %v1373_v4  ;;  %v1410_v4 = vpack.c.bf16 %v1383_v0, %v1382_v2 }
 0x258   : > { %v3542_v42 = vadd.f32 %v3541_v28, %v3540_v32  ;;  %v3647_v9 = vpop.f32.mrf.mxu0 }
 0x259   : > { %v3648_v7 = vadd.f32 %v3647_v9, %v3646_v34  ;;  %v3543_v59 = vpop.f32.mrf.mxu1 }
 0x25a   : > { %v3649_v61 = vpop.f32.mrf.mxu0  ;;  %v2096_v46 = vadd.f32 %v3542_v42, %v5236_v18  ;;  %v1385_v42 = vld [vmem:[#allocation2 + $0xb2] sm:$0xff] }
 0x25b   : > { %v5295_v10 = vadd.f32 %v3648_v7, %v2088_v47  ;;  %v3544_v48 = vpop.f32.mrf.mxu1  ;;  %v1386_v47 = vld [vmem:[#allocation2 + $0xc2] sm:$0xff]  ;;  %v1387_v7 = vld [vmem:[#allocation2 + $0xca] sm:$0xff] }
 0x25c   : > { %v3545_v19 = vadd.f32 %v3544_v48, %v3543_v59  ;;  %v3650_v12 = vpop.f32.mrf.mxu0  ;;  %v1412_v48 = vpack.c.bf16 %v1387_v7, %v1386_v47  ;;  %v1395_v47 = vld [vmem:[#allocation2 + $0x12a] sm:$0xff] }
 0x25d   : > { %v3651_v3 = vadd.f32 %v3650_v12, %v3649_v61  ;;  %v3546_v15 = vpop.f32.mrf.mxu1  ;;  %4043 = vmatmul.mubr.bf16.vlgmr.msra.gmra.mxu1 %v1407_v11  ;;  %v1411_v61 = vpack.c.bf16 %v1385_v42, %v1384_v58  ;;  %v1393_v58 = vld [vmem:[#allocation2 + $0x112] sm:$0xff] }
 0x25e   : > { %v3652_v54 = vpop.f32.mrf.mxu0  ;;  %2641 = vmatmul.mubr.bf16.gmra.mxu0 %v1325_v55  ;;  %4046 = vmatprep.mubr.bf16.mxu1 %v1408_v14  ;;  %v2099_v25 = vadd.f32 %v3545_v19, %v5236_v18 }
 0x25f   : > { %v5298_v29 = vadd.f32 %v3651_v3, %v2091_v24  ;;  %v3547_v53 = vpop.f32.mrf.mxu1  ;;  %v4306_v24 = vld [vmem:[#allocation9 + $0x18] sm:$0xff]  }
 0x260   : > { %v3548_v16 = vadd.f32 %v3547_v53, %v3546_v15  ;;  %v3653_v1 = vpop.f32.mrf.mxu0  ;;  %v1388_v53 = vld [vmem:[#allocation2 + $0xda] sm:$0xff]  ;;  %4082 = vmatprep.subr.bf16.mxu0 %v4306_v24 }
 0x261   : > { %v3654_v31 = vadd.f32 %v3653_v1, %v3652_v54  ;;  %v3549_v13 = vpop.f32.mrf.mxu1  ;;  %4083 = vmatpush3.bf16.msra.mxu0 %v4306_v24  ;;  %v4307_v24 = vld [vmem:[#allocation9 + $0x10] sm:$0xff]  }
 0x262   : > { %v3655_v44 = vpop.f32.mrf.mxu0  ;;  %v2104_v9 = vadd.f32 %v3548_v16, %v5236_v18  ;;  %v1389_v16 = vld [vmem:[#allocation2 + $0xe2] sm:$0xff]  ;;  %4084 = vmatprep.subr.bf16.mxu0 %v4307_v24 }
 0x263   : > { %v5301_v38 = vadd.f32 %v3654_v31, %v2096_v46  ;;  %v3550_v62 = vpop.f32.mrf.mxu1  ;;  %v1390_v46 = vld [vmem:[#allocation2 + $0xf2] sm:$0xff]  ;;  %v1391_v31 = vld [vmem:[#allocation2 + $0xfa] sm:$0xff] }
 0x264   : > { %v3551_v6 = vadd.f32 %v3550_v62, %v3549_v13  ;;  %v3656_v27 = vpop.f32.mrf.mxu0 }
 0x265   : > { %v3657_v60 = vadd.f32 %v3656_v27, %v3655_v44  ;;  %v3552_v21 = vpop.f32.mrf.mxu1  ;;  %4047 = vmatmul.mubr.bf16.gmra.mxu1 %v1409_v39  ;;  %v1413_v44 = vpack.c.bf16 %v1389_v16, %v1388_v53  ;;  %v1396_v16 = vld [vmem:[#allocation2 + $0x13a] sm:$0xff]  ;;  %4085 = vmatpush3.bf16.msra.mxu0 %v4307_v24 }
 0x266   : > { %v3658_v51 = vpop.f32.mrf.mxu0  ;;  %4050 = vmatprep.mubr.bf16.mxu1 %v1410_v4  ;;  %v2107_v11 = vadd.f32 %v3551_v6, %v5236_v18  ;;  %v1414_v6 = vpack.c.bf16 %v1391_v31, %v1390_v46  ;;  %v1398_v31 = vld [vmem:[#allocation2 + $0x152] sm:$0xff] }
 0x267   : > { %v5304_v30 = vadd.f32 %v3657_v60, %v2099_v25  ;;  %v3553_v32 = vpop.f32.mrf.mxu1 }
 0x268   : > { %v3554_v34 = vadd.f32 %v3553_v32, %v3552_v21  ;;  %v3659_v28 = vpop.f32.mrf.mxu0 }
 0x269   : > { %v3660_v20 = vadd.f32 %v3659_v28, %v3658_v51  ;;  %v3555_v56 = vpop.f32.mrf.mxu1  ;;  %v1392_v28 = vld [vmem:[#allocation2 + $0x10a] sm:$0xff] }
 0x26a   : > { %v3661_v59 = vpop.f32.mrf.mxu0  ;;  %v2112_v1 = vadd.f32 %v3554_v34, %v5236_v18 }
 0x26b   : > { %v5307_v17 = vadd.f32 %v3660_v20, %v2104_v9  ;;  %v3556_v40 = vpop.f32.mrf.mxu1 }
 0x26c   : > { %v3557_v36 = vadd.f32 %v3556_v40, %v3555_v56  ;;  %v3662_v55 = vpop.f32.mrf.mxu0  ;;  %v1394_v56 = vld [vmem:[#allocation2 + $0x122] sm:$0xff] }
 0x26d   : > { %v3663_v19 = vadd.f32 %v3662_v55, %v3661_v59  ;;  %v3558_v12 = vpop.f32.mrf.mxu1  ;;  %4051 = vmatmul.mubr.bf16.gmra.mxu1 %v1411_v61  ;;  %v1415_v61 = vpack.c.bf16 %v1393_v58, %v1392_v28 }
 0x26e   : > { %v3664_v14 = vpop.f32.mrf.mxu0  ;;  %4054 = vmatprep.mubr.bf16.mxu1 %v1412_v48  ;;  %v2115_v27 = vadd.f32 %v3557_v36, %v5236_v18  ;;  %v1416_v48 = vpack.c.bf16 %v1395_v47, %v1394_v56 }
 0x26f   : > { %v5310_v3 = vadd.f32 %v3663_v19, %v2107_v11  ;;  %v3559_v15 = vpop.f32.mrf.mxu1 }
 0x270   : > { %v3560_v54 = vadd.f32 %v3559_v15, %v3558_v12  ;;  %v3665_v5 = vpop.f32.mrf.mxu0 }
 0x271   : > { %v3666_v8 = vadd.f32 %v3665_v5, %v3664_v14  ;;  %v3561_v37 = vpop.f32.mrf.mxu1 }
 0x272   : > { %v3667_v13 = vpop.f32.mrf.mxu0  ;;  %v2120_v42 = vadd.f32 %v3560_v54, %v5236_v18 }
 0x273   : > { %v5313_v2 = vadd.f32 %v3666_v8, %v2112_v1  ;;  %v3562_v0 = vpop.f32.mrf.mxu1  ;;  %v1397_v1 = vld [vmem:[#allocation2 + $0x142] sm:$0xff] }
 0x274   : > { %v3563_v62 = vadd.f32 %v3562_v0, %v3561_v37  ;;  %v3668_v39 = vpop.f32.mrf.mxu0 }
 0x275   : > { %v3669_v4 = vadd.f32 %v3668_v39, %v3667_v13  ;;  %v3564_v25 = vpop.f32.mrf.mxu1  ;;  %4055 = vmatmul.mubr.bf16.gmra.mxu1 %v1413_v44  ;;  %v1399_v13 = vld [vmem:[#allocation2 + $0x15a] sm:$0xff]  ;;  %v1417_v39 = vpack.c.bf16 %v1397_v1, %v1396_v16 }
 0x276   : > { %v3670_v60 = vpop.f32.mrf.mxu0  ;;  %4058 = vmatprep.mubr.bf16.mxu1 %v1414_v6  ;;  %v2123_v11 = vadd.f32 %v3563_v62, %v5236_v18 }
 0x277   : > { %v5316_v21 = vadd.f32 %v3669_v4, %v2115_v27  ;;  %v3565_v51 = vpop.f32.mrf.mxu1  ;;  %v1418_v4 = vpack.c.bf16 %v1399_v13, %v1398_v31 }
 0x278   : > { %v3566_v32 = vadd.f32 %v3565_v51, %v3564_v25  ;;  %v3671_v34 = vpop.f32.mrf.mxu0 }
 0x279   : > { %v3672_v9 = vadd.f32 %v3671_v34, %v3670_v60  ;;  %v3567_v20 = vpop.f32.mrf.mxu1 }
 0x27a   : > { %v3673_v7 = vpop.f32.mrf.mxu0  ;;  %v2128_v8 = vadd.f32 %v3566_v32, %v5236_v18 }
 0x27b   : > { %v5319_v59 = vadd.f32 %v3672_v9, %v2120_v42  ;;  %v3568_v40 = vpop.f32.mrf.mxu1  ;;  %v1400_v9 = vld [vmem:[#allocation2 + $0x16a] sm:$0xff] }
 0x27c   : > { %v3569_v36 = vadd.f32 %v3568_v40, %v3567_v20  ;;  %v3674_v55 = vpop.f32.mrf.mxu0  ;;  %v1401_v20 = vld [vmem:[#allocation2 + $0x172] sm:$0xff] }
 0x27d   : > { %v3675_v19 = vadd.f32 %v3674_v55, %v3673_v7  ;;  %v3570_v12 = vpop.f32.mrf.mxu1  ;;  %4059 = vmatmul.mubr.bf16.gmra.mxu1 %v1415_v61  ;;  %v1419_v55 = vpack.c.bf16 %v1401_v20, %v1400_v9 }
 0x27e   : > { %v3676_v14 = vpop.f32.mrf.mxu0  ;;  %4062 = vmatprep.mubr.bf16.mxu1 %v1416_v48  ;;  %v2131_v25 = vadd.f32 %v3569_v36, %v5236_v18 }
 0x27f   : > { %v5322_v15 = vadd.f32 %v3675_v19, %v2123_v11  ;;  %v3571_v54 = vpop.f32.mrf.mxu1 }
 0x280   : > { %v3572_v5 = vadd.f32 %v3571_v54, %v3570_v12  ;;  %v3677_v53 = vpop.f32.mrf.mxu0  ;;  %v1404_v54 = vld [vmem:[#allocation2 + $0x19a] sm:$0xff] }
 0x281   : > { %v3678_v37 = vadd.f32 %v3677_v53, %v3676_v14  ;;  %v3573_v46 = vpop.f32.mrf.mxu1  ;;  %v1405_v53 = vld [vmem:[#allocation2 + $0x1a2] sm:$0xff] }
 0x282   : > { %v3679_v0 = vpop.f32.mrf.mxu0  ;;  %v2136_v56 = vadd.f32 %v3572_v5, %v5236_v18  ;;  %v4308_v5 = vld [vmem:[#allocation9 + $0x8] sm:$0xff]  }
 0x283   : > { %v5325_v44 = vadd.f32 %v3678_v37, %v2128_v8  ;;  %v3574_v62 = vpop.f32.mrf.mxu1  ;;  %4086 = vmatprep.subr.bf16.mxu0 %v4308_v5 }
 0x284   : > { %v3575_v6 = vadd.f32 %v3574_v62, %v3573_v46  ;;  %v3680_v27 = vpop.f32.mrf.mxu0  ;;  %4087 = vmatpush3.bf16.msra.mxu0 %v4308_v5 }
 0x285   : > { %v3681_v60 = vadd.f32 %v3680_v27, %v3679_v0  ;;  %v3576_v51 = vpop.f32.mrf.mxu1  ;;  %4063 = vmatmul.mubr.bf16.gmra.mxu1 %v1417_v39  ;;  %v1421_v0 = vpack.c.bf16 %v1405_v53, %v1404_v54 }
 0x286   : > { %v3682_v34 = vpop.f32.mrf.mxu0  ;;  %4066 = vmatprep.mubr.bf16.mxu1 %v1418_v4  ;;  %v2139_v19 = vadd.f32 %v3575_v6, %v5236_v18 }
 0x287   : > { %v5328_v32 = vadd.f32 %v3681_v60, %v2131_v25  ;;  %v3577_v28 = vpop.f32.mrf.mxu1 }
 0x288   : > { %v3578_v58 = vadd.f32 %v3577_v28, %v3576_v51  ;;  %v3683_v42 = vpop.f32.mrf.mxu0 }
 0x289   : > { %v3684_v47 = vadd.f32 %v3683_v42, %v3682_v34  ;;  %v3579_v7 = vpop.f32.mrf.mxu1 }
 0x28a   : > { %v3685_v40 = vpop.f32.mrf.mxu0  ;;  %v2144_v46 = vadd.f32 %v3578_v58, %v5236_v18 }
 0x28b   : > { %v5331_v61 = vadd.f32 %v3684_v47, %v2136_v56  ;;  %v3580_v36 = vpop.f32.mrf.mxu1 }
 0x28c   : > { %v3581_v48 = vadd.f32 %v3580_v36, %v3579_v7  ;;  %v3686_v11 = vpop.f32.mrf.mxu0 }
 0x28d   : > { %v3687_v12 = vadd.f32 %v3686_v11, %v3685_v40  ;;  %v3582_v14 = vpop.f32.mrf.mxu1  ;;  %4067 = vmatmul.mubr.bf16.gmra.mxu1 %v1419_v55 }
 0x28e   : > { %v3688_v24 = vpop.f32.mrf.mxu0  ;;  %4070 = vmatprep.mubr.bf16.mxu1 %v5280_v49  ;;  %v2147_v4 = vadd.f32 %v3581_v48, %v5236_v18 }
 0x28f   : > { %v5335_v16 = vadd.f32 %v3687_v12, %v2139_v19  ;;  %v3583_v1 = vpop.f32.mrf.mxu1 }
 0x290   : > { %v3584_v8 = vadd.f32 %v3583_v1, %v3582_v14  ;;  %v3689_v37 = vpop.f32.mrf.mxu0  ;;  %v4309_v14 = vld [vmem:[#allocation9] sm:$0xff]  }
 0x291   : > { %v3690_v31 = vadd.f32 %v3689_v37, %v3688_v24  ;;  %v3585_v13 = vpop.f32.mrf.mxu1  ;;  %4088 = vmatprep.subr.bf16.mxu0 %v4309_v14 }
 0x292   : > { %v3691_v62 = vpop.f32.mrf.mxu0  ;;  %v2152_v9 = vadd.f32 %v3584_v8, %v5236_v18  ;;  %4089 = vmatpush3.bf16.msra.mxu0 %v4309_v14 }
 0x293   : > { %v5338_v39 = vadd.f32 %v3690_v31, %v2144_v46  ;;  %v3586_v6 = vpop.f32.mrf.mxu1 }
 0x294   : > { %v3587_v49 = vadd.f32 %v3586_v6, %v3585_v13  ;;  %v3692_v27 = vpop.f32.mrf.mxu0 }
 0x295   : > { %v3693_v25 = vadd.f32 %v3692_v27, %v3691_v62  ;;  %v3588_v60 = vpop.f32.mrf.mxu1  ;;  %4071 = vmatmul.mubr.bf16.gmra.mxu1 %v1421_v0 }
 0x296   : > { %v3694_v51 = vpop.f32.mrf.mxu0  ;;  %v2155_v48 = vadd.f32 %v3587_v49, %v5236_v18 }
 0x297   : > { %v5341_v34 = vadd.f32 %v3693_v25, %v2147_v4  ;;  %v3589_v28 = vpop.f32.mrf.mxu1 }
 0x298   : > { %v3590_v58 = vadd.f32 %v3589_v28, %v3588_v60  ;;  %v3695_v42 = vpop.f32.mrf.mxu0 }
 0x299   : > { %v3696_v20 = vadd.f32 %v3695_v42, %v3694_v51  ;;  %v3591_v56 = vpop.f32.mrf.mxu1 }
 0x29a   : > { %v3697_v47 = vpop.f32.mrf.mxu0  ;;  %v2160_v1 = vadd.f32 %v3590_v58, %v5236_v18 }
 0x29b   : > { %v5344_v7 = vadd.f32 %v3696_v20, %v2152_v9  ;;  %v3592_v40 = vpop.f32.mrf.mxu1 }
 0x29c   : > { %v3593_v36 = vadd.f32 %v3592_v40, %v3591_v56  ;;  %v3698_v55 = vpop.f32.mrf.mxu0 }
 0x29d   : > { %v3699_v11 = vadd.f32 %v3698_v55, %v3697_v47  ;;  %v3722_v19 = vpop.f32.mrf.mxu1 }
 0x29e   : > { %v3700_v12 = vpop.f32.mrf.mxu0  ;;  %v2163_v49 = vadd.f32 %v3593_v36, %v5236_v18 }
 0x29f   : > { %v5347_v24 = vadd.f32 %v3699_v11, %v2155_v48  ;;  %v3723_v54 = vpop.f32.mrf.mxu1 }
 0x2a0   : > { %v3701_v53 = vpop.f32.mrf.mxu0  ;;  %v3724_v5 = vadd.f32 %v3723_v54, %v3722_v19 }
 0x2a1   : > { %v3702_v8 = vadd.f32 %v3701_v53, %v3700_v12  ;;  %v3725_v37 = vpop.f32.mrf.mxu1 }
 0x2a2   : > { %v2362_v46 = vadd.f32 %v3724_v5, %v5242_v35  ;;  %v3703_v31 = vpop.f32.mrf.mxu0 }
 0x2a3   : > { %v5351_v13 = vadd.f32 %v3702_v8, %v2160_v1  ;;  %v3726_v0 = vpop.f32.mrf.mxu1 }
 0x2a4   : > { %v3704_v62 = vpop.f32.mrf.mxu0  ;;  %v3727_v6 = vadd.f32 %v3726_v0, %v3725_v37 }
 0x2a5   : > { %v3705_v27 = vadd.f32 %v3704_v62, %v3703_v31  ;;  %v3728_v4 = vpop.f32.mrf.mxu1 }
 0x2a6   : > { %v2365_v25 = vadd.f32 %v3727_v6, %v5247_v57  ;;  %v3834_v60 = vpop.f32.mrf.mxu0 }
 0x2a7   : > { %v5355_v51 = vadd.f32 %v3705_v27, %v2163_v49  ;;  %v3729_v28 = vpop.f32.mrf.mxu1 }
 0x2a8   : > { %v3730_v58 = vadd.f32 %v3729_v28, %v3728_v4  ;;  %v3835_v42 = vpop.f32.mrf.mxu0 }
 0x2a9   : > { %5884 = vst [vmem:[#allocation18_spill] sm:$0xff] %v5355_v51  ;;  %v3836_v9 = vadd.f32 %v3835_v42, %v3834_v60  ;;  %v3731_v35 = vpop.f32.mrf.mxu1 }
 0x2aa   : > { %v5358_v20 = vadd.f32 %v3730_v58, %v5250_v63  ;;  %v3837_v56 = vpop.f32.mrf.mxu0 }
 0x2ab   : > { %v3732_v47 = vpop.f32.mrf.mxu1  ;;  %v5360_v40 = vadd.f32 %v3836_v9, %v2362_v46 }
 0x2ac   : > { %v3733_v18 = vadd.f32 %v3732_v47, %v3731_v35  ;;  %v3838_v36 = vpop.f32.mrf.mxu0 }
 0x2ad   : > { %v3839_v55 = vadd.f32 %v3838_v36, %v3837_v56  ;;  %v3734_v48 = vpop.f32.mrf.mxu1 }
 0x2ae   : > { %v5363_v57 = vadd.f32 %v3733_v18, %v5255_v41  ;;  %v5365_v11 = vpop.f32.mrf.mxu0 }
 0x2af   : > { %v3735_v19 = vpop.f32.mrf.mxu1  ;;  %v5367_v12 = vadd.f32 %v3839_v55, %v2365_v25 }
 0x2b0   : > { %v3736_v14 = vadd.f32 %v3735_v19, %v3734_v48  ;;  %v5369_v54 = vpop.f32.mrf.mxu0 }
 0x2b1   : > { %v3737_v63 = vpop.f32.mrf.mxu1 }
 0x2b2   : > { %v5372_v53 = vadd.f32 %v3736_v14, %v5259_v52  ;;  %v5374_v5 = vpop.f32.mrf.mxu0 }
 0x2b3   : > { %v3738_v1 = vpop.f32.mrf.mxu1 }
 0x2b4   : > { %v3739_v8 = vadd.f32 %v3738_v1, %v3737_v63  ;;  %v5376_v37 = vpop.f32.mrf.mxu0 }
 0x2b5   : > { %v3740_v41 = vpop.f32.mrf.mxu1 }
 0x2b6   : > { %v5379_v46 = vadd.f32 %v3739_v8, %v5265_v26  ;;  %v5381_v31 = vpop.f32.mrf.mxu0 }
 0x2b7   : > { %v3741_v0 = vpop.f32.mrf.mxu1 }
 0x2b8   : > { %v3742_v62 = vadd.f32 %v3741_v0, %v3740_v41  ;;  %v5383_v6 = vpop.f32.mrf.mxu0 }
 0x2b9   : > { %v3743_v49 = vpop.f32.mrf.mxu1 }
 0x2ba   : > { %v5386_v52 = vadd.f32 %v3742_v62, %v5268_v43  ;;  %v5388_v27 = vpop.f32.mrf.mxu0 }
 0x2bb   : > { %v3744_v4 = vpop.f32.mrf.mxu1 }
 0x2bc   : > { %v3745_v25 = vadd.f32 %v3744_v4, %v3743_v49  ;;  %v5390_v60 = vpop.f32.mrf.mxu0 }
 0x2bd   : > { %v3746_v28 = vpop.f32.mrf.mxu1 }
 0x2be   : > { %v5393_v26 = vadd.f32 %v3745_v25, %v5273_v50  ;;  %v5395_v58 = vpop.f32.mrf.mxu0 }
 0x2bf   : > { %v3747_v42 = vpop.f32.mrf.mxu1 }
 0x2c0   : > { %v3748_v9 = vadd.f32 %v3747_v42, %v3746_v28  ;;  %v5397_v35 = vpop.f32.mrf.mxu0 }
 0x2c1   : > { %v3749_v56 = vpop.f32.mrf.mxu1 }
 0x2c2   : > { %v5400_v43 = vadd.f32 %v3748_v9, %v5277_v45  ;;  %v5402_v47 = vpop.f32.mrf.mxu0 }
 0x2c3   : > { %v3750_v18 = vpop.f32.mrf.mxu1 }
 0x2c4   : > { %v3751_v36 = vadd.f32 %v3750_v18, %v3749_v56  ;;  %v5404_v55 = vpop.f32.mrf.mxu0 }
 0x2c5   : > { %v3752_v48 = vpop.f32.mrf.mxu1 }
 0x2c6   : > { %v5407_v50 = vadd.f32 %v3751_v36, %v5285_v23  ;;  %v5409_v19 = vpop.f32.mrf.mxu0 }
 0x2c7   : > { %v3753_v14 = vpop.f32.mrf.mxu1 }
 0x2c8   : > { %5885 = vst [vmem:[#allocation19_spill] sm:$0xff] %v5407_v50  ;;  %v3754_v63 = vadd.f32 %v3753_v14, %v3752_v48  ;;  %v5411_v1 = vpop.f32.mrf.mxu0 }
 0x2c9   : > { %v3755_v8 = vpop.f32.mrf.mxu1 }
 0x2ca   : > { %v5414_v45 = vadd.f32 %v3754_v63, %v5288_v22  ;;  %v5416_v41 = vpop.f32.mrf.mxu0 }
 0x2cb   : > { %v3756_v0 = vpop.f32.mrf.mxu1 }
 0x2cc   : > { %v3757_v62 = vadd.f32 %v3756_v0, %v3755_v8  ;;  %v5418_v49 = vpop.f32.mrf.mxu0 }
 0x2cd   : > { %v3758_v4 = vpop.f32.mrf.mxu1 }
 0x2ce   : > { %v5421_v23 = vadd.f32 %v3757_v62, %v5292_v33  ;;  %v5423_v25 = vpop.f32.mrf.mxu0 }
 0x2cf   : > { %v3759_v28 = vpop.f32.mrf.mxu1 }
 0x2d0   : > { %v3760_v42 = vadd.f32 %v3759_v28, %v3758_v4  ;;  %v5425_v9 = vpop.f32.mrf.mxu0 }
 0x2d1   : > { %v3761_v56 = vpop.f32.mrf.mxu1 }
 0x2d2   : > { %v5428_v22 = vadd.f32 %v3760_v42, %v5295_v10  ;;  %v5430_v18 = vpop.f32.mrf.mxu0 }
 0x2d3   : > { %v3762_v36 = vpop.f32.mrf.mxu1 }
 0x2d4   : > { %5886 = vst [vmem:[#allocation20_spill] sm:$0xff] %v5428_v22  ;;  %v3763_v48 = vadd.f32 %v3762_v36, %v3761_v56  ;;  %v5432_v14 = vpop.f32.mrf.mxu0 }
 0x2d5   : > { %v3764_v63 = vpop.f32.mrf.mxu1 }
 0x2d6   : > { %v5435_v33 = vadd.f32 %v3763_v48, %v5298_v29  ;;  %v5437_v8 = vpop.f32.mrf.mxu0 }
 0x2d7   : > { %v3765_v0 = vpop.f32.mrf.mxu1 }
 0x2d8   : > { %5887 = vst [vmem:[#allocation21_spill] sm:$0xff] %v5435_v33  ;;  %v3766_v62 = vadd.f32 %v3765_v0, %v3764_v63  ;;  %v5439_v4 = vpop.f32.mrf.mxu0 }
 0x2d9   : > { %v3767_v28 = vpop.f32.mrf.mxu1 }
 0x2da   : > { %v5442_v10 = vadd.f32 %v3766_v62, %v5301_v38  ;;  %v5444_v42 = vpop.f32.mrf.mxu0 }
 0x2db   : > { %5889 = vst [vmem:[#allocation23_spill] sm:$0xff] %v5444_v42  ;;  %v3768_v51 = vpop.f32.mrf.mxu1 }
 0x2dc   : > { %5888 = vst [vmem:[#allocation22_spill] sm:$0xff] %v5442_v10  ;;  %v3769_v56 = vadd.f32 %v3768_v51, %v3767_v28  ;;  %v5446_v36 = vpop.f32.mrf.mxu0 }
 0x2dd   : > { %5890 = vst [vmem:[#allocation24_spill] sm:$0xff] %v5446_v36  ;;  %v3770_v22 = vpop.f32.mrf.mxu1 }
 0x2de   : > { %v5449_v29 = vadd.f32 %v3769_v56, %v5304_v30  ;;  %v5451_v48 = vpop.f32.mrf.mxu0 }
 0x2df   : > { %v3771_v33 = vpop.f32.mrf.mxu1 }
 0x2e0   : > { %5891 = vst [vmem:[#allocation25_spill] sm:$0xff] %v5449_v29  ;;  %v3772_v63 = vadd.f32 %v3771_v33, %v3770_v22  ;;  %v5453_v0 = vpop.f32.mrf.mxu0 }
 0x2e1   : > { %v3773_v50 = vpop.f32.mrf.mxu1 }
 0x2e2   : > { %v5456_v38 = vadd.f32 %v3772_v63, %v5307_v17  ;;  %v5458_v62 = vpop.f32.mrf.mxu0 }
 0x2e3   : > { %v3774_v42 = vpop.f32.mrf.mxu1 }
 0x2e4   : > { %5892 = vst [vmem:[#allocation26_spill] sm:$0xff] %v5456_v38  ;;  %v3775_v51 = vadd.f32 %v3774_v42, %v3773_v50  ;;  %v5460_v28 = vpop.f32.mrf.mxu0 }
 0x2e5   : > { %5893 = vst [vmem:[#allocation27_spill] sm:$0xff] %v5460_v28  ;;  %v3776_v36 = vpop.f32.mrf.mxu1 }
 0x2e6   : > { %v5463_v30 = vadd.f32 %v3775_v51, %v5310_v3  ;;  %v5465_v56 = vpop.f32.mrf.mxu0 }
 0x2e7   : > { %v3777_v29 = vpop.f32.mrf.mxu1 }
 0x2e8   : > { %5894 = vst [vmem:[#allocation28_spill] sm:$0xff] %v5463_v30  ;;  %v3778_v22 = vadd.f32 %v3777_v29, %v3776_v36  ;;  %v5467_v33 = vpop.f32.mrf.mxu0 }
 0x2e9   : > { %5895 = vst [vmem:[#allocation29_spill] sm:$0xff] %v5467_v33  ;;  %v3779_v10 = vpop.f32.mrf.mxu1 }
 0x2ea   : > { %v5470_v17 = vadd.f32 %v3778_v22, %v5313_v2  ;;  %v5472_v63 = vpop.f32.mrf.mxu0 }
 0x2eb   : > { %5897 = vst [vmem:[#allocation31_spill] sm:$0xff] %v5472_v63  ;;  %v3780_v38 = vpop.f32.mrf.mxu1 }
 0x2ec   : > { %5896 = vst [vmem:[#allocation30_spill] sm:$0xff] %v5470_v17  ;;  %v3781_v50 = vadd.f32 %v3780_v38, %v3779_v10  ;;  %v5474_v42 = vpop.f32.mrf.mxu0 }
 0x2ed   : > { %5898 = vst [vmem:[#allocation32_spill] sm:$0xff] %v5474_v42  ;;  %v3782_v28 = vpop.f32.mrf.mxu1 }
 0x2ee   : > { %v5477_v3 = vadd.f32 %v3781_v50, %v5316_v21  ;;  %v5479_v51 = vpop.f32.mrf.mxu0 }
 0x2ef   : > { %v3783_v30 = vpop.f32.mrf.mxu1 }
 0x2f0   : > { %5899 = vst [vmem:[#allocation33_spill] sm:$0xff] %v5477_v3  ;;  %v3784_v36 = vadd.f32 %v3783_v30, %v3782_v28  ;;  %v5481_v29 = vpop.f32.mrf.mxu0 }
 0x2f1   : > { %v3785_v33 = vpop.f32.mrf.mxu1 }
 0x2f2   : > { %v5484_v2 = vadd.f32 %v3784_v36, %v5319_v59  ;;  %v5486_v22 = vpop.f32.mrf.mxu0 }
 0x2f3   : > { %v3786_v63 = vpop.f32.mrf.mxu1 }
 0x2f4   : > { %5900 = vst [vmem:[#allocation34_spill] sm:$0xff] %v5484_v2  ;;  %v3787_v10 = vadd.f32 %v3786_v63, %v3785_v33  ;;  %v5488_v38 = vpop.f32.mrf.mxu0 }
 0x2f5   : > { %5901 = vst [vmem:[#allocation35_spill] sm:$0xff] %v5488_v38  ;;  %v3788_v42 = vpop.f32.mrf.mxu1 }
 0x2f6   : > { %v5491_v21 = vadd.f32 %v3787_v10, %v5322_v15  ;;  %v5493_v50 = vpop.f32.mrf.mxu0 }
 0x2f7   : > { %5903 = vst [vmem:[#allocation37_spill] sm:$0xff] %v5493_v50  ;;  %v3789_v3 = vpop.f32.mrf.mxu1 }
 0x2f8   : > { %5902 = vst [vmem:[#allocation36_spill] sm:$0xff] %v5491_v21  ;;  %v3790_v28 = vadd.f32 %v3789_v3, %v3788_v42  ;;  %v5495_v30 = vpop.f32.mrf.mxu0 }
 0x2f9   : > { %5904 = vst [vmem:[#allocation38_spill] sm:$0xff] %v5495_v30  ;;  %v3791_v17 = vpop.f32.mrf.mxu1 }
 0x2fa   : > { %v5498_v59 = vadd.f32 %v3790_v28, %v5325_v44  ;;  %v5500_v2 = vpop.f32.mrf.mxu0 }
 0x2fb   : > { %v3792_v36 = vpop.f32.mrf.mxu1  ;;  %5905 = vst [vmem:[#allocation39_spill] sm:$0xff] %v5500_v2 }
 0x2fc   : > { %v3793_v33 = vadd.f32 %v3792_v36, %v3791_v17  ;;  %v5505_v10 = vpop.f32.mrf.mxu0 }
 0x2fd   : > { %v3794_v63 = vpop.f32.mrf.mxu1 }
 0x2fe   : > { %v5503_v38 = vadd.f32 %v3793_v33, %v5328_v32  ;;  %v5510_v30 = vpop.f32.mrf.mxu0 }
 0x2ff   : > { %v3795_v15 = vpop.f32.mrf.mxu1 }
 0x300   : > { %5906 = vst [vmem:[#allocation40_spill] sm:$0xff] %v5503_v38  ;;  %v3796_v21 = vadd.f32 %v3795_v15, %v3794_v63  ;;  %v5515_v36 = vpop.f32.mrf.mxu0 }
 0x301   : > { %v3797_v50 = vpop.f32.mrf.mxu1 }
 0x302   : > { %v5508_v42 = vadd.f32 %v3796_v21, %v5331_v61  ;;  %v5520_v15 = vpop.f32.mrf.mxu0 }
 0x303   : > { %v3798_v3 = vpop.f32.mrf.mxu1 }
 0x304   : > { %5907 = vst [vmem:[#allocation41_spill] sm:$0xff] %v5508_v42  ;;  %v3799_v44 = vadd.f32 %v3798_v3, %v3797_v50  ;;  %v5525_v3 = vpop.f32.mrf.mxu0 }
 0x305   : > { %v3800_v28 = vpop.f32.mrf.mxu1 }
 0x306   : > { %v5513_v2 = vadd.f32 %v3799_v44, %v5335_v16 }
 0x307   : > { %v3801_v17 = vpop.f32.mrf.mxu1 }
 0x308   : > { %5908 = vst [vmem:[#allocation42_spill] sm:$0xff] %v5513_v2  ;;  %v3802_v32 = vadd.f32 %v3801_v17, %v3800_v28  ;;  %v5530_v17 = vpop.f32.mrf.mxu0 }
 0x309   : > { %v3803_v33 = vpop.f32.mrf.mxu1 }
 0x30a   : > { %v5518_v38 = vadd.f32 %v3802_v32, %v5338_v39 }
 0x30b   : > { %v3804_v63 = vpop.f32.mrf.mxu1 }
 0x30c   : > { %5909 = vst [vmem:[#allocation43_spill] sm:$0xff] %v5518_v38  ;;  %v3805_v61 = vadd.f32 %v3804_v63, %v3803_v33  ;;  %v5537_v63 = vpop.f32.mrf.mxu0 }
 0x30d   : > { %v3806_v21 = vpop.f32.mrf.mxu1 }
 0x30e   : > { %v5523_v42 = vadd.f32 %v3805_v61, %v5341_v34  ;;  %v3842_v34 = vadd.f32 %v5369_v54, %v5365_v11  ;;  %v5554_v11 = vld [vmem:[%s5855_s9] ss:$0 sm:$0xff] }
 0x30f   : > { %v3807_v50 = vpop.f32.mrf.mxu1 }
 0x310   : > { %v3808_v16 = vadd.f32 %v3807_v50, %v3806_v21 }
 0x311   : > { %v3809_v44 = vpop.f32.mrf.mxu1 }
 0x312   : > { %v5528_v2 = vadd.f32 %v3808_v16, %v5344_v7  ;;  %v3845_v16 = vadd.f32 %v5376_v37, %v5374_v5 }
 0x313   : > { %v3810_v28 = vpop.f32.mrf.mxu1 }
 0x314   : > { %5910 = vst [vmem:[#allocation44_spill] sm:$0xff] %v5528_v2  ;;  %v3811_v39 = vadd.f32 %v3810_v28, %v3809_v44  ;;  %v5548_v44 = vpop.f32.mrf.mxu0  ;;  %v2534_v5 = vadd.f32 %v3845_v16, %v5363_v57 }
 0x315   : > { %v3812_v32 = vpop.f32.mrf.mxu1 }
 0x316   : > { %v5533_v38 = vadd.f32 %v3811_v39, %v5347_v24  ;;  %v2531_v24 = vadd.f32 %v3842_v34, %v5358_v20  ;;  %v3848_v20 = vadd.f32 %v5383_v6, %v5381_v31  ;;  %v3851_v6 = vadd.f32 %v5390_v60, %v5388_v27 }
 0x317   : > { %v3813_v33 = vpop.f32.mrf.mxu1 }
 0x318   : > { %5911 = vst [vmem:[#allocation45_spill] sm:$0xff] %v5533_v38  ;;  %v3814_v61 = vadd.f32 %v3813_v33, %v3812_v32  ;;  %v5558_v32 = vpop.f32.mrf.mxu0 }
 0x319   : > { %v5539_v21 = vpop.f32.mrf.mxu1 }
 0x31a   : > { %v5542_v7 = vadd.f32 %v3814_v61, %v5351_v13  ;;  %v3854_v13 = vadd.f32 %v5397_v35, %v5395_v58  ;;  %v5568_v35 = vpop.f32.mrf.mxu0 }
 0x31b   : > { %v5544_v50 = vpop.f32.mrf.mxu1 }
 0x31c   : > { %v2547_v58 = vadd.f32 %v3854_v13, %v5386_v52  ;;  %v5579_v2 = vpop.f32.mrf.mxu0 }
 0x31d   : > { %v4044_v28 = vpop.f32.mrf.mxu1 }
 0x31e   : > { %v2692_v39 = vadd.f32 %v4044_v28, %v2531_v24  ;;  %v3857_v24 = vadd.f32 %v5404_v55, %v5402_v47  ;;  %v2539_v47 = vadd.f32 %v3848_v20, %v5372_v53  ;;  %v3860_v53 = vadd.f32 %v5411_v1, %v5409_v19 }
 0x31f   : > { %v2683_v54 = vpop.f32.mrf.mxu1 }
 0x320   : > { %v2684_v33 = vadd.f32 %v2683_v54, %v5360_v40  ;;  %v2851_v37 = vmul.f32 %v5554_v11, %v2692_v39  ;;  %vm2812_vm0 = vcmp.ge.f32.partialorder %v2692_v39, 0.0  ;;  %v2550_v27 = vadd.f32 %v3857_v24, %v5393_v26 }
 0x321   : > { %v4045_v34 = vpop.f32.mrf.mxu1  ;;  %v3863_v24 = vadd.f32 %v5418_v49, %v5416_v41 }
 0x322   : > { %v2695_v61 = vadd.f32 %v4045_v34, %v2534_v5  ;;  %v2849_v40 = vmul.f32 %v5554_v11, %v2684_v33  ;;  %v2883_v16 = vsel %vm2812_vm0, %v2692_v39, %v2851_v37  ;;  %vm2810_vm2 = vcmp.ge.f32.partialorder %v2684_v33, 0.0 }
 0x323   : > { %v2686_v28 = vpop.f32.mrf.mxu1  ;;  %v3866_v5 = vadd.f32 %v5425_v9, %v5423_v25  ;;  %v2542_v25 = vadd.f32 %v3851_v6, %v5379_v46  ;;  %v3869_v9 = vadd.f32 %v5432_v14, %v5430_v18  ;;  %v2555_v18 = vadd.f32 %v3860_v53, %v5400_v43  ;;  %v5914_v53 = vld [vmem:[#allocation22_spill] sm:$0xff] }
 0x324   : > { %vm2813_vm1 = vcmp.ge.f32.partialorder %v2695_v61, 0.0  ;;  %v2852_v57 = vmul.f32 %v5554_v11, %v2695_v61  ;;  %v2687_v31 = vadd.f32 %v2686_v28, %v5367_v12  ;;  %v2881_v60 = vsel %vm2810_vm2, %v2684_v33, %v2849_v40 }
 0x325   : > { %v4048_v54 = vpop.f32.mrf.mxu1  ;;  %v2563_v26 = vadd.f32 %v3866_v5, %v5414_v45  ;;  %v2566_v41 = vadd.f32 %v3869_v9, %v5421_v23  ;;  %v3872_v43 = vadd.f32 %v5439_v4, %v5437_v8 }
 0x326   : > { %v2884_v55 = vsel %vm2813_vm1, %v2695_v61, %v2852_v57  ;;  %vm2811_vm3 = vcmp.ge.f32.partialorder %v2687_v31, 0.0  ;;  %v2850_v52 = vmul.f32 %v5554_v11, %v2687_v31  ;;  %v2708_v13 = vadd.f32 %v4048_v54, %v2547_v58 }
 0x327   : > { %v2914_v34 = vpack.c.bf16 %v2884_v55, %v2883_v16  ;;  %v2699_v38 = vpop.f32.mrf.mxu1 }
 0x328   : > { %v2700_v12 = vadd.f32 %v2699_v38, %v2539_v47  ;;  %v2882_v39 = vsel %vm2811_vm3, %v2687_v31, %v2850_v52  ;;  %v2855_v20 = vmul.f32 %v5554_v11, %v2708_v13  ;;  %vm2816_vm4 = vcmp.ge.f32.partialorder %v2708_v13, 0.0  ;;  %v5589_v38 = vpop.f32.mrf.mxu0 }
 0x329   : > { %v4049_v37 = vpop.f32.mrf.mxu1  ;;  %v2913_v61 = vpack.c.bf16 %v2882_v39, %v2881_v60  ;;  %v3878_v31 = vadd.f32 %v5453_v0, %v5451_v48  ;;  %v5913_v0 = vld [vmem:[#allocation27_spill] sm:$0xff] }
 0x32a   : > { %v2711_v28 = vadd.f32 %v4049_v37, %v2550_v27  ;;  %v2853_v33 = vmul.f32 %v5554_v11, %v2700_v12  ;;  %v2887_v46 = vsel %vm2816_vm4, %v2708_v13, %v2855_v20  ;;  %vm2814_vm6 = vcmp.ge.f32.partialorder %v2700_v12, 0.0  ;;  %v5599_v54 = vpop.f32.mrf.mxu0  ;;  %v5912_v27 = vld [vmem:[#allocation19_spill] sm:$0xff] }
 0x32b   : > { %v2702_v58 = vpop.f32.mrf.mxu1  ;;  %4090 = vmatprep.mubr.bf16.mxu0 %v2913_v61  ;;  %v2558_v48 = vadd.f32 %v3863_v24, %v5912_v27  ;;  %v3881_v60 = vadd.f32 %v5913_v0, %v5458_v62  ;;  %v2579_v23 = vadd.f32 %v3878_v31, %v5914_v53  ;;  %v5915_v37 = vld [vmem:[#allocation23_spill] sm:$0xff]  ;;  %v5916_v61 = vld [vmem:[#allocation24_spill] sm:$0xff] }
 0x32c   : > { %vm2817_vm5 = vcmp.ge.f32.partialorder %v2711_v28, 0.0  ;;  %v2856_v19 = vmul.f32 %v5554_v11, %v2711_v28  ;;  %v2703_v1 = vadd.f32 %v2702_v58, %v2542_v25  ;;  %4091 = vmatmul.mubr.bf16.vlgmr.msra.gmra.mxu0 %v2914_v34  ;;  %v2885_v49 = vsel %vm2814_vm6, %v2700_v12, %v2853_v33  ;;  %v5609_v12 = vpop.f32.mrf.mxu0  ;;  %v5917_v62 = vld [vmem:[#allocation20_spill] sm:$0xff] }
 0x32d   : > { %v4052_v40 = vpop.f32.mrf.mxu1  ;;  %v2571_v58 = vadd.f32 %v3872_v43, %v5917_v62 }
 0x32e   : > { %v2888_v14 = vsel %vm2817_vm5, %v2711_v28, %v2856_v19  ;;  %vm2815_vm7 = vcmp.ge.f32.partialorder %v2703_v1, 0.0  ;;  %v2854_v45 = vmul.f32 %v5554_v11, %v2703_v1  ;;  %v2724_v57 = vadd.f32 %v4052_v40, %v2563_v26  ;;  %v5619_v40 = vpop.f32.mrf.mxu0 }
 0x32f   : > { %v2916_v6 = vpack.c.bf16 %v2888_v14, %v2887_v46  ;;  %v2715_v16 = vpop.f32.mrf.mxu1  ;;  %v3875_v28 = vadd.f32 %v5916_v61, %v5915_v37  ;;  %v5918_v14 = vld [vmem:[#allocation25_spill] sm:$0xff] }
 0x330   : > { %v2716_v47 = vadd.f32 %v2715_v16, %v2555_v18  ;;  %v2886_v55 = vsel %vm2815_vm7, %v2703_v1, %v2854_v45  ;;  %v2859_v52 = vmul.f32 %v5554_v11, %v2724_v57  ;;  %vm2820_vm8 = vcmp.ge.f32.partialorder %v2724_v57, 0.0 }
 0x331   : > { %v4053_v13 = vpop.f32.mrf.mxu1  ;;  %v2915_v5 = vpack.c.bf16 %v2886_v55, %v2885_v49  ;;  %v3890_v1 = vadd.f32 %v5481_v29, %v5479_v51  ;;  %v2582_v45 = vadd.f32 %v3881_v60, %v5918_v14  ;;  %v5921_v29 = vld [vmem:[#allocation35_spill] sm:$0xff] }
 0x332   : > { %v2727_v34 = vadd.f32 %v4053_v13, %v2566_v41  ;;  %v2857_v20 = vmul.f32 %v5554_v11, %v2716_v47  ;;  %v2891_v25 = vsel %vm2820_vm8, %v2724_v57, %v2859_v52  ;;  %vm2818_vm10 = vcmp.ge.f32.partialorder %v2716_v47, 0.0  ;;  %v5920_v52 = vld [vmem:[#allocation21_spill] sm:$0xff]  ;;  %v5923_v60 = vld [vmem:[#allocation31_spill] sm:$0xff] }
 0x333   : > { %v2718_v39 = vpop.f32.mrf.mxu1  ;;  %4094 = vmatprep.mubr.bf16.mxu0 %v2915_v5  ;;  %v2574_v51 = vadd.f32 %v3875_v28, %v5920_v52  ;;  %v3893_v13 = vadd.f32 %v5921_v29, %v5486_v22  ;;  %v5925_v22 = vld [vmem:[#allocation26_spill] sm:$0xff]  ;;  %v3902_v28 = vadd.f32 %v5515_v36, %v5510_v30  ;;  %v3905_v36 = vadd.f32 %v5525_v3, %v5520_v15 }
 0x334   : > { %vm2821_vm9 = vcmp.ge.f32.partialorder %v2727_v34, 0.0  ;;  %v2860_v8 = vmul.f32 %v5554_v11, %v2727_v34  ;;  %v2719_v4 = vadd.f32 %v2718_v39, %v2558_v48  ;;  %4095 = vmatmul.mubr.bf16.gmra.mxu0 %v2916_v6  ;;  %v2889_v57 = vsel %vm2818_vm10, %v2716_v47, %v2857_v20  ;;  %v5919_v6 = vld [vmem:[#allocation29_spill] sm:$0xff]  ;;  %v5629_v47 = vpop.f32.mrf.mxu0  ;;  %v5924_v39 = vld [vmem:[#allocation32_spill] sm:$0xff] }
 0x335   : > { %v4056_v9 = vpop.f32.mrf.mxu1  ;;  %v3884_v16 = vadd.f32 %v5919_v6, %v5465_v56  ;;  %v3887_v53 = vadd.f32 %v5924_v39, %v5923_v60 }
 0x336   : > { %v2892_v26 = vsel %vm2821_vm9, %v2727_v34, %v2860_v8  ;;  %vm2819_vm11 = vcmp.ge.f32.partialorder %v2719_v4, 0.0  ;;  %v2858_v33 = vmul.f32 %v5554_v11, %v2719_v4  ;;  %v2740_v19 = vadd.f32 %v4056_v9, %v2579_v23  ;;  %v5922_v34 = vld [vmem:[#allocation30_spill] sm:$0xff]  ;;  %v5639_v62 = vpop.f32.mrf.mxu0 }
 0x337   : > { %v2918_v24 = vpack.c.bf16 %v2892_v26, %v2891_v25  ;;  %v2731_v46 = vpop.f32.mrf.mxu1  ;;  %v2595_v27 = vadd.f32 %v3890_v1, %v5922_v34  ;;  %v2587_v8 = vadd.f32 %v3884_v16, %v5925_v22  ;;  %v5926_v26 = vld [vmem:[#allocation33_spill] sm:$0xff]  ;;  %v5929_v16 = vld [vmem:[#allocation28_spill] sm:$0xff]  ;;  %v5931_v34 = vld [vmem:[#allocation34_spill] sm:$0xff]  ;;  %v3908_v22 = vadd.f32 %v5537_v63, %v5530_v17 }
 0x338   : > { %v2732_v18 = vadd.f32 %v2731_v46, %v2571_v58  ;;  %v2890_v31 = vsel %vm2819_vm11, %v2719_v4, %v2858_v33  ;;  %v2863_v41 = vmul.f32 %v5554_v11, %v2740_v19  ;;  %vm2824_vm12 = vcmp.ge.f32.partialorder %v2740_v19, 0.0  ;;  %v5928_v46 = vld [vmem:[#allocation38_spill] sm:$0xff] }
 0x339   : > { %v4057_v49 = vpop.f32.mrf.mxu1  ;;  %v2917_v55 = vpack.c.bf16 %v2890_v31, %v2889_v57  ;;  %v2598_v33 = vadd.f32 %v3893_v13, %v5926_v26  ;;  %v2590_v30 = vadd.f32 %v3887_v53, %v5929_v16  ;;  %v5932_v53 = vld [vmem:[#allocation40_spill] sm:$0xff] }
 0x33a   : > { %v2743_v43 = vadd.f32 %v4057_v49, %v2582_v45  ;;  %v2861_v48 = vmul.f32 %v5554_v11, %v2732_v18  ;;  %v2895_v23 = vsel %vm2824_vm12, %v2740_v19, %v2863_v41  ;;  %vm2822_vm14 = vcmp.ge.f32.partialorder %v2732_v18, 0.0 }
 0x33b   : > { %v2734_v5 = vpop.f32.mrf.mxu1  ;;  %4098 = vmatprep.mubr.bf16.mxu0 %v2917_v55  ;;  %v2611_v49 = vadd.f32 %v3902_v28, %v5498_v59  ;;  %v5933_v28 = vld [vmem:[#allocation36_spill] sm:$0xff] }
 0x33c   : > { %vm2825_vm13 = vcmp.ge.f32.partialorder %v2743_v43, 0.0  ;;  %v2864_v56 = vmul.f32 %v5554_v11, %v2743_v43  ;;  %v2735_v0 = vadd.f32 %v2734_v5, %v2574_v51  ;;  %4099 = vmatmul.mubr.bf16.gmra.mxu0 %v2918_v24  ;;  %v2893_v19 = vsel %vm2822_vm14, %v2732_v18, %v2861_v48  ;;  %v5927_v24 = vld [vmem:[#allocation37_spill] sm:$0xff]  ;;  %v3924_v18 = vpop.f32.mrf.mxu0  ;;  %v5930_v51 = vld [vmem:[#allocation39_spill] sm:$0xff] }
 0x33d   : > { %v4060_v20 = vpop.f32.mrf.mxu1  ;;  %v3896_v14 = vadd.f32 %v5928_v46, %v5927_v24  ;;  %v3899_v29 = vadd.f32 %v5505_v10, %v5930_v51  ;;  %v3914_v48 = vadd.f32 %v5579_v2, %v5568_v35  ;;  %v3917_v2 = vadd.f32 %v5599_v54, %v5589_v38  ;;  %v5935_v46 = vld [vmem:[#allocation41_spill] sm:$0xff] }
 0x33e   : > { %v2896_v4 = vsel %vm2825_vm13, %v2743_v43, %v2864_v56  ;;  %vm2823_vm15 = vcmp.ge.f32.partialorder %v2735_v0, 0.0  ;;  %v2862_v37 = vmul.f32 %v5554_v11, %v2735_v0  ;;  %v2756_v61 = vadd.f32 %v4060_v20, %v2595_v27  ;;  %v3925_v60 = vpop.f32.mrf.mxu0 }
 0x33f   : > { %v2920_v25 = vpack.c.bf16 %v2896_v4, %v2895_v23  ;;  %v2747_v9 = vpop.f32.mrf.mxu1  ;;  %v2603_v15 = vadd.f32 %v3896_v14, %v5931_v34  ;;  %v2614_v23 = vadd.f32 %v3905_v36, %v5932_v53  ;;  %v2619_v38 = vadd.f32 %v3908_v22, %v5935_v46 }
 0x340   : > { %v2748_v58 = vadd.f32 %v2747_v9, %v2587_v8  ;;  %v2894_v1 = vsel %vm2823_vm15, %v2735_v0, %v2862_v37  ;;  %v2867_v45 = vmul.f32 %v5554_v11, %v2756_v61  ;;  %vm2828_vm0 = vcmp.ge.f32.partialorder %v2756_v61, 0.0  ;;  %v5934_v9 = vld [vmem:[#allocation43_spill] sm:$0xff] }
 0x341   : > { %v4061_v57 = vpop.f32.mrf.mxu1  ;;  %v2919_v31 = vpack.c.bf16 %v2894_v1, %v2893_v19  ;;  %v2627_v26 = vadd.f32 %v3914_v48, %v5934_v9  ;;  %v3911_v19 = vadd.f32 %v5558_v32, %v5548_v44  ;;  %v2630_v44 = vadd.f32 %v3917_v2, %v5523_v42 }
 0x342   : > { %v2759_v6 = vadd.f32 %v4061_v57, %v2598_v33  ;;  %v2865_v55 = vmul.f32 %v5554_v11, %v2748_v58  ;;  %v2899_v13 = vsel %vm2828_vm0, %v2756_v61, %v2867_v45  ;;  %vm2826_vm2 = vcmp.ge.f32.partialorder %v2748_v58, 0.0 }
 0x343   : > { %v2750_v41 = vpop.f32.mrf.mxu1  ;;  %4102 = vmatprep.mubr.bf16.mxu0 %v2919_v31  ;;  %v3920_v57 = vadd.f32 %v5619_v40, %v5609_v12  ;;  %v3926_v31 = vadd.f32 %v3925_v60, %v3924_v18 }
 0x344   : > { %vm2829_vm1 = vcmp.ge.f32.partialorder %v2759_v6, 0.0  ;;  %v2868_v43 = vmul.f32 %v5554_v11, %v2759_v6  ;;  %v2751_v52 = vadd.f32 %v2750_v41, %v2590_v30  ;;  %4103 = vmatmul.mubr.bf16.gmra.mxu0 %v2920_v25  ;;  %v2897_v10 = vsel %vm2826_vm2, %v2748_v58, %v2865_v55  ;;  %v3927_v58 = vpop.f32.mrf.mxu0 }
 0x345   : > { %v4064_v5 = vpop.f32.mrf.mxu1  ;;  %v2606_v25 = vadd.f32 %v3899_v29, %v5933_v28  ;;  %v5936_v29 = vld [vmem:[#allocation42_spill] sm:$0xff] }
 0x346   : > { %v2900_v3 = vsel %vm2829_vm1, %v2759_v6, %v2868_v43  ;;  %vm2827_vm3 = vcmp.ge.f32.partialorder %v2751_v52, 0.0  ;;  %v2866_v59 = vmul.f32 %v5554_v11, %v2751_v52  ;;  %v2772_v27 = vadd.f32 %v4064_v5, %v2611_v49  ;;  %v3928_v30 = vpop.f32.mrf.mxu0  ;;  %v5937_v5 = vld [vmem:[#allocation44_spill] sm:$0xff] }
 0x347   : > { %v2922_v56 = vpack.c.bf16 %v2900_v3, %v2899_v13  ;;  %v2763_v0 = vpop.f32.mrf.mxu1  ;;  %v3817_v49 = vadd.f32 %v5544_v50, %v5539_v21  ;;  %v2622_v12 = vadd.f32 %v3911_v19, %v5936_v29  ;;  %v3929_v40 = vadd.f32 %v3928_v30, %v3927_v58  ;;  %v5694_v19 = vld [vmem:[%s5856_s10] ss:$0 sm:$0xff] }
 0x348   : > { %v2764_v39 = vadd.f32 %v2763_v0, %v2603_v15  ;;  %v2898_v20 = vsel %vm2827_vm3, %v2751_v52, %v2866_v59  ;;  %v2871_v8 = vmul.f32 %v5554_v11, %v2772_v27  ;;  %vm2832_vm4 = vcmp.ge.f32.partialorder %v2772_v27, 0.0  ;;  %v5938_v15 = vld [vmem:[#allocation18_spill] sm:$0xff] }
 0x349   : > { %v4065_v4 = vpop.f32.mrf.mxu1  ;;  %v2921_v37 = vpack.c.bf16 %v2898_v20, %v2897_v10  ;;  %v2643_v13 = vadd.f32 %v3926_v31, %v5542_v7  ;;  %v2635_v42 = vadd.f32 %v3920_v57, %v5937_v5  ;;  %v2485_v3 = vadd.f32 %v3817_v49, %v5938_v15  ;;  %v4317_v5 = vld [vmem:[%s4736_s16 + $0x38] sm:$0xff] }
 0x34a   : > { %v2775_v61 = vadd.f32 %v4065_v4, %v2614_v23  ;;  %v2869_v33 = vmul.f32 %v5554_v11, %v2764_v39  ;;  %v2903_v1 = vsel %vm2832_vm4, %v2772_v27, %v2871_v8  ;;  %vm2830_vm6 = vcmp.ge.f32.partialorder %v2764_v39, 0.0 }
 0x34b   : > { %v2766_v35 = vpop.f32.mrf.mxu1  ;;  %4106 = vmatprep.mubr.bf16.mxu0 %v2921_v37  ;;  %v3923_v59 = vadd.f32 %v5639_v62, %v5629_v47  ;;  %v2646_v23 = vadd.f32 %v3929_v40, %v2485_v3  ;;  %v5939_v47 = vld [vmem:[#allocation45_spill] sm:$0xff] }
 0x34c   : > { %vm2833_vm5 = vcmp.ge.f32.partialorder %v2775_v61, 0.0  ;;  %v2872_v17 = vmul.f32 %v5554_v11, %v2775_v61  ;;  %v2767_v63 = vadd.f32 %v2766_v35, %v2606_v25  ;;  %4107 = vmatmul.mubr.bf16.gmra.mxu0 %v2922_v56  ;;  %v2901_v32 = vsel %vm2830_vm6, %v2764_v39, %v2869_v33 }
 0x34d   : > { %v4068_v24 = vpop.f32.mrf.mxu1  ;;  %v2638_v62 = vadd.f32 %v3923_v59, %v5939_v47 }
 0x34e   : > { %v2904_v54 = vsel %vm2833_vm5, %v2775_v61, %v2872_v17  ;;  %vm2831_vm7 = vcmp.ge.f32.partialorder %v2767_v63, 0.0  ;;  %v2870_v14 = vmul.f32 %v5554_v11, %v2767_v63  ;;  %v2788_v45 = vadd.f32 %v4068_v24, %v2627_v26 }
 0x34f   : > { %v2924_v6 = vpack.c.bf16 %v2904_v54, %v2903_v1  ;;  %v2779_v16 = vpop.f32.mrf.mxu1 }
 0x350   : > { %v2780_v36 = vadd.f32 %v2779_v16, %v2619_v38  ;;  %v2902_v41 = vsel %vm2831_vm7, %v2767_v63, %v2870_v14  ;;  %v2875_v55 = vmul.f32 %v5554_v11, %v2788_v45  ;;  %vm2836_vm8 = vcmp.ge.f32.partialorder %v2788_v45, 0.0  ;;  %v4311_v38 = vld [vmem:[%s4736_s16 + $0x10] sm:$0xff]  ;;  %v4313_v16 = vld [vmem:[%s4736_s16 + $0x18] sm:$0xff] }
 0x351   : > { %v4069_v43 = vpop.f32.mrf.mxu1  ;;  %v2923_v52 = vpack.c.bf16 %v2902_v41, %v2901_v32  ;;  %v4314_v32 = vld [vmem:[%s4736_s16 + $0x8] sm:$0xff] }
 0x352   : > { %v2791_v51 = vadd.f32 %v4069_v43, %v2630_v44  ;;  %v2873_v34 = vmul.f32 %v5554_v11, %v2780_v36  ;;  %v2907_v27 = vsel %vm2836_vm8, %v2788_v45, %v2875_v55  ;;  %vm2834_vm10 = vcmp.ge.f32.partialorder %v2780_v36, 0.0  ;;  %v4312_v45 = vld [vmem:[%s4736_s16] sm:$0xff]  ;;  %v4315_v43 = vld [vmem:[%s4736_s16 + $0x30] sm:$0xff] }
 0x353   : > { %v2782_v18 = vpop.f32.mrf.mxu1  ;;  %4110 = vmatprep.mubr.bf16.mxu0 %v2923_v52 }
 0x354   : > { %vm2837_vm9 = vcmp.ge.f32.partialorder %v2791_v51, 0.0  ;;  %v2876_v21 = vmul.f32 %v5554_v11, %v2791_v51  ;;  %v2783_v50 = vadd.f32 %v2782_v18, %v2622_v12  ;;  %4111 = vmatmul.mubr.bf16.gmra.mxu0 %v2924_v6  ;;  %v2905_v10 = vsel %vm2834_vm10, %v2780_v36, %v2873_v34  ;;  %v4316_v12 = vld [vmem:[%s4736_s16 + $0x20] sm:$0xff] }
 0x355   : > { %v4072_v48 = vpop.f32.mrf.mxu1 }
 0x356   : > { %v2908_v56 = vsel %vm2837_vm9, %v2791_v51, %v2876_v21  ;;  %vm2835_vm11 = vcmp.ge.f32.partialorder %v2783_v50, 0.0  ;;  %v2874_v7 = vmul.f32 %v5554_v11, %v2783_v50  ;;  %v2804_v0 = vadd.f32 %v4072_v48, %v2643_v13 }
 0x357   : > { %v2926_v60 = vpack.c.bf16 %v2908_v56, %v2907_v27  ;;  %v2795_v39 = vpop.f32.mrf.mxu1  ;;  %v4319_v27 = vld [vmem:[%s4736_s16 + $0x50] sm:$0xff] }
 0x358   : > { %v2796_v53 = vadd.f32 %v2795_v39, %v2635_v42  ;;  %v2906_v20 = vsel %vm2835_vm11, %v2783_v50, %v2874_v7  ;;  %v2879_v4 = vmul.f32 %v5554_v11, %v2804_v0  ;;  %vm2840_vm12 = vcmp.ge.f32.partialorder %v2804_v0, 0.0  ;;  %v4318_v50 = vld [vmem:[%s4736_s16 + $0x28] sm:$0xff] }
 0x359   : > { %v4073_v22 = vpop.f32.mrf.mxu1  ;;  %v2925_v8 = vpack.c.bf16 %v2906_v20, %v2905_v10 }
 0x35a   : > { %v2807_v37 = vadd.f32 %v4073_v22, %v2646_v23  ;;  %v2877_v28 = vmul.f32 %v5554_v11, %v2796_v53  ;;  %vm2838_vm14 = vcmp.ge.f32.partialorder %v2796_v53, 0.0  ;;  %v2911_v35 = vsel %vm2840_vm12, %v2804_v0, %v2879_v4  ;;  %v4320_v0 = vld [vmem:[%s4736_s16 + $0x40] sm:$0xff]  ;;  %v4321_v23 = vld [vmem:[%s4736_s16 + $0x58] sm:$0xff] }
 0x35b   : > { %v2798_v61 = vpop.f32.mrf.mxu1  ;;  %4114 = vmatprep.mubr.bf16.mxu0 %v2925_v8  ;;  %v4322_v8 = vld [vmem:[%s4736_s16 + $0x48] sm:$0xff] }
 0x35c   : > { %vm2841_vm13 = vcmp.ge.f32.partialorder %v2807_v37, 0.0  ;;  %v2880_v25 = vmul.f32 %v5554_v11, %v2807_v37  ;;  %v2799_v2 = vadd.f32 %v2798_v61, %v2638_v62  ;;  %4115 = vmatmul.mubr.bf16.gmra.mxu0 %v2926_v60  ;;  %v2909_v33 = vsel %vm2838_vm14, %v2796_v53, %v2877_v28  ;;  %v4323_v62 = vld [vmem:[%s4736_s16 + $0x70] sm:$0xff] }
 0x35e   : > { %v2912_v9 = vsel %vm2841_vm13, %v2807_v37, %v2880_v25  ;;  %vm2839_vm15 = vcmp.ge.f32.partialorder %v2799_v2, 0.0  ;;  %v2878_v26 = vmul.f32 %v5554_v11, %v2799_v2 }
 0x35f   : > { %v2928_v58 = vpack.c.bf16 %v2912_v9, %v2911_v35 }
 0x360   : > { %v2910_v17 = vsel %vm2839_vm15, %v2799_v2, %v2878_v26  ;;  %v4324_v2 = vld [vmem:[%s4736_s16 + $0x60] sm:$0xff] }
 0x361   : > { %v2927_v63 = vpack.c.bf16 %v2910_v17, %v2909_v33 }
 0x363   : > { %4118 = vmatprep.mubr.bf16.mxu0 %v2927_v63 }
 0x364   : > { %4119 = vmatmul.mubr.bf16.gmra.mxu0 %v2928_v58  ;;  %v4325_v58 = vld [vmem:[%s4736_s16 + $0x78] sm:$0xff] }
 0x3ec   : > { %v4092_v1 = vpop.f32.mrf.mxu0 }
 0x3ed   : > { %v3043_v24 = vadd.f32 %v4092_v1, %v5694_v19  ;;  %v4326_v1 = vld [vmem:[%s4736_s16 + $0x68] sm:$0xff] }
 0x3ee   : > { %v3034_v46 = vpop.f32.mrf.mxu0 }
 0x3ef   : > { %v3163_v11 = vadd.f32 %v4311_v38, %v3043_v24  ;;  %v3035_v54 = vadd.f32 %v5694_v19, %v3034_v46 }
 0x3f0   : > { %v4093_v14 = vpop.f32.mrf.mxu0 }
 0x3f1   : > { %3195 = vst [vmem:[%s5701_s23 + $0x10] sm:$0xff] %v3163_v11  ;;  %v3161_v57 = vadd.f32 %v4312_v45, %v3035_v54  ;;  %v3046_v31 = vadd.f32 %v4093_v14, %v5694_v19  ;;  %v4327_v11 = vld [vmem:[%s4736_s16 + $0x90] sm:$0xff] }
 0x3f2   : > { %v3037_v6 = vpop.f32.mrf.mxu0 }
 0x3f3   : > { %3193 = vst [vmem:[%s5701_s23] sm:$0xff] %v3161_v57  ;;  %v3164_v30 = vadd.f32 %v4313_v16, %v3046_v31  ;;  %v3038_v36 = vadd.f32 %v5694_v19, %v3037_v6  ;;  %v4328_v57 = vld [vmem:[%s4736_s16 + $0x80] sm:$0xff] }
 0x3f4   : > { %v4096_v44 = vpop.f32.mrf.mxu0 }
 0x3f5   : > { %3196 = vst [vmem:[%s5701_s23 + $0x18] sm:$0xff] %v3164_v30  ;;  %v3162_v41 = vadd.f32 %v4314_v32, %v3038_v36  ;;  %v3059_v49 = vadd.f32 %v4096_v44, %v5694_v19  ;;  %v4329_v30 = vld [vmem:[%s4736_s16 + $0x98] sm:$0xff] }
 0x3f6   : > { %v3050_v55 = vpop.f32.mrf.mxu0 }
 0x3f7   : > { %3194 = vst [vmem:[%s5701_s23 + $0x8] sm:$0xff] %v3162_v41  ;;  %v3167_v52 = vadd.f32 %v4315_v43, %v3059_v49  ;;  %v3051_v51 = vadd.f32 %v5694_v19, %v3050_v55  ;;  %v4330_v41 = vld [vmem:[%s4736_s16 + $0x88] sm:$0xff] }
 0x3f8   : > { %v4097_v29 = vpop.f32.mrf.mxu0 }
 0x3f9   : > { %3199 = vst [vmem:[%s5701_s23 + $0x30] sm:$0xff] %v3167_v52  ;;  %v3165_v40 = vadd.f32 %v4316_v12, %v3051_v51  ;;  %v3062_v18 = vadd.f32 %v4097_v29, %v5694_v19  ;;  %v4331_v52 = vld [vmem:[%s4736_s16 + $0xb0] sm:$0xff] }
 0x3fa   : > { %v3053_v13 = vpop.f32.mrf.mxu0 }
 0x3fb   : > { %3197 = vst [vmem:[%s5701_s23 + $0x20] sm:$0xff] %v3165_v40  ;;  %v3168_v42 = vadd.f32 %v4317_v5, %v3062_v18  ;;  %v3054_v34 = vadd.f32 %v5694_v19, %v3053_v13  ;;  %v4332_v40 = vld [vmem:[%s4736_s16 + $0xa0] sm:$0xff] }
 0x3fc   : > { %v4100_v21 = vpop.f32.mrf.mxu0 }
 0x3fd   : > { %3200 = vst [vmem:[%s5701_s23 + $0x38] sm:$0xff] %v3168_v42  ;;  %v3166_v15 = vadd.f32 %v4318_v50, %v3054_v34  ;;  %v3075_v3 = vadd.f32 %v4100_v21, %v5694_v19  ;;  %v4333_v42 = vld [vmem:[%s4736_s16 + $0xb8] sm:$0xff] }
 0x3fe   : > { %v3066_v59 = vpop.f32.mrf.mxu0 }
 0x3ff   : > { %3198 = vst [vmem:[%s5701_s23 + $0x28] sm:$0xff] %v3166_v15  ;;  %v3171_v48 = vadd.f32 %v4319_v27, %v3075_v3  ;;  %v3067_v56 = vadd.f32 %v5694_v19, %v3066_v59  ;;  %v4334_v15 = vld [vmem:[%s4736_s16 + $0xa8] sm:$0xff] }
 0x400   : > { %v4101_v7 = vpop.f32.mrf.mxu0 }
 0x401   : > { %3203 = vst [vmem:[%s5701_s23 + $0x50] sm:$0xff] %v3171_v48  ;;  %v3169_v60 = vadd.f32 %v4320_v0, %v3067_v56  ;;  %v3078_v39 = vadd.f32 %v4101_v7, %v5694_v19  ;;  %v4335_v48 = vld [vmem:[%s4736_s16 + $0xd0] sm:$0xff] }
 0x402   : > { %v3069_v53 = vpop.f32.mrf.mxu0 }
 0x403   : > { %3201 = vst [vmem:[%s5701_s23 + $0x40] sm:$0xff] %v3169_v60  ;;  %v3172_v10 = vadd.f32 %v4321_v23, %v3078_v39  ;;  %v3070_v20 = vadd.f32 %v5694_v19, %v3069_v53  ;;  %v4336_v60 = vld [vmem:[%s4736_s16 + $0xc0] sm:$0xff] }
 0x404   : > { %v4104_v22 = vpop.f32.mrf.mxu0 }
 0x405   : > { %3204 = vst [vmem:[%s5701_s23 + $0x58] sm:$0xff] %v3172_v10  ;;  %v3170_v4 = vadd.f32 %v4322_v8, %v3070_v20  ;;  %v3091_v37 = vadd.f32 %v4104_v22, %v5694_v19  ;;  %v4337_v10 = vld [vmem:[%s4736_s16 + $0xd8] sm:$0xff] }
 0x406   : > { %v3082_v47 = vpop.f32.mrf.mxu0 }
 0x407   : > { %3202 = vst [vmem:[%s5701_s23 + $0x48] sm:$0xff] %v3170_v4  ;;  %v3175_v61 = vadd.f32 %v4323_v62, %v3091_v37  ;;  %v3083_v28 = vadd.f32 %v5694_v19, %v3082_v47  ;;  %v4338_v4 = vld [vmem:[%s4736_s16 + $0xc8] sm:$0xff] }
 0x408   : > { %v4105_v25 = vpop.f32.mrf.mxu0 }
 0x409   : > { %3207 = vst [vmem:[%s5701_s23 + $0x70] sm:$0xff] %v3175_v61  ;;  %v3173_v35 = vadd.f32 %v4324_v2, %v3083_v28  ;;  %v3094_v9 = vadd.f32 %v4105_v25, %v5694_v19  ;;  %v4339_v61 = vld [vmem:[%s4736_s16 + $0xf0] sm:$0xff] }
 0x40a   : > { %v3085_v26 = vpop.f32.mrf.mxu0 }
 0x40b   : > { %3205 = vst [vmem:[%s5701_s23 + $0x60] sm:$0xff] %v3173_v35  ;;  %v3176_v33 = vadd.f32 %v4325_v58, %v3094_v9  ;;  %v3086_v17 = vadd.f32 %v5694_v19, %v3085_v26  ;;  %v4340_v35 = vld [vmem:[%s4736_s16 + $0xe0] sm:$0xff] }
 0x40c   : > { %v4108_v63 = vpop.f32.mrf.mxu0 }
 0x40d   : > { %3208 = vst [vmem:[%s5701_s23 + $0x78] sm:$0xff] %v3176_v33  ;;  %v3174_v24 = vadd.f32 %v4326_v1, %v3086_v17  ;;  %v3107_v46 = vadd.f32 %v4108_v63, %v5694_v19  ;;  %v4341_v33 = vld [vmem:[%s4736_s16 + $0xf8] sm:$0xff]  ;;  %v4342_v1 = vld [vmem:[%s4736_s16 + $0xe8] sm:$0xff] }
 0x40e   : > { %v3098_v38 = vpop.f32.mrf.mxu0 }
 0x40f   : > { %3206 = vst [vmem:[%s5701_s23 + $0x68] sm:$0xff] %v3174_v24  ;;  %v3179_v54 = vadd.f32 %v4327_v11, %v3107_v46  ;;  %v3099_v14 = vadd.f32 %v5694_v19, %v3098_v38 }
 0x410   : > { %v4109_v45 = vpop.f32.mrf.mxu0 }
 0x411   : > { %3211 = vst [vmem:[%s5701_s23 + $0x90] sm:$0xff] %v3179_v54  ;;  %v3177_v31 = vadd.f32 %v4328_v57, %v3099_v14  ;;  %v3110_v6 = vadd.f32 %v4109_v45, %v5694_v19 }
 0x412   : > { %v3101_v16 = vpop.f32.mrf.mxu0 }
 0x413   : > { %3209 = vst [vmem:[%s5701_s23 + $0x80] sm:$0xff] %v3177_v31  ;;  %v3180_v36 = vadd.f32 %v4329_v30, %v3110_v6  ;;  %v3102_v44 = vadd.f32 %v5694_v19, %v3101_v16 }
 0x414   : > { %v4112_v32 = vpop.f32.mrf.mxu0 }
 0x415   : > { %3212 = vst [vmem:[%s5701_s23 + $0x98] sm:$0xff] %v3180_v36  ;;  %v3178_v49 = vadd.f32 %v4330_v41, %v3102_v44  ;;  %v3123_v55 = vadd.f32 %v4112_v32, %v5694_v19 }
 0x416   : > { %v3114_v43 = vpop.f32.mrf.mxu0 }
 0x417   : > { %3210 = vst [vmem:[%s5701_s23 + $0x88] sm:$0xff] %v3178_v49  ;;  %v3183_v51 = vadd.f32 %v4331_v52, %v3123_v55  ;;  %v3115_v29 = vadd.f32 %v5694_v19, %v3114_v43 }
 0x418   : > { %v4113_v12 = vpop.f32.mrf.mxu0 }
 0x419   : > { %3215 = vst [vmem:[%s5701_s23 + $0xb0] sm:$0xff] %v3183_v51  ;;  %v3181_v18 = vadd.f32 %v4332_v40, %v3115_v29  ;;  %v3126_v13 = vadd.f32 %v4113_v12, %v5694_v19 }
 0x41a   : > { %v3117_v5 = vpop.f32.mrf.mxu0 }
 0x41b   : > { %3213 = vst [vmem:[%s5701_s23 + $0xa0] sm:$0xff] %v3181_v18  ;;  %v3184_v34 = vadd.f32 %v4333_v42, %v3126_v13  ;;  %v3118_v21 = vadd.f32 %v5694_v19, %v3117_v5 }
 0x41c   : > { %v4116_v50 = vpop.f32.mrf.mxu0 }
 0x41d   : > { %3216 = vst [vmem:[%s5701_s23 + $0xb8] sm:$0xff] %v3184_v34  ;;  %v3182_v3 = vadd.f32 %v4334_v15, %v3118_v21  ;;  %v3139_v59 = vadd.f32 %v4116_v50, %v5694_v19 }
 0x41e   : > { %v3130_v27 = vpop.f32.mrf.mxu0 }
 0x41f   : > { %3214 = vst [vmem:[%s5701_s23 + $0xa8] sm:$0xff] %v3182_v3  ;;  %v3187_v56 = vadd.f32 %v4335_v48, %v3139_v59  ;;  %v3131_v7 = vadd.f32 %v5694_v19, %v3130_v27 }
 0x420   : > { %v4117_v0 = vpop.f32.mrf.mxu0 }
 0x421   : > { %3219 = vst [vmem:[%s5701_s23 + $0xd0] sm:$0xff] %v3187_v56  ;;  %v3185_v39 = vadd.f32 %v4336_v60, %v3131_v7  ;;  %v3142_v53 = vadd.f32 %v4117_v0, %v5694_v19 }
 0x422   : > { %v3133_v23 = vpop.f32.mrf.mxu0 }
 0x423   : > { %3217 = vst [vmem:[%s5701_s23 + $0xc0] sm:$0xff] %v3185_v39  ;;  %v3188_v20 = vadd.f32 %v4337_v10, %v3142_v53  ;;  %v3134_v22 = vadd.f32 %v5694_v19, %v3133_v23 }
 0x424   : > { %v4120_v8 = vpop.f32.mrf.mxu0 }
 0x425   : > { %3220 = vst [vmem:[%s5701_s23 + $0xd8] sm:$0xff] %v3188_v20  ;;  %v3186_v37 = vadd.f32 %v4338_v4, %v3134_v22  ;;  %v3155_v47 = vadd.f32 %v4120_v8, %v5694_v19 }
 0x426   : > { %v3146_v62 = vpop.f32.mrf.mxu0 }
 0x427   : > { %3218 = vst [vmem:[%s5701_s23 + $0xc8] sm:$0xff] %v3186_v37  ;;  %v3191_v28 = vadd.f32 %v4339_v61, %v3155_v47  ;;  %v3147_v25 = vadd.f32 %v5694_v19, %v3146_v62 }
 0x428   : > { %v4121_v2 = vpop.f32.mrf.mxu0 }
 0x429   : > { %3223 = vst [vmem:[%s5701_s23 + $0xf0] sm:$0xff] %v3191_v28  ;;  %v3189_v9 = vadd.f32 %v4340_v35, %v3147_v25  ;;  %v3158_v26 = vadd.f32 %v4121_v2, %v5694_v19 }
 0x42a   : > { %v3149_v58 = vpop.f32.mrf.mxu0 }
 0x42b   : > { %3221 = vst [vmem:[%s5701_s23 + $0xe0] sm:$0xff] %v3189_v9  ;;  %v3192_v17 = vadd.f32 %v4341_v33, %v3158_v26  ;;  %v3150_v63 = vadd.f32 %v5694_v19, %v3149_v58 }
 0x42d   : > { %3224 = vst [vmem:[%s5701_s23 + $0xf8] sm:$0xff] %v3192_v17  ;;  %v3190_v24 = vadd.f32 %v4342_v1, %v3150_v63 }
 0x42f   : > { %3222 = vst [vmem:[%s5701_s23 + $0xe8] sm:$0xff] %v3190_v24 }
 0x430   : > { %4462 = shalt.err (!%p4459_p9)
}
 0x431   : > { %s4463_s16 = scalar_lea.hbm %s5798_s29, 4096  ;;  %s4467_s2 = scalar_lea.hbm %s5857_s11, 8192 }
 0x432   : > { %p4464_p1 = scmp.ne.s32.totalorder %s5798_s29, %s4463_s16  ;;  %p4468_p11 = scmp.lt.s32.totalorder %s5798_s29, %s5857_s11 }
 0x433   : > { %p4469_p13 = scmp.lt.s32.totalorder %s4467_s2, %s4463_s16 }
 0x434   : > { %p4465_p8 = pnand %p4464_p1, %p5940_p6 }
 0x435   : > { %p4470_p2 = por %p4469_p13, %p4468_p11 }
 0x436   : > { %p4466_p10 = pneg %p4465_p8 }
 0x438   : > { %p4471_p4 = pnand %p4470_p2, %p4466_p10 }
 0x43a   : > { %4474 = shalt.err (!%p4471_p4)
}
 0x43b   : > { %s4533_s26 = smov 128   ;;  %s4534_s28 = smov 8  }
 0x43c   : > { %4152 = dma.vmem_to_hbm [thread:$0]  (%p5940_p6), %s5800_s25, 4096, %s5798_s29, %s3226_s21, %s4533_s26, %s4533_s26, %s4534_s28  }
 0x43d PF: > { %s3254_s27 = sand.u32 1, %s4509_s17   ;;  %p5941_p12 = scmp.ne.s32.totalorder %s5868_s24, 0 }
 0x43e   : > { %p5942_p0 = scmp.ge.s32.totalorder %s4521_s20, 2  ;;  %s3255_s22 = scalar_lea.sflag [#allocation5], %s3254_s27 }
 0x440   : > { %p4169_p5 = pnand %p5942_p0, %p5941_p12 }
 0x442   : > { %p4170_p3 = pneg %p4169_p5 }
 0x444   : > { %4504 = dma.done.wait (%p4170_p3), %s3255_s22, 4096  }
 0x445   : > { %4506 = vsyncadd (%p4170_p3), %s3255_s22, 4294963200  ;;  %s5943_s3 = sld [smem:[#allocation16_spill]]  ;;  %p26_p7 = scmp.ge.s32.totalorder %s4675_s30, 4  }
 0x446   : > { %s5944_s19 = sld [smem:[#allocation17_spill]]  ;;  %s5945_s17 = smov %s4513_s18 }
 0x447   : > { %s5947_s20 = smov %s4675_s30  ;;  %28 = sbr.rel (!%p26_p7) target bundleno = 11 (0xb), region = 124 }
 0x44b   : > { %s5946_s18 = smov %s5943_s3 }
 0x44c   :  { %3260 = vsyncpa [#allocation4], 1 }
 0x44d   :  { %3262 = vsyncpa [#allocation4 + $0x1], 1 }
 0x44e   :  { %3263 = vsyncpa [#allocation7], 1 }
 0x44f   :  { %3264 = vsyncpa [#allocation10], 1 }
 0x450   :  { %3265 = vsyncpa [#allocation5], 1 }
 0x451   :  { %3267 = vsyncpa [#allocation5 + $0x1], 1 }

</bundles_post_ra>
